<compile_context>
chip_gen: v5e
topology: v5e:2x2
jax: 0.10.0
libtpu: 0.0.40
codegen_flags: <defaults>
</compile_context>

<pallas_src>
import functools

import jax
import jax.numpy as jnp
from jax.experimental import pallas as pl
from jax.experimental.pallas import tpu as pltpu


def eeg_depth_attention_kernel(x_ref, cmat_ref, o_ref, *, c_scale):
    B, D, C, W = x_ref.shape

    x = x_ref[...]                                           # (B, D, C, W), input dtype

    # Electrode (axis-2) reduction for the adaptive average pool, accumulated in
    # f32.  The 1/C of the mean is pre-folded into the band matrix, so a plain
    # sublane sum suffices here (XLU, off the VALU critical path).
    pooled = jnp.sum(x.astype(jnp.float32), axis=2)          # (B, D, W)

    # Depth conv of the whole block as ONE block-diagonal banded matmul on the
    # MXU: (B*D, B*D) @ (B*D, W).  The (B, D, W) -> (B*D, W) reshape merges
    # leading dims only (D is a multiple of the 8-row sublane tile at these
    # shapes), so it is layout-free.
    y = jnp.dot(cmat_ref[...], pooled.reshape(B * D, W),
                preferred_element_type=jnp.float32)
    y = y.reshape(B, D, W)
    # NOTE: the scalar conv bias is intentionally omitted -- softmax over the
    # depth axis is shift-invariant, so a uniform scalar bias cancels exactly.

    # Softmax over the depth axis (axis 1); small (B, D, W) tile.
    y = y - jnp.max(y, axis=1, keepdims=True)
    e = jnp.exp(y)                                           # EUP
    s = jnp.sum(e, axis=1, keepdims=True)
    r = pl.reciprocal(s, approx=True)                        # EUP slot
    r = r * (2.0 - s * r)                                    # one Newton step, tiny tile
    attn = e * r                                             # (B, D, W)

    # Fold the x*C scale into the small attention map, cast once, and do the
    # single big multiply in the input dtype.
    scale = (attn * c_scale).astype(x.dtype)                 # (B, D, W)
    o_ref[...] = (scale[:, :, None, :] * x).astype(o_ref.dtype)


def make_conv_band_matrix(weight, D, k):
    """(D, D) matrix M with M[d, j] = weight[j - d + k//2] (zero outside the band).

    (M @ pooled)[d] == sum_i weight[i] * pooled[d + i - k//2] with zero padding,
    matching Conv2d(1, 1, kernel_size=(k, 1), padding=(k//2, 0)).
    """
    pad = k // 2
    d_idx = jnp.arange(D)[:, None]
    j_idx = jnp.arange(D)[None, :]
    tap = j_idx - d_idx + pad
    mask = (tap >= 0) & (tap < k)
    return jnp.where(mask, weight[jnp.clip(tap, 0, k - 1)], 0.0).astype(jnp.float32)


def _pick_block_b(N, sample_bytes, max_block_bytes=1 << 20, cap=32):
    """Largest divisor of N giving ~<=1 MiB blocks; keep grid >= 2 when N >= 2."""
    byte_cap = max(1, max_block_bytes // max(1, sample_bytes))
    b_cap = max(1, min(cap, byte_cap, N))
    if N >= 2:
        b_cap = min(b_cap, max(1, N // 2))   # >= 2 parallel grid steps (v7x: 2 TCs/chip)
    for b in range(b_cap, 0, -1):
        if N % b == 0:
            return b
    return 1


def eeg_depth_attention(x, conv_weight, conv_bias=None, k=7, c_scale=None,
                        block_b=None):
    """x: (N, D, C, W); conv_weight: (k,).

    conv_bias is an exact no-op under the depth softmax and is ignored.
    c_scale is the module's `self.C` multiplier; defaults to the electrode count
    (x.shape[2]), matching the constructor usage in the spec.
    """
    del conv_bias  # softmax over depth is invariant to a uniform scalar shift
    N, D, C, W = x.shape
    if c_scale is None:
        c_scale = C
    if block_b is None:
        block_b = _pick_block_b(N, D * C * W * x.dtype.itemsize)

    # Band matrix with the adaptive-pool 1/C folded in; block-diagonal copy so a
    # single matmul handles the depth conv of all `block_b` samples per grid
    # step.  Constant index_map -> fetched once / reused across the grid.
    cmat = make_conv_band_matrix(conv_weight.astype(jnp.float32), D, k) / float(C)
    cmat_big = jnp.kron(jnp.eye(block_b, dtype=jnp.float32), cmat)   # (b*D, b*D)

    # TODO(synk): for real LMDA shapes (e.g. C=22, W=1125) pad W to a multiple of
    # 128 (and C to a multiple of 8) in this wrapper to keep stores lane-dense.

    return pl.pallas_call(
        functools.partial(eeg_depth_attention_kernel, c_scale=float(c_scale)),
        out_shape=jax.ShapeDtypeStruct((N, D, C, W), x.dtype),
        grid_spec=pltpu.PrefetchScalarGridSpec(
            num_scalar_prefetch=0,
            grid=(N // block_b,),
            in_specs=[
                pl.BlockSpec((block_b, D, C, W), lambda n: (n, 0, 0, 0)),
                pl.BlockSpec((block_b * D, block_b * D), lambda n: (0, 0)),
            ],
            out_specs=pl.BlockSpec((block_b, D, C, W), lambda n: (n, 0, 0, 0)),
        ),
        compiler_params=pltpu.CompilerParams(
            dimension_semantics=("parallel",)),
    )(x, cmat_big)


def eeg_depth_attention_ref(x, conv_weight, conv_bias, k=7, c_scale=None):
    """Pure-JAX reference mirroring the PyTorch forward (bias included)."""
    N, D, C, W = x.shape
    if c_scale is None:
        c_scale = C
    pooled = jnp.mean(x.astype(jnp.float32), axis=2)               # (N, D, W)
    cmat = make_conv_band_matrix(conv_weight.astype(jnp.float32), D, k)
    y = jnp.einsum("de,new->ndw", cmat, pooled) + conv_bias        # (N, D, W)
    y = jax.nn.softmax(y, axis=1)
    return (y * c_scale)[:, :, None, :].astype(x.dtype) * x


if __name__ == "__main__":
    key = jax.random.PRNGKey(0)
    k_x, k_w, k_b = jax.random.split(key, 3)

    # Small-but-batched shapes consistent with the module:
    # batch=32, depth maps=8, electrodes=16, time samples=128, kernel k=7.
    # (32 samples -> two ~1 MiB blocks -> a parallel grid of 2.)
    N, D, C, W, K = 32, 8, 16, 128, 7
    x = jax.random.normal(k_x, (N, D, C, W), dtype=jnp.float32)

    # Conv2d(1, 1, (k, 1)) parameters: weight (1,1,k,1) -> (k,), scalar bias.
    conv_weight = 0.1 * jax.random.normal(k_w, (K,), dtype=jnp.float32)
    conv_bias = 0.05 * jax.random.normal(k_b, (), dtype=jnp.float32)

    out = eeg_depth_attention(x, conv_weight, conv_bias, k=K)
    out = jax.block_until_ready(out)

    ref = eeg_depth_attention_ref(x, conv_weight, conv_bias, k=K)
    assert out.shape == (N, D, C, W)
    assert jnp.allclose(out, ref, atol=1e-4, rtol=1e-4), "mismatch vs reference"

    print("KERNEL_OK")
</pallas_src>

<mosaic_0001>
module attributes {stable_mosaic.version = 11 : i64} {
  func.func @eeg_depth_attention_kernel(%arg0: i32, %arg1: memref<16x8x16x128xf32, #tpu.memory_space<vmem>>, %arg2: memref<128x128xf32, #tpu.memory_space<vmem>>, %arg3: memref<16x8x16x128xf32, #tpu.memory_space<vmem>>) attributes {dimension_semantics = [#tpu.dimension_semantics<parallel>], iteration_bounds = array<i64: 2>, scalar_prefetch = 0 : i64, scratch_operands = 0 : i64, tpu.core_type = #tpu.core_type<tc>, window_params = [{transform_indices = @transform_0, window_bounds = array<i64: 16, 8, 16, 128>}, {pipeline_mode = #tpu.pipeline_mode<synchronous>, transform_indices = @transform_1, window_bounds = array<i64: 128, 128>}, {transform_indices = @transform_2, window_bounds = array<i64: 16, 8, 16, 128>}]} {
    %c0 = arith.constant 0 : index
    %c0_0 = arith.constant 0 : index
    %c0_1 = arith.constant 0 : index
    %c0_2 = arith.constant 0 : index
    %0 = vector.load %arg1[%c0, %c0_0, %c0_1, %c0_2] : memref<16x8x16x128xf32, #tpu.memory_space<vmem>>, vector<16x8x16x128xf32>
    %cst = arith.constant dense<0.000000e+00> : vector<16x8x128xf32>
    %1 = vector.multi_reduction <add>, %0, %cst [2] : vector<16x8x16x128xf32> to vector<16x8x128xf32>
    %c0_3 = arith.constant 0 : index
    %c0_4 = arith.constant 0 : index
    %2 = vector.load %arg2[%c0_3, %c0_4] : memref<128x128xf32, #tpu.memory_space<vmem>>, vector<128x128xf32>
    %3 = vector.shape_cast %1 : vector<16x8x128xf32> to vector<128x128xf32>
    %cst_5 = arith.constant dense<0.000000e+00> : vector<128x128xf32>
    %4 = tpu.matmul %2, %3, %cst_5 {dimension_numbers = #tpu.dot_dimension_numbers<[1], [0], [0], [1], [0, 0, 1, 1], [], []>} : vector<128x128xf32>, vector<128x128xf32>, vector<128x128xf32> -> vector<128x128xf32>
    %5 = vector.shape_cast %4 : vector<128x128xf32> to vector<16x8x128xf32>
    %cst_6 = arith.constant dense<0xFF800000> : vector<16x128xf32>
    %6 = vector.multi_reduction <maximumf>, %5, %cst_6 [1] : vector<16x8x128xf32> to vector<16x128xf32>
    %7 = vector.shape_cast %6 : vector<16x128xf32> to vector<16x1x128xf32>
    %8 = vector.broadcast %7 : vector<16x1x128xf32> to vector<16x8x128xf32>
    %9 = arith.subf %5, %8 : vector<16x8x128xf32>
    %10 = math.exp %9 : vector<16x8x128xf32>
    %cst_7 = arith.constant dense<0.000000e+00> : vector<16x128xf32>
    %11 = vector.multi_reduction <add>, %10, %cst_7 [1] : vector<16x8x128xf32> to vector<16x128xf32>
    %12 = vector.shape_cast %11 : vector<16x128xf32> to vector<16x1x128xf32>
    %13 = tpu.reciprocal %12 {approx = true} : vector<16x1x128xf32> -> vector<16x1x128xf32>
    %14 = arith.mulf %12, %13 : vector<16x1x128xf32>
    %cst_8 = arith.constant 2.000000e+00 : f32
    %15 = vector.broadcast %cst_8 : f32 to vector<16x1x128xf32>
    %16 = arith.subf %15, %14 : vector<16x1x128xf32>
    %17 = arith.mulf %13, %16 : vector<16x1x128xf32>
    %18 = vector.broadcast %17 : vector<16x1x128xf32> to vector<16x8x128xf32>
    %19 = arith.mulf %10, %18 : vector<16x8x128xf32>
    %cst_9 = arith.constant 1.600000e+01 : f32
    %20 = vector.broadcast %cst_9 : f32 to vector<16x8x128xf32>
    %21 = arith.mulf %19, %20 : vector<16x8x128xf32>
    %22 = vector.shape_cast %21 : vector<16x8x128xf32> to vector<16x8x1x128xf32>
    %23 = vector.broadcast %22 : vector<16x8x1x128xf32> to vector<16x8x16x128xf32>
    %24 = arith.mulf %23, %0 : vector<16x8x16x128xf32>
    %c0_10 = arith.constant 0 : index
    %c0_11 = arith.constant 0 : index
    %c0_12 = arith.constant 0 : index
    %c0_13 = arith.constant 0 : index
    %25 = vector.load %arg3[%c0_10, %c0_11, %c0_12, %c0_13] : memref<16x8x16x128xf32, #tpu.memory_space<vmem>>, vector<16x8x16x128xf32>
    tpu.vector_store %arg3[%c0_10, %c0_11, %c0_12, %c0_13], %24 {strides = array<i32>} : memref<16x8x16x128xf32, #tpu.memory_space<vmem>>, vector<16x8x16x128xf32>,
    return
  }
  func.func @transform_0(%arg0: i32) -> (i32, i32, i32, i32) {
    %c0_i32 = arith.constant 0 : i32
    %c0_i32_0 = arith.constant 0 : i32
    %c0_i32_1 = arith.constant 0 : i32
    %c0_i32_2 = arith.constant 0 : i32
    return %arg0, %c0_i32, %c0_i32_0, %c0_i32_1 : i32, i32, i32, i32
  }
  func.func @transform_1(%arg0: i32) -> (i32, i32) {
    %c0_i32 = arith.constant 0 : i32
    %c0_i32_0 = arith.constant 0 : i32
    %c0_i32_1 = arith.constant 0 : i32
    return %c0_i32, %c0_i32_0 : i32, i32
  }
  func.func @transform_2(%arg0: i32) -> (i32, i32, i32, i32) {
    %c0_i32 = arith.constant 0 : i32
    %c0_i32_0 = arith.constant 0 : i32
    %c0_i32_1 = arith.constant 0 : i32
    %c0_i32_2 = arith.constant 0 : i32
    return %arg0, %c0_i32, %c0_i32_0, %c0_i32_1 : i32, i32, i32, i32
  }
}

</mosaic_0001>

<bundles_post_ra>
// kernel: tpu_custom_call.1
= control target key start
LH: loop header
LB: loop body
LE: loop exit
PB: predicated region body
PF: predicated region fallthrough
CT: control target
= control target key end

     0   :  { %7 = vsyncpa [#allocation3], 0  ;;  %s4921_s0 = inlined_call_operand.hbm [shape: f32[32,8,16,128], index: 0, kind: input, shape index: {}]   ;;  %s4922_s1 = inlined_call_operand.hbm [shape: f32[128,128], index: 1, kind: input, shape index: {}]   ;;  %s4923_s2 = inlined_call_operand.hbm [shape: f32[32,8,16,128], index: 2, kind: output, shape index: {}]  }
   0x1   :  { %9 = vsyncpa [#allocation3 + $0x1], 0 }
   0x2   :  { %10 = vsyncpa [#allocation6], 0 }
   0x3   :  { %11 = vsyncpa [#allocation4], 0 }
   0x4   :  { %13 = vsyncpa [#allocation4 + $0x1], 0  ;;  %s3599_s9 = smov 0   ;;  %s3601_s10 = smov 0  }
   0x5   :  { %s3603_s11 = smov 0   ;;  %s3605_s12 = smov 0  }
   0x6 LB: > { %s3620_s13 = sadd.s32 4294967295, %s3577_s12   ;;  %s3012_s14 = sadd.s32 4294967294, %s3577_s12   ;;  %s3577_s12 = sphi %s3605_s12, %s4933_s12   ;;  %s3573_s11 = sphi %s3603_s11, %s4932_s11   ;;  %s3569_s10 = sphi %s3601_s10, %s4931_s10   ;;  %s3565_s9 = sphi %s3599_s9, %s4930_s9  }
   0x7   : > { %p39_p0 = scmp.ne.s32.totalorder %s3569_s10, %s3565_s9  ;;  %p40_p1 = scmp.eq.s32.totalorder %s3620_s13, 0 }
   0x8   : > { %p84_p2 = scmp.eq.s32.totalorder %s3620_s13, 1  ;;  %p90_p3 = scmp.eq.s32.totalorder %s3012_s14, 1 }
   0x9   : > { %p3629_p4 = por %p40_p1, %p39_p0  ;;  %p3013_p5 = scmp.ge.s32.totalorder %s3577_s12, 1 }
   0xa   : > { %p3634_p6 = por %p90_p3, %p39_p0  ;;  %p97_p7 = scmp.lt.s32.totalorder %s3577_s12, 3 }
   0xb   : > { %s108_s19 = sshll.u32 %s4922_s1, 4  ;;  %s3579_s21 = smov [#allocation5]   ;;  %s109_s19 = int_to_ptr.hbm [resolvable:$true] %s108_s19 }
   0xc   : > { %p3642_p8 = pnand %p3013_p5, %p97_p7  ;;  %s110_s22 = sshll.u32 %s3579_s21, 4  ;;  %s111_s22 = int_to_ptr.vmem [resolvable:$true] %s110_s22 }
   0xd   : > { %s3652_s23 = sadd.s32 1, %s3577_s12   ;;  %s3580_s24 = smov 128  }
   0xe   : > { %p3090_p9 = pneg %p3642_p8  ;;  %s3581_s25 = smov 8  }
   0xf   : > { %s23_s26 = ssub.s32 %s3577_s12, %s3652_s23  ;;  %s26_s27 = sadd.s32 1, %s3573_s11 }
  0x10   : > { %p3091_p10 = pnand %p3090_p9, %p40_p1  ;;  %p24_p12 = scmp.eq.s32.totalorder %s23_s26, 0 }
  0x11   : > { %p33_p13 = scmp.ne.s32.totalorder %s3573_s11, %s3569_s10  ;;  %p34_p0 = scmp.eq.s32.totalorder %s3577_s12, 0 }
  0x12   : > { %3093 = dma.hbm_to_vmem [thread:$0]  (!%p3091_p10), %s109_s19, 2048, %s111_s22, [#allocation6], %s3580_s24, %s3580_s24, %s3581_s25  }
  0x13   : > { %s3664_s28 = scalar_select %p24_p12, %s3573_s11, %s26_s27  }
  0x14   : > { %p3668_p3 = por %p84_p2, %p33_p13  ;;  %p3103_p5 = scmp.lt.s32.totalorder %s3577_s12, 2 }
  0x15   : > { %s124_s30 = sand.u32 1, %s3573_s11   ;;  %s3031_s3 = sshll.u32 %s3577_s12, 11 }
  0x16   : > { %p35_p7 = por %p34_p0, %p33_p13  ;;  %s3016_s4 = sshll.u32 %s124_s30, 11 }
  0x17   : > { %s134_s7 = scalar_lea.hbm %s4921_s0, %s3031_s3  ;;  %s128_s14 = scalar_lea.vmem [#allocation2], %s3016_s4 }
  0x18   : > { %s135_s8 = sshll.u32 %s134_s7, 4  ;;  %s137_s17 = sshll.u32 %s128_s14, 4  ;;  %s136_s8 = int_to_ptr.hbm [resolvable:$true] %s135_s8  ;;  %s138_s17 = int_to_ptr.vmem [resolvable:$true] %s137_s17 }
  0x19   : > { %p3678_p9 = pnand %p3103_p5, %p35_p7  ;;  %s125_s19 = scalar_lea.sflag [#allocation3], %s124_s30 }
  0x1a   : > { %s3477_s21 = sshra.s32 %s136_s8, 4  ;;  %s3484_s3 = scalar_lea.hbm %s4921_s0, 4096  ;;  %s3478_s21 = int_to_ptr.hbm [resolvable:$true] %s3477_s21 }
  0x1b   : > { %s3479_s22 = scalar_lea.hbm %s3478_s21, 2048  ;;  %p3481_p10 = pneg %p3678_p9 }
  0x1c   : > { %p3480_p2 = scmp.ne.s32.totalorder %s3478_s21, %s3479_s22  ;;  %p3485_p0 = scmp.lt.s32.totalorder %s3478_s21, %s4921_s0 }
  0x1d   : > { %p3486_p5 = scmp.lt.s32.totalorder %s3484_s3, %s3479_s22 }
  0x1e   : > { %p3482_p12 = pnand %p3481_p10, %p3480_p2 }
  0x1f   : > { %p3487_p7 = por %p3486_p5, %p3485_p0 }
  0x20   : > { %p3483_p13 = pneg %p3482_p12 }
  0x22   : > { %p3488_p11 = pnand %p3487_p7, %p3483_p13 }
  0x24   : > { %3491 = shalt.err (!%p3488_p11)
}
  0x25   : > { %3097 = dma.hbm_to_vmem [thread:$0]  (!%p3678_p9), %s136_s8, 32768, %s138_s17, %s125_s19, %s3580_s24, %s3580_s24, %s3581_s25  }
  0x26   : > { %149 = sbr.rel (%p3642_p8) target bundleno = 750 (0x2ee), region = 28  ;;  %s3698_s30 = sand.u32 (!%p3642_p8), 1, %s3569_s10  }
  0x27   : > { %s3021_s6 = sshll.u32 (!%p3642_p8), %s3698_s30, 11  ;;  %s152_s7 = scalar_lea.sflag (!%p3642_p8), [#allocation3], %s3698_s30 }
  0x28   : > { %s3704_s14 = scalar_lea.vmem (!%p3642_p8), [#allocation2], %s3021_s6 }
  0x2b   : > { %3552 = dma.done.wait (%p3629_p4), %s152_s7, 32768  }
  0x2c   : > { %3554 = vsyncadd (%p3629_p4), %s152_s7, 4294934528 }
  0x2d   : > { %3556 = dma.done.wait (%p40_p1), [#allocation6], 2048  }
  0x2e   : > { %3558 = vsyncadd (%p40_p1), [#allocation6], 4294965248  ;;  %v424_v0 = vld [vmem:[%s3704_s14 + $0x780] sm:$0xff]  ;;  %v425_v1 = vld [vmem:[%s3704_s14 + $0x788] sm:$0xff]  ;;  %vm1480_vm0 = vcmask 1041409   ;;  %vm1482_vm1 = vcmask 1042434  }
  0x2f   : > { %v426_v2 = vld [vmem:[%s3704_s14 + $0x790] sm:$0xff]  ;;  %v427_v3 = vld [vmem:[%s3704_s14 + $0x798] sm:$0xff]  ;;  %v428_v4 = vld [vmem:[%s3704_s14 + $0x7a0] sm:$0xff]  ;;  %v1280_v6 = vadd.f32 %v425_v1, %v424_v0  ;;  %vm1484_vm2 = vcmask 1043459   ;;  %vm1486_vm3 = vcmask 1044484   ;;  %vm1488_vm4 = vcmask 1045509  }
  0x30   : > { %v429_v5 = vld [vmem:[%s3704_s14 + $0x7a8] sm:$0xff]  ;;  %v430_v7 = vld [vmem:[%s3704_s14 + $0x7b0] sm:$0xff]  ;;  %v431_v8 = vld [vmem:[%s3704_s14 + $0x7b8] sm:$0xff]  ;;  %v1287_v10 = vadd.f32 %v427_v3, %v426_v2  ;;  %vm1490_vm5 = vcmask 1046534   ;;  %vm1492_vm6 = vcmask 1047559   ;;  %s4145_s15 = scalar_lea.vmem [#allocation7], %s3021_s6 }
  0x31   : > { %v432_v9 = vld [vmem:[%s3704_s14 + $0x7c0] sm:$0xff]  ;;  %v1294_v11 = vadd.f32 %v429_v5, %v428_v4  ;;  %v433_v12 = vld [vmem:[%s3704_s14 + $0x7c8] sm:$0xff]  ;;  %v434_v13 = vld [vmem:[%s3704_s14 + $0x7d0] sm:$0xff]  ;;  %v1281_v15 = vrot.slane %v1280_v6, 4  ;;  %v1301_v16 = vadd.f32 %v431_v8, %v430_v7  ;;  %s3033_s20 = sshll.u32 %s3620_s13, 11  ;;  %s2926_s8 = sshll.u32 %s4145_s15, 4  ;;  %s2927_s8 = int_to_ptr.vmem [resolvable:$true] %s2926_s8 }
  0x32   : > { %v435_v14 = vld [vmem:[%s3704_s14 + $0x7d8] sm:$0xff]  ;;  %v436_v17 = vld [vmem:[%s3704_s14 + $0x7e0] sm:$0xff]  ;;  %v437_v18 = vld [vmem:[%s3704_s14 + $0x7e8] sm:$0xff]  ;;  %v1288_v20 = vrot.slane %v1287_v10, 4  ;;  %v1308_v22 = vadd.f32 %v433_v12, %v432_v9  ;;  %s2925_s25 = scalar_lea.hbm %s4923_s2, %s3033_s20  ;;  %s2913_s18 = scalar_lea.sflag [#allocation4], %s3698_s30 }
  0x33   : > { %v438_v19 = vld [vmem:[%s3704_s14 + $0x7f0] sm:$0xff]  ;;  %v1295_v21 = vrot.slane %v1294_v11, 4  ;;  %v1315_v23 = vadd.f32 %v435_v14, %v434_v13  ;;  %v439_v24 = vld [vmem:[%s3704_s14 + $0x7f8] sm:$0xff]  ;;  %v1282_v25 = vadd.f32 %v1281_v15, %v1280_v6  ;;  %v1302_v26 = vrot.slane %v1301_v16, 4  ;;  %v408_v56 = vld [vmem:[%s3704_s14 + $0x700] sm:$0xff]  ;;  %s2928_s17 = sshll.u32 %s2925_s25, 4  ;;  %s2929_s17 = int_to_ptr.hbm [resolvable:$true] %s2928_s17 }
  0x34   : > { %v1322_v27 = vadd.f32 %v437_v18, %v436_v17  ;;  %v1289_v28 = vadd.f32 %v1288_v20, %v1287_v10  ;;  %v1309_v30 = vrot.slane %v1308_v22, 4  ;;  %v1329_v35 = vadd.f32 %v439_v24, %v438_v19  ;;  %v409_v57 = vld [vmem:[%s3704_s14 + $0x708] sm:$0xff]  ;;  %v410_v62 = vld [vmem:[%s3704_s14 + $0x710] sm:$0xff]  ;;  %v411_v63 = vld [vmem:[%s3704_s14 + $0x718] sm:$0xff]  ;;  %s3521_s19 = sshra.s32 %s2929_s17, 4  ;;  %s3527_s27 = scalar_lea.hbm %s4923_s2, 4096  ;;  %s3522_s19 = int_to_ptr.hbm [resolvable:$true] %s3521_s19 }
  0x35   : > { %v1296_v29 = vadd.f32 %v1295_v21, %v1294_v11  ;;  %v1316_v31 = vrot.slane %v1315_v23, 4  ;;  %v1283_v32 = vrot.slane %v1282_v25, 2  ;;  %v1303_v33 = vadd.f32 %v1302_v26, %v1301_v16  ;;  %v412_v4 = vld [vmem:[%s3704_s14 + $0x720] sm:$0xff]  ;;  %v413_v8 = vld [vmem:[%s3704_s14 + $0x728] sm:$0xff]  ;;  %v414_v9 = vld [vmem:[%s3704_s14 + $0x730] sm:$0xff]  ;;  %s3523_s21 = scalar_lea.hbm %s3522_s19, 2048  ;;  %p3528_p11 = scmp.lt.s32.totalorder %s3522_s19, %s4923_s2 }
  0x36   : > { %v1323_v34 = vrot.slane %v1322_v27, 4  ;;  %v1290_v36 = vrot.slane %v1289_v28, 2  ;;  %v1310_v38 = vadd.f32 %v1309_v30, %v1308_v22  ;;  %v1330_v43 = vrot.slane %v1329_v35, 4  ;;  %v415_v10 = vld [vmem:[%s3704_s14 + $0x738] sm:$0xff]  ;;  %v416_v15 = vld [vmem:[%s3704_s14 + $0x740] sm:$0xff]  ;;  %v417_v16 = vld [vmem:[%s3704_s14 + $0x748] sm:$0xff]  ;;  %p3524_p1 = scmp.ne.s32.totalorder %s3522_s19, %s3523_s21  ;;  %p3529_p9 = scmp.lt.s32.totalorder %s3527_s27, %s3523_s21 }
  0x37   : > { %v1297_v37 = vrot.slane %v1296_v29, 2  ;;  %v1317_v39 = vadd.f32 %v1316_v31, %v1315_v23  ;;  %v1284_v40 = vadd.f32 %v1283_v32, %v1282_v25  ;;  %v1304_v41 = vrot.slane %v1303_v33, 2  ;;  %v418_v23 = vld [vmem:[%s3704_s14 + $0x750] sm:$0xff]  ;;  %v419_v24 = vld [vmem:[%s3704_s14 + $0x758] sm:$0xff] }
  0x38   : > { %v1324_v42 = vadd.f32 %v1323_v34, %v1322_v27  ;;  %v1291_v44 = vadd.f32 %v1290_v36, %v1289_v28  ;;  %v1311_v46 = vrot.slane %v1310_v38, 2  ;;  %v1331_v51 = vadd.f32 %v1330_v43, %v1329_v35  ;;  %v421_v34 = vld [vmem:[%s3704_s14 + $0x768] sm:$0xff]  ;;  %p3525_p4 = pnand %p3524_p1, %p3668_p3  ;;  %p3530_p2 = por %p3529_p9, %p3528_p11 }
  0x39   : > { %v1298_v45 = vadd.f32 %v1297_v37, %v1296_v29  ;;  %v1318_v47 = vrot.slane %v1317_v39, 2  ;;  %v1285_v48 = vrot.slane %v1284_v40, 1  ;;  %v1305_v49 = vadd.f32 %v1304_v41, %v1303_v33  ;;  %v420_v33 = vld [vmem:[%s3704_s14 + $0x760] sm:$0xff] }
  0x3a   : > { %v1325_v50 = vrot.slane %v1324_v42, 2  ;;  %v1292_v52 = vrot.slane %v1291_v44, 1  ;;  %v1312_v54 = vadd.f32 %v1311_v46, %v1310_v38  ;;  %v1332_v61 = vrot.slane %v1331_v51, 2  ;;  %p3526_p8 = pneg %p3525_p4 }
  0x3b   : > { %v1299_v53 = vrot.slane %v1298_v45, 1  ;;  %v1319_v55 = vadd.f32 %v1318_v47, %v1317_v39  ;;  %v1286_v58 = vadd.f32 %v1285_v48, %v1284_v40  ;;  %v1306_v59 = vrot.slane %v1305_v49, 1  ;;  %v422_v39 = vld [vmem:[%s3704_s14 + $0x770] sm:$0xff]  ;;  %v423_v40 = vld [vmem:[%s3704_s14 + $0x778] sm:$0xff] }
  0x3c   : > { %v1326_v60 = vadd.f32 %v1325_v50, %v1324_v42  ;;  %v1293_v0 = vadd.f32 %v1292_v52, %v1291_v44  ;;  %v1313_v2 = vrot.slane %v1312_v54, 1  ;;  %v1333_v7 = vadd.f32 %v1332_v61, %v1331_v51  ;;  %p3531_p10 = pnand %p3530_p2, %p3526_p8 }
  0x3d   : > { %v1300_v1 = vadd.f32 %v1299_v53, %v1298_v45  ;;  %v1320_v3 = vrot.slane %v1319_v55, 1  ;;  %v1307_v5 = vadd.f32 %v1306_v59, %v1305_v49  ;;  %v1224_v11 = vadd.f32 %v409_v57, %v408_v56 }
  0x3e   : > { %v1327_v6 = vrot.slane %v1326_v60, 1  ;;  %v1314_v12 = vadd.f32 %v1313_v2, %v1312_v54  ;;  %v1592_v14 = vsel %vm1480_vm0, %v1293_v0, %v1286_v58  ;;  %v1231_v17 = vadd.f32 %v411_v63, %v410_v62  ;;  %v392_v0 = vld [vmem:[%s3704_s14 + $0x680] sm:$0xff] }
  0x3f   : > { %v1321_v13 = vadd.f32 %v1320_v3, %v1319_v55  ;;  %v1334_v19 = vrot.slane %v1333_v7, 1  ;;  %v1593_v20 = vsel %vm1482_vm1, %v1300_v1, %v1592_v14  ;;  %v1225_v21 = vrot.slane %v1224_v11, 4  ;;  %v393_v1 = vld [vmem:[%s3704_s14 + $0x688] sm:$0xff]  ;;  %v395_v14 = vld [vmem:[%s3704_s14 + $0x698] sm:$0xff] }
  0x40   : > { %v1328_v18 = vadd.f32 %v1327_v6, %v1326_v60  ;;  %v1594_v22 = vsel %vm1484_vm2, %v1307_v5, %v1593_v20  ;;  %v1232_v25 = vrot.slane %v1231_v17, 4  ;;  %v1238_v26 = vadd.f32 %v413_v8, %v412_v4 }
  0x41   : > { %v1245_v27 = vadd.f32 %v415_v10, %v414_v9  ;;  %v1335_v28 = vadd.f32 %v1334_v19, %v1333_v7  ;;  %v1595_v29 = vsel %vm1486_vm3, %v1314_v12, %v1594_v22  ;;  %v1226_v30 = vadd.f32 %v1225_v21, %v1224_v11  ;;  %v394_v10 = vld [vmem:[%s3704_s14 + $0x690] sm:$0xff] }
  0x42   : > { %v1252_v31 = vadd.f32 %v417_v16, %v416_v15  ;;  %v1596_v32 = vsel %vm1488_vm4, %v1321_v13, %v1595_v29  ;;  %v1233_v35 = vadd.f32 %v1232_v25, %v1231_v17  ;;  %v1239_v36 = vrot.slane %v1238_v26, 4  ;;  %v396_v15 = vld [vmem:[%s3704_s14 + $0x6a0] sm:$0xff]  ;;  %v397_v16 = vld [vmem:[%s3704_s14 + $0x6a8] sm:$0xff]  ;;  %v399_v29 = vld [vmem:[%s3704_s14 + $0x6b8] sm:$0xff] }
  0x43   : > { %v1246_v37 = vrot.slane %v1245_v27, 4  ;;  %v1597_v38 = vsel %vm1490_vm5, %v1328_v18, %v1596_v32  ;;  %v1227_v41 = vrot.slane %v1226_v30, 2  ;;  %v1259_v43 = vadd.f32 %v419_v24, %v418_v23 }
  0x44   : > { %v1253_v42 = vrot.slane %v1252_v31, 4  ;;  %v1598_v44 = vsel %vm1492_vm6, %v1335_v28, %v1597_v38  ;;  %v1234_v45 = vrot.slane %v1233_v35, 2  ;;  %v1240_v46 = vadd.f32 %v1239_v36, %v1238_v26  ;;  %v398_v28 = vld [vmem:[%s3704_s14 + $0x6b0] sm:$0xff]  ;;  %v401_v36 = vld [vmem:[%s3704_s14 + $0x6c8] sm:$0xff] }
  0x45   : > { %v1247_v47 = vadd.f32 %v1246_v37, %v1245_v27  ;;  %1615 = vmatpush.msra.mxu0 %v1598_v44  ;;  %3034 = vmatpush.msra.mxu1 %v1598_v44  ;;  %v1228_v48 = vadd.f32 %v1227_v41, %v1226_v30  ;;  %v1260_v50 = vrot.slane %v1259_v43, 4  ;;  %v1266_v51 = vadd.f32 %v421_v34, %v420_v33  ;;  %v403_v41 = vld [vmem:[%s3704_s14 + $0x6d8] sm:$0xff] }
  0x46   : > { %v1254_v49 = vadd.f32 %v1253_v42, %v1252_v31  ;;  %3035 = vmatpush.msra.mxu2 %v1598_v44  ;;  %3036 = vmatpush.msra.mxu3 %v1598_v44  ;;  %v1235_v52 = vadd.f32 %v1234_v45, %v1233_v35  ;;  %v1241_v53 = vrot.slane %v1240_v46, 2  ;;  %v1273_v55 = vadd.f32 %v423_v40, %v422_v39  ;;  %v400_v35 = vld [vmem:[%s3704_s14 + $0x6c0] sm:$0xff]  ;;  %v402_v40 = vld [vmem:[%s3704_s14 + $0x6d0] sm:$0xff] }
  0x47   : > { %v1248_v54 = vrot.slane %v1247_v47, 2  ;;  %v1229_v56 = vrot.slane %v1228_v48, 1  ;;  %v1261_v58 = vadd.f32 %v1260_v50, %v1259_v43  ;;  %v1267_v59 = vrot.slane %v1266_v51, 4  ;;  %v405_v50 = vld [vmem:[%s3704_s14 + $0x6e8] sm:$0xff] }
  0x48   : > { %v1255_v57 = vrot.slane %v1254_v49, 2  ;;  %v1236_v60 = vrot.slane %v1235_v52, 1  ;;  %v1242_v61 = vadd.f32 %v1241_v53, %v1240_v46  ;;  %v1274_v63 = vrot.slane %v1273_v55, 4 }
  0x49   : > { %v1249_v62 = vadd.f32 %v1248_v54, %v1247_v47  ;;  %v1230_v2 = vadd.f32 %v1229_v56, %v1228_v48  ;;  %v1262_v4 = vrot.slane %v1261_v58, 2  ;;  %v1268_v5 = vadd.f32 %v1267_v59, %v1266_v51 }
  0x4a   : > { %v1256_v3 = vadd.f32 %v1255_v57, %v1254_v49  ;;  %v1237_v6 = vadd.f32 %v1236_v60, %v1235_v52  ;;  %v1243_v7 = vrot.slane %v1242_v61, 1  ;;  %v1275_v9 = vadd.f32 %v1274_v63, %v1273_v55  ;;  %v404_v49 = vld [vmem:[%s3704_s14 + $0x6e0] sm:$0xff]  ;;  %v407_v63 = vld [vmem:[%s3704_s14 + $0x6f8] sm:$0xff] }
  0x4b   : > { %v1250_v8 = vrot.slane %v1249_v62, 1  ;;  %v1263_v12 = vadd.f32 %v1262_v4, %v1261_v58  ;;  %v1269_v13 = vrot.slane %v1268_v5, 2  ;;  %v1168_v17 = vadd.f32 %v393_v1, %v392_v0 }
  0x4c   : > { %v1257_v11 = vrot.slane %v1256_v3, 1  ;;  %v1244_v18 = vadd.f32 %v1243_v7, %v1242_v61  ;;  %v1276_v20 = vrot.slane %v1275_v9, 2  ;;  %v1585_v21 = vsel %vm1480_vm0, %v1237_v6, %v1230_v2  ;;  %v376_v7 = vld [vmem:[%s3704_s14 + $0x600] sm:$0xff] }
  0x4d   : > { %v1251_v19 = vadd.f32 %v1250_v8, %v1249_v62  ;;  %v1264_v23 = vrot.slane %v1263_v12, 1  ;;  %v1270_v24 = vadd.f32 %v1269_v13, %v1268_v5  ;;  %v1169_v25 = vrot.slane %v1168_v17, 4  ;;  %v406_v62 = vld [vmem:[%s3704_s14 + $0x6f0] sm:$0xff]  ;;  %v377_v8 = vld [vmem:[%s3704_s14 + $0x608] sm:$0xff] }
  0x4e   : > { %v1258_v22 = vadd.f32 %v1257_v11, %v1256_v3  ;;  %v1277_v26 = vadd.f32 %v1276_v20, %v1275_v9  ;;  %v1586_v27 = vsel %vm1482_vm1, %v1244_v18, %v1585_v21  ;;  %v1175_v30 = vadd.f32 %v395_v14, %v394_v10  ;;  %v378_v20 = vld [vmem:[%s3704_s14 + $0x610] sm:$0xff]  ;;  %v379_v21 = vld [vmem:[%s3704_s14 + $0x618] sm:$0xff] }
  0x4f   : > { %v1182_v31 = vadd.f32 %v397_v16, %v396_v15  ;;  %v1265_v32 = vadd.f32 %v1264_v23, %v1263_v12  ;;  %v1271_v33 = vrot.slane %v1270_v24, 1  ;;  %v1587_v34 = vsel %vm1484_vm2, %v1251_v19, %v1586_v27 }
  0x50   : > { %v1170_v37 = vadd.f32 %v1169_v25, %v1168_v17  ;;  %v1278_v38 = vrot.slane %v1277_v26, 1  ;;  %v1588_v39 = vsel %vm1486_vm3, %v1258_v22, %v1587_v34  ;;  %v1176_v42 = vrot.slane %v1175_v30, 4  ;;  %v380_v34 = vld [vmem:[%s3704_s14 + $0x620] sm:$0xff] }
  0x51   : > { %v1183_v43 = vrot.slane %v1182_v31, 4  ;;  %v1272_v44 = vadd.f32 %v1271_v33, %v1270_v24  ;;  %v1589_v45 = vsel %vm1488_vm4, %v1265_v32, %v1588_v39  ;;  %v1189_v47 = vadd.f32 %v399_v29, %v398_v28 }
  0x52   : > { %v1171_v46 = vrot.slane %v1170_v37, 2  ;;  %v1279_v48 = vadd.f32 %v1278_v38, %v1277_v26  ;;  %v1177_v51 = vadd.f32 %v1176_v42, %v1175_v30  ;;  %v1196_v53 = vadd.f32 %v401_v36, %v400_v35  ;;  %v381_v35 = vld [vmem:[%s3704_s14 + $0x628] sm:$0xff] }
  0x53   : > { %v1184_v52 = vadd.f32 %v1183_v43, %v1182_v31  ;;  %v1590_v54 = vsel %vm1490_vm5, %v1272_v44, %v1589_v45  ;;  %v1190_v56 = vrot.slane %v1189_v47, 4  ;;  %v1203_v57 = vadd.f32 %v403_v41, %v402_v40  ;;  %v382_v43 = vld [vmem:[%s3704_s14 + $0x630] sm:$0xff]  ;;  %v383_v44 = vld [vmem:[%s3704_s14 + $0x638] sm:$0xff] }
  0x54   : > { %v1172_v55 = vadd.f32 %v1171_v46, %v1170_v37  ;;  %v1591_v58 = vsel %vm1492_vm6, %v1279_v48, %v1590_v54  ;;  %v1178_v59 = vrot.slane %v1177_v51, 2  ;;  %v1197_v61 = vrot.slane %v1196_v53, 4 }
  0x55   : > { %v1185_v60 = vrot.slane %v1184_v52, 2  ;;  %1616 = vmatpush.msra.mxu0 %v1591_v58  ;;  %3037 = vmatpush.msra.mxu1 %v1591_v58  ;;  %v1191_v1 = vadd.f32 %v1190_v56, %v1189_v47  ;;  %v1204_v2 = vrot.slane %v1203_v57, 4  ;;  %v1210_v3 = vadd.f32 %v405_v50, %v404_v49  ;;  %v384_v50 = vld [vmem:[%s3704_s14 + $0x640] sm:$0xff]  ;;  %v387_v56 = vld [vmem:[%s3704_s14 + $0x658] sm:$0xff] }
  0x56   : > { %v1173_v0 = vrot.slane %v1172_v55, 1  ;;  %3038 = vmatpush.msra.mxu2 %v1591_v58  ;;  %3039 = vmatpush.msra.mxu3 %v1591_v58  ;;  %v1179_v4 = vadd.f32 %v1178_v59, %v1177_v51  ;;  %v1198_v6 = vadd.f32 %v1197_v61, %v1196_v53  ;;  %v1217_v16 = vadd.f32 %v407_v63, %v406_v62  ;;  %v385_v51 = vld [vmem:[%s3704_s14 + $0x648] sm:$0xff] }
  0x57   : > { %v1186_v5 = vadd.f32 %v1185_v60, %v1184_v52  ;;  %v1192_v10 = vrot.slane %v1191_v1, 2  ;;  %v1205_v11 = vadd.f32 %v1204_v2, %v1203_v57  ;;  %v1211_v12 = vrot.slane %v1210_v3, 4 }
  0x58   : > { %v1174_v9 = vadd.f32 %v1173_v0, %v1172_v55  ;;  %v1180_v13 = vrot.slane %v1179_v4, 1  ;;  %v1199_v15 = vrot.slane %v1198_v6, 2  ;;  %v1112_v22 = vadd.f32 %v377_v8, %v376_v7  ;;  %v386_v55 = vld [vmem:[%s3704_s14 + $0x650] sm:$0xff]  ;;  %v388_v0 = vld [vmem:[%s3704_s14 + $0x660] sm:$0xff] }
  0x59   : > { %v1187_v14 = vrot.slane %v1186_v5, 1  ;;  %v1193_v17 = vadd.f32 %v1192_v10, %v1191_v1  ;;  %v1206_v18 = vrot.slane %v1205_v11, 2  ;;  %v1212_v19 = vadd.f32 %v1211_v12, %v1210_v3  ;;  %v389_v1 = vld [vmem:[%s3704_s14 + $0x668] sm:$0xff]  ;;  %v390_v10 = vld [vmem:[%s3704_s14 + $0x670] sm:$0xff] }
  0x5a   : > { %v1181_v23 = vadd.f32 %v1180_v13, %v1179_v4  ;;  %v1200_v25 = vadd.f32 %v1199_v15, %v1198_v6  ;;  %v1218_v26 = vrot.slane %v1217_v16, 4  ;;  %v1113_v30 = vrot.slane %v1112_v22, 4 }
  0x5b   : > { %v1188_v24 = vadd.f32 %v1187_v14, %v1186_v5  ;;  %v1194_v27 = vrot.slane %v1193_v17, 1  ;;  %v1207_v28 = vadd.f32 %v1206_v18, %v1205_v11  ;;  %v1213_v29 = vrot.slane %v1212_v19, 2  ;;  %v391_v14 = vld [vmem:[%s3704_s14 + $0x678] sm:$0xff] }
  0x5c   : > { %v1201_v31 = vrot.slane %v1200_v25, 1  ;;  %v1219_v32 = vadd.f32 %v1218_v26, %v1217_v16  ;;  %v1578_v33 = vsel %vm1480_vm0, %v1181_v23, %v1174_v9  ;;  %v1119_v36 = vadd.f32 %v379_v21, %v378_v20  ;;  %v361_v20 = vld [vmem:[%s3704_s14 + $0x588] sm:$0xff] }
  0x5d   : > { %v1195_v37 = vadd.f32 %v1194_v27, %v1193_v17  ;;  %v1208_v38 = vrot.slane %v1207_v28, 1  ;;  %v1214_v39 = vadd.f32 %v1213_v29, %v1212_v19  ;;  %v1579_v40 = vsel %vm1482_vm1, %v1188_v24, %v1578_v33  ;;  %v360_v19 = vld [vmem:[%s3704_s14 + $0x580] sm:$0xff] }
  0x5e   : > { %v1202_v41 = vadd.f32 %v1201_v31, %v1200_v25  ;;  %v1220_v42 = vrot.slane %v1219_v32, 2  ;;  %v1114_v45 = vadd.f32 %v1113_v30, %v1112_v22  ;;  %v1120_v46 = vrot.slane %v1119_v36, 4 }
  0x5f   : > { %v1209_v47 = vadd.f32 %v1208_v38, %v1207_v28  ;;  %v1215_v48 = vrot.slane %v1214_v39, 1  ;;  %v1580_v49 = vsel %vm1484_vm2, %v1195_v37, %v1579_v40  ;;  %v1126_v52 = vadd.f32 %v381_v35, %v380_v34  ;;  %v362_v37 = vld [vmem:[%s3704_s14 + $0x590] sm:$0xff]  ;;  %v363_v38 = vld [vmem:[%s3704_s14 + $0x598] sm:$0xff] }
  0x60   : > { %v1221_v53 = vadd.f32 %v1220_v42, %v1219_v32  ;;  %v1581_v54 = vsel %vm1486_vm3, %v1202_v41, %v1580_v49  ;;  %v1115_v57 = vrot.slane %v1114_v45, 2  ;;  %v1121_v58 = vadd.f32 %v1120_v46, %v1119_v36  ;;  %v364_v49 = vld [vmem:[%s3704_s14 + $0x5a0] sm:$0xff] }
  0x61   : > { %v1216_v59 = vadd.f32 %v1215_v48, %v1214_v39  ;;  %v1582_v60 = vsel %vm1488_vm4, %v1209_v47, %v1581_v54  ;;  %v1127_v61 = vrot.slane %v1126_v52, 4  ;;  %v1133_v62 = vadd.f32 %v383_v44, %v382_v43 }
  0x62   : > { %v1222_v63 = vrot.slane %v1221_v53, 1  ;;  %v1116_v2 = vadd.f32 %v1115_v57, %v1114_v45  ;;  %v1122_v3 = vrot.slane %v1121_v58, 2  ;;  %v1140_v4 = vadd.f32 %v385_v51, %v384_v50  ;;  %v365_v50 = vld [vmem:[%s3704_s14 + $0x5a8] sm:$0xff] }
  0x63   : > { %v1583_v5 = vsel %vm1490_vm5, %v1216_v59, %v1582_v60  ;;  %v1128_v6 = vadd.f32 %v1127_v61, %v1126_v52  ;;  %v1134_v7 = vrot.slane %v1133_v62, 4  ;;  %v1147_v8 = vadd.f32 %v387_v56, %v386_v55  ;;  %v366_v59 = vld [vmem:[%s3704_s14 + $0x5b0] sm:$0xff]  ;;  %v367_v60 = vld [vmem:[%s3704_s14 + $0x5b8] sm:$0xff] }
  0x64   : > { %v1223_v9 = vadd.f32 %v1222_v63, %v1221_v53  ;;  %v1117_v11 = vrot.slane %v1116_v2, 1  ;;  %v1123_v12 = vadd.f32 %v1122_v3, %v1121_v58  ;;  %v1141_v13 = vrot.slane %v1140_v4, 4  ;;  %v369_v3 = vld [vmem:[%s3704_s14 + $0x5c8] sm:$0xff] }
  0x65   : > { %v1129_v15 = vrot.slane %v1128_v6, 2  ;;  %v1135_v16 = vadd.f32 %v1134_v7, %v1133_v62  ;;  %v1148_v17 = vrot.slane %v1147_v8, 4  ;;  %v1154_v18 = vadd.f32 %v389_v1, %v388_v0  ;;  %v370_v7 = vld [vmem:[%s3704_s14 + $0x5d0] sm:$0xff] }
  0x66   : > { %v1584_v21 = vsel %vm1492_vm6, %v1223_v9, %v1583_v5  ;;  %v1118_v22 = vadd.f32 %v1117_v11, %v1116_v2  ;;  %v1124_v23 = vrot.slane %v1123_v12, 1  ;;  %v1142_v24 = vadd.f32 %v1141_v13, %v1140_v4  ;;  %v368_v2 = vld [vmem:[%s3704_s14 + $0x5c0] sm:$0xff] }
  0x67   : > { %1617 = vmatpush.msra.mxu0 %v1584_v21  ;;  %3040 = vmatpush.msra.mxu1 %v1584_v21  ;;  %v1130_v25 = vadd.f32 %v1129_v15, %v1128_v6  ;;  %v1136_v26 = vrot.slane %v1135_v16, 2  ;;  %v1149_v27 = vadd.f32 %v1148_v17, %v1147_v8  ;;  %v1155_v28 = vrot.slane %v1154_v18, 4  ;;  %v371_v8 = vld [vmem:[%s3704_s14 + $0x5d8] sm:$0xff]  ;;  %v373_v17 = vld [vmem:[%s3704_s14 + $0x5e8] sm:$0xff] }
  0x68   : > { %3041 = vmatpush.msra.mxu2 %v1584_v21  ;;  %3042 = vmatpush.msra.mxu3 %v1584_v21  ;;  %v1125_v29 = vadd.f32 %v1124_v23, %v1123_v12  ;;  %v1143_v30 = vrot.slane %v1142_v24, 2  ;;  %v1161_v31 = vadd.f32 %v391_v14, %v390_v10  ;;  %v1056_v32 = vadd.f32 %v361_v20, %v360_v19  ;;  %v375_v23 = vld [vmem:[%s3704_s14 + $0x5f8] sm:$0xff] }
  0x69   : > { %v1131_v33 = vrot.slane %v1130_v25, 1  ;;  %v1137_v34 = vadd.f32 %v1136_v26, %v1135_v16  ;;  %v1150_v35 = vrot.slane %v1149_v27, 2  ;;  %v1156_v36 = vadd.f32 %v1155_v28, %v1154_v18  ;;  %v372_v16 = vld [vmem:[%s3704_s14 + $0x5e0] sm:$0xff] }
  0x6a   : > { %v1144_v39 = vadd.f32 %v1143_v30, %v1142_v24  ;;  %v1162_v40 = vrot.slane %v1161_v31, 4  ;;  %v1571_v41 = vsel %vm1480_vm0, %v1125_v29, %v1118_v22  ;;  %v1057_v42 = vrot.slane %v1056_v32, 4  ;;  %v374_v22 = vld [vmem:[%s3704_s14 + $0x5f0] sm:$0xff] }
  0x6b   : > { %v1132_v43 = vadd.f32 %v1131_v33, %v1130_v25  ;;  %v1138_v44 = vrot.slane %v1137_v34, 1  ;;  %v1151_v45 = vadd.f32 %v1150_v35, %v1149_v27  ;;  %v1157_v46 = vrot.slane %v1156_v36, 2  ;;  %v344_v35 = vld [vmem:[%s3704_s14 + $0x500] sm:$0xff] }
  0x6c   : > { %v1145_v47 = vrot.slane %v1144_v39, 1  ;;  %v1163_v48 = vadd.f32 %v1162_v40, %v1161_v31  ;;  %v1058_v51 = vadd.f32 %v1057_v42, %v1056_v32  ;;  %v1063_v52 = vadd.f32 %v363_v38, %v362_v37 }
  0x6d   : > { %v1139_v53 = vadd.f32 %v1138_v44, %v1137_v34  ;;  %v1152_v54 = vrot.slane %v1151_v45, 1  ;;  %v1158_v55 = vadd.f32 %v1157_v46, %v1156_v36  ;;  %v1572_v56 = vsel %vm1482_vm1, %v1132_v43, %v1571_v41  ;;  %v345_v36 = vld [vmem:[%s3704_s14 + $0x508] sm:$0xff] }
  0x6e   : > { %v1146_v57 = vadd.f32 %v1145_v47, %v1144_v39  ;;  %v1164_v58 = vrot.slane %v1163_v48, 2  ;;  %v1059_v61 = vrot.slane %v1058_v51, 2  ;;  %v1064_v62 = vrot.slane %v1063_v52, 4 }
  0x6f   : > { %v1153_v63 = vadd.f32 %v1152_v54, %v1151_v45  ;;  %v1159_v0 = vrot.slane %v1158_v55, 1  ;;  %v1573_v1 = vsel %vm1484_vm2, %v1139_v53, %v1572_v56  ;;  %v1070_v4 = vadd.f32 %v365_v50, %v364_v49  ;;  %v346_v53 = vld [vmem:[%s3704_s14 + $0x510] sm:$0xff]  ;;  %v347_v54 = vld [vmem:[%s3704_s14 + $0x518] sm:$0xff] }
  0x70   : > { %v1165_v5 = vadd.f32 %v1164_v58, %v1163_v48  ;;  %v1574_v6 = vsel %vm1486_vm3, %v1146_v57, %v1573_v1  ;;  %v1060_v9 = vadd.f32 %v1059_v61, %v1058_v51  ;;  %v1065_v10 = vadd.f32 %v1064_v62, %v1063_v52  ;;  %v348_v1 = vld [vmem:[%s3704_s14 + $0x520] sm:$0xff] }
  0x71   : > { %v1160_v11 = vadd.f32 %v1159_v0, %v1158_v55  ;;  %v1575_v12 = vsel %vm1488_vm4, %v1153_v63, %v1574_v6  ;;  %v1071_v13 = vrot.slane %v1070_v4, 4  ;;  %v1077_v14 = vadd.f32 %v367_v60, %v366_v59 }
  0x72   : > { %v1166_v15 = vrot.slane %v1165_v5, 1  ;;  %v1061_v18 = vrot.slane %v1060_v9, 1  ;;  %v1066_v19 = vrot.slane %v1065_v10, 2  ;;  %v1084_v20 = vadd.f32 %v369_v3, %v368_v2  ;;  %v349_v2 = vld [vmem:[%s3704_s14 + $0x528] sm:$0xff] }
  0x73   : > { %v1576_v21 = vsel %vm1490_vm5, %v1160_v11, %v1575_v12  ;;  %v1072_v24 = vadd.f32 %v1071_v13, %v1070_v4  ;;  %v1078_v25 = vrot.slane %v1077_v14, 4  ;;  %v1091_v26 = vadd.f32 %v371_v8, %v370_v7  ;;  %v350_v11 = vld [vmem:[%s3704_s14 + $0x530] sm:$0xff]  ;;  %v351_v12 = vld [vmem:[%s3704_s14 + $0x538] sm:$0xff] }
  0x74   : > { %v1167_v27 = vadd.f32 %v1166_v15, %v1165_v5  ;;  %v1062_v28 = vadd.f32 %v1061_v18, %v1060_v9  ;;  %v1067_v29 = vadd.f32 %v1066_v19, %v1065_v10  ;;  %v1085_v30 = vrot.slane %v1084_v20, 4  ;;  %v352_v18 = vld [vmem:[%s3704_s14 + $0x540] sm:$0xff]  ;;  %v353_v19 = vld [vmem:[%s3704_s14 + $0x548] sm:$0xff] }
  0x75   : > { %v1073_v31 = vrot.slane %v1072_v24, 2  ;;  %v1079_v32 = vadd.f32 %v1078_v25, %v1077_v14  ;;  %v1092_v33 = vrot.slane %v1091_v26, 4  ;;  %v1098_v34 = vadd.f32 %v373_v17, %v372_v16 }
  0x76   : > { %v1577_v37 = vsel %vm1492_vm6, %v1167_v27, %v1576_v21  ;;  %v1068_v38 = vrot.slane %v1067_v29, 1  ;;  %v1086_v39 = vadd.f32 %v1085_v30, %v1084_v20  ;;  %v1105_v40 = vadd.f32 %v375_v23, %v374_v22  ;;  %v354_v23 = vld [vmem:[%s3704_s14 + $0x550] sm:$0xff] }
  0x77   : > { %1618 = vmatpush.msra.mxu0 %v1577_v37  ;;  %3043 = vmatpush.msra.mxu1 %v1577_v37  ;;  %v1074_v41 = vadd.f32 %v1073_v31, %v1072_v24  ;;  %v1080_v42 = vrot.slane %v1079_v32, 2  ;;  %v1093_v43 = vadd.f32 %v1092_v33, %v1091_v26  ;;  %v1099_v44 = vrot.slane %v1098_v34, 4  ;;  %v355_v24 = vld [vmem:[%s3704_s14 + $0x558] sm:$0xff]  ;;  %v357_v33 = vld [vmem:[%s3704_s14 + $0x568] sm:$0xff] }
  0x78   : > { %3044 = vmatpush.msra.mxu2 %v1577_v37  ;;  %3045 = vmatpush.msra.mxu3 %v1577_v37  ;;  %v1069_v45 = vadd.f32 %v1068_v38, %v1067_v29  ;;  %v1087_v46 = vrot.slane %v1086_v39, 2  ;;  %v1106_v47 = vrot.slane %v1105_v40, 4  ;;  %v1000_v48 = vadd.f32 %v345_v36, %v344_v35 }
  0x79   : > { %v1075_v49 = vrot.slane %v1074_v41, 1  ;;  %v1081_v50 = vadd.f32 %v1080_v42, %v1079_v32  ;;  %v1094_v51 = vrot.slane %v1093_v43, 2  ;;  %v1100_v52 = vadd.f32 %v1099_v44, %v1098_v34  ;;  %v356_v32 = vld [vmem:[%s3704_s14 + $0x560] sm:$0xff]  ;;  %v358_v34 = vld [vmem:[%s3704_s14 + $0x570] sm:$0xff]  ;;  %v329_v44 = vld [vmem:[%s3704_s14 + $0x488] sm:$0xff] }
  0x7a   : > { %v1088_v55 = vadd.f32 %v1087_v46, %v1086_v39  ;;  %v1107_v56 = vadd.f32 %v1106_v47, %v1105_v40  ;;  %v1564_v57 = vsel %vm1480_vm0, %v1069_v45, %v1062_v28  ;;  %v1001_v58 = vrot.slane %v1000_v48, 4  ;;  %v359_v39 = vld [vmem:[%s3704_s14 + $0x578] sm:$0xff] }
  0x7b   : > { %v1076_v59 = vadd.f32 %v1075_v49, %v1074_v41  ;;  %v1082_v60 = vrot.slane %v1081_v50, 1  ;;  %v1095_v61 = vadd.f32 %v1094_v51, %v1093_v43  ;;  %v1101_v62 = vrot.slane %v1100_v52, 2  ;;  %v328_v43 = vld [vmem:[%s3704_s14 + $0x480] sm:$0xff] }
  0x7c   : > { %v1089_v63 = vrot.slane %v1088_v55, 1  ;;  %v1108_v0 = vrot.slane %v1107_v56, 2  ;;  %v1002_v3 = vadd.f32 %v1001_v58, %v1000_v48  ;;  %v1007_v4 = vadd.f32 %v347_v54, %v346_v53 }
  0x7d   : > { %v1083_v5 = vadd.f32 %v1082_v60, %v1081_v50  ;;  %v1096_v6 = vrot.slane %v1095_v61, 1  ;;  %v1102_v7 = vadd.f32 %v1101_v62, %v1100_v52  ;;  %v1565_v8 = vsel %vm1482_vm1, %v1076_v59, %v1564_v57 }
  0x7e   : > { %v1090_v9 = vadd.f32 %v1089_v63, %v1088_v55  ;;  %v1109_v10 = vadd.f32 %v1108_v0, %v1107_v56  ;;  %v1003_v13 = vrot.slane %v1002_v3, 2  ;;  %v1008_v14 = vrot.slane %v1007_v4, 4 }
  0x7f   : > { %v1097_v15 = vadd.f32 %v1096_v6, %v1095_v61  ;;  %v1103_v16 = vrot.slane %v1102_v7, 1  ;;  %v1566_v17 = vsel %vm1484_vm2, %v1083_v5, %v1565_v8  ;;  %v1014_v20 = vadd.f32 %v349_v2, %v348_v1  ;;  %v330_v5 = vld [vmem:[%s3704_s14 + $0x490] sm:$0xff]  ;;  %v331_v6 = vld [vmem:[%s3704_s14 + $0x498] sm:$0xff] }
  0x80   : > { %v1110_v21 = vrot.slane %v1109_v10, 1  ;;  %v1567_v22 = vsel %vm1486_vm3, %v1090_v9, %v1566_v17  ;;  %v1004_v25 = vadd.f32 %v1003_v13, %v1002_v3  ;;  %v1009_v26 = vadd.f32 %v1008_v14, %v1007_v4  ;;  %v332_v17 = vld [vmem:[%s3704_s14 + $0x4a0] sm:$0xff] }
  0x81   : > { %v1104_v27 = vadd.f32 %v1103_v16, %v1102_v7  ;;  %v1568_v28 = vsel %vm1488_vm4, %v1097_v15, %v1567_v22  ;;  %v1015_v29 = vrot.slane %v1014_v20, 4  ;;  %v1021_v30 = vadd.f32 %v351_v12, %v350_v11 }
  0x82   : > { %v1111_v31 = vadd.f32 %v1110_v21, %v1109_v10  ;;  %v1005_v35 = vrot.slane %v1004_v25, 1  ;;  %v1010_v36 = vrot.slane %v1009_v26, 2  ;;  %v1028_v37 = vadd.f32 %v353_v19, %v352_v18  ;;  %v333_v18 = vld [vmem:[%s3704_s14 + $0x4a8] sm:$0xff] }
  0x83   : > { %v1569_v38 = vsel %vm1490_vm5, %v1104_v27, %v1568_v28  ;;  %v1016_v40 = vadd.f32 %v1015_v29, %v1014_v20  ;;  %v1022_v41 = vrot.slane %v1021_v30, 4  ;;  %v1035_v42 = vadd.f32 %v355_v24, %v354_v23  ;;  %v334_v27 = vld [vmem:[%s3704_s14 + $0x4b0] sm:$0xff]  ;;  %v335_v28 = vld [vmem:[%s3704_s14 + $0x4b8] sm:$0xff] }
  0x84   : > { %v1570_v45 = vsel %vm1492_vm6, %v1111_v31, %v1569_v38  ;;  %v1006_v46 = vadd.f32 %v1005_v35, %v1004_v25  ;;  %v1011_v47 = vadd.f32 %v1010_v36, %v1009_v26  ;;  %v1029_v48 = vrot.slane %v1028_v37, 4  ;;  %v337_v35 = vld [vmem:[%s3704_s14 + $0x4c8] sm:$0xff] }
  0x85   : > { %1619 = vmatpush.msra.mxu0 %v1570_v45  ;;  %3046 = vmatpush.msra.mxu1 %v1570_v45  ;;  %v1017_v49 = vrot.slane %v1016_v40, 2  ;;  %v1023_v50 = vadd.f32 %v1022_v41, %v1021_v30  ;;  %v1036_v51 = vrot.slane %v1035_v42, 4  ;;  %v1042_v52 = vadd.f32 %v357_v33, %v356_v32 }
  0x86   : > { %3047 = vmatpush.msra.mxu2 %v1570_v45  ;;  %3048 = vmatpush.msra.mxu3 %v1570_v45  ;;  %v1012_v53 = vrot.slane %v1011_v47, 1  ;;  %v1030_v54 = vadd.f32 %v1029_v48, %v1028_v37  ;;  %v1049_v55 = vadd.f32 %v359_v39, %v358_v34  ;;  %v944_v56 = vadd.f32 %v329_v44, %v328_v43  ;;  %v336_v34 = vld [vmem:[%s3704_s14 + $0x4c0] sm:$0xff]  ;;  %v338_v39 = vld [vmem:[%s3704_s14 + $0x4d0] sm:$0xff] }
  0x87   : > { %v1018_v57 = vadd.f32 %v1017_v49, %v1016_v40  ;;  %v1024_v58 = vrot.slane %v1023_v50, 2  ;;  %v1037_v59 = vadd.f32 %v1036_v51, %v1035_v42  ;;  %v1043_v60 = vrot.slane %v1042_v52, 4  ;;  %v339_v40 = vld [vmem:[%s3704_s14 + $0x4d8] sm:$0xff]  ;;  %v340_v45 = vld [vmem:[%s3704_s14 + $0x4e0] sm:$0xff] }
  0x88   : > { %v1013_v61 = vadd.f32 %v1012_v53, %v1011_v47  ;;  %v1031_v62 = vrot.slane %v1030_v54, 2  ;;  %v1050_v63 = vrot.slane %v1049_v55, 4  ;;  %v945_v0 = vrot.slane %v944_v56, 4  ;;  %v343_v51 = vld [vmem:[%s3704_s14 + $0x4f8] sm:$0xff] }
  0x89   : > { %v1019_v1 = vrot.slane %v1018_v57, 1  ;;  %v1025_v2 = vadd.f32 %v1024_v58, %v1023_v50  ;;  %v1038_v3 = vrot.slane %v1037_v59, 2  ;;  %v1044_v4 = vadd.f32 %v1043_v60, %v1042_v52  ;;  %v342_v50 = vld [vmem:[%s3704_s14 + $0x4f0] sm:$0xff]  ;;  %v313_v60 = vld [vmem:[%s3704_s14 + $0x408] sm:$0xff] }
  0x8a   : > { %v1032_v7 = vadd.f32 %v1031_v62, %v1030_v54  ;;  %v1051_v8 = vadd.f32 %v1050_v63, %v1049_v55  ;;  %v1557_v9 = vsel %vm1480_vm0, %v1013_v61, %v1006_v46  ;;  %v946_v10 = vadd.f32 %v945_v0, %v944_v56  ;;  %v341_v46 = vld [vmem:[%s3704_s14 + $0x4e8] sm:$0xff] }
  0x8b   : > { %v1020_v11 = vadd.f32 %v1019_v1, %v1018_v57  ;;  %v1026_v12 = vrot.slane %v1025_v2, 1  ;;  %v1039_v13 = vadd.f32 %v1038_v3, %v1037_v59  ;;  %v1045_v14 = vrot.slane %v1044_v4, 2  ;;  %v312_v59 = vld [vmem:[%s3704_s14 + $0x400] sm:$0xff] }
  0x8c   : > { %v1033_v15 = vrot.slane %v1032_v7, 1  ;;  %v1052_v16 = vrot.slane %v1051_v8, 2  ;;  %v947_v19 = vrot.slane %v946_v10, 2  ;;  %v951_v20 = vadd.f32 %v331_v6, %v330_v5 }
  0x8d   : > { %v1027_v21 = vadd.f32 %v1026_v12, %v1025_v2  ;;  %v1040_v22 = vrot.slane %v1039_v13, 1  ;;  %v1046_v23 = vadd.f32 %v1045_v14, %v1044_v4  ;;  %v1558_v24 = vsel %vm1482_vm1, %v1020_v11, %v1557_v9 }
  0x8e   : > { %v1034_v25 = vadd.f32 %v1033_v15, %v1032_v7  ;;  %v1053_v26 = vadd.f32 %v1052_v16, %v1051_v8  ;;  %v948_v29 = vadd.f32 %v947_v19, %v946_v10  ;;  %v952_v30 = vrot.slane %v951_v20, 4 }
  0x8f   : > { %v1041_v31 = vadd.f32 %v1040_v22, %v1039_v13  ;;  %v1047_v32 = vrot.slane %v1046_v23, 1  ;;  %v1559_v33 = vsel %vm1484_vm2, %v1027_v21, %v1558_v24  ;;  %v958_v36 = vadd.f32 %v333_v18, %v332_v17  ;;  %v314_v21 = vld [vmem:[%s3704_s14 + $0x410] sm:$0xff]  ;;  %v315_v22 = vld [vmem:[%s3704_s14 + $0x418] sm:$0xff] }
  0x90   : > { %v1054_v37 = vrot.slane %v1053_v26, 1  ;;  %v1560_v38 = vsel %vm1486_vm3, %v1034_v25, %v1559_v33  ;;  %v949_v41 = vrot.slane %v948_v29, 1  ;;  %v953_v42 = vadd.f32 %v952_v30, %v951_v20  ;;  %v316_v33 = vld [vmem:[%s3704_s14 + $0x420] sm:$0xff] }
  0x91   : > { %v1048_v43 = vadd.f32 %v1047_v32, %v1046_v23  ;;  %v1561_v44 = vsel %vm1488_vm4, %v1041_v31, %v1560_v38  ;;  %v959_v47 = vrot.slane %v958_v36, 4  ;;  %v965_v48 = vadd.f32 %v335_v28, %v334_v27 }
  0x92   : > { %v1055_v49 = vadd.f32 %v1054_v37, %v1053_v26  ;;  %v950_v52 = vadd.f32 %v949_v41, %v948_v29  ;;  %v954_v53 = vrot.slane %v953_v42, 2  ;;  %v972_v54 = vadd.f32 %v337_v35, %v336_v34  ;;  %v317_v34 = vld [vmem:[%s3704_s14 + $0x428] sm:$0xff] }
  0x93   : > { %v1562_v55 = vsel %vm1490_vm5, %v1048_v43, %v1561_v44  ;;  %v960_v56 = vadd.f32 %v959_v47, %v958_v36  ;;  %v966_v57 = vrot.slane %v965_v48, 4  ;;  %v979_v58 = vadd.f32 %v339_v40, %v338_v39  ;;  %v318_v43 = vld [vmem:[%s3704_s14 + $0x430] sm:$0xff]  ;;  %v319_v44 = vld [vmem:[%s3704_s14 + $0x438] sm:$0xff] }
  0x94   : > { %v1563_v61 = vsel %vm1492_vm6, %v1055_v49, %v1562_v55  ;;  %v955_v62 = vadd.f32 %v954_v53, %v953_v42  ;;  %v973_v63 = vrot.slane %v972_v54, 4  ;;  %v986_v0 = vadd.f32 %v341_v46, %v340_v45  ;;  %v322_v55 = vld [vmem:[%s3704_s14 + $0x450] sm:$0xff] }
  0x95   : > { %1620 = vmatpush.msra.mxu0 %v1563_v61  ;;  %3049 = vmatpush.msra.mxu1 %v1563_v61  ;;  %v961_v1 = vrot.slane %v960_v56, 2  ;;  %v967_v2 = vadd.f32 %v966_v57, %v965_v48  ;;  %v980_v3 = vrot.slane %v979_v58, 4  ;;  %v993_v4 = vadd.f32 %v343_v51, %v342_v50  ;;  %v320_v50 = vld [vmem:[%s3704_s14 + $0x440] sm:$0xff]  ;;  %v321_v51 = vld [vmem:[%s3704_s14 + $0x448] sm:$0xff] }
  0x96   : > { %3050 = vmatpush.msra.mxu2 %v1563_v61  ;;  %3051 = vmatpush.msra.mxu3 %v1563_v61  ;;  %v956_v5 = vrot.slane %v955_v62, 1  ;;  %v974_v6 = vadd.f32 %v973_v63, %v972_v54  ;;  %v987_v7 = vrot.slane %v986_v0, 4  ;;  %v888_v8 = vadd.f32 %v313_v60, %v312_v59  ;;  %v324_v57 = vld [vmem:[%s3704_s14 + $0x460] sm:$0xff]  ;;  %v326_v63 = vld [vmem:[%s3704_s14 + $0x470] sm:$0xff] }
  0x97   : > { %v962_v9 = vadd.f32 %v961_v1, %v960_v56  ;;  %v968_v10 = vrot.slane %v967_v2, 2  ;;  %v981_v11 = vadd.f32 %v980_v3, %v979_v58  ;;  %v994_v12 = vrot.slane %v993_v4, 4  ;;  %v323_v56 = vld [vmem:[%s3704_s14 + $0x458] sm:$0xff] }
  0x98   : > { %v957_v13 = vadd.f32 %v956_v5, %v955_v62  ;;  %v975_v14 = vrot.slane %v974_v6, 2  ;;  %v988_v15 = vadd.f32 %v987_v7, %v986_v0  ;;  %v889_v16 = vrot.slane %v888_v8, 4  ;;  %v325_v62 = vld [vmem:[%s3704_s14 + $0x468] sm:$0xff]  ;;  %v327_v0 = vld [vmem:[%s3704_s14 + $0x478] sm:$0xff]  ;;  %v296_v7 = vld [vmem:[%s3704_s14 + $0x380] sm:$0xff] }
  0x99   : > { %v963_v17 = vrot.slane %v962_v9, 1  ;;  %v969_v18 = vadd.f32 %v968_v10, %v967_v2  ;;  %v982_v19 = vrot.slane %v981_v11, 2  ;;  %v995_v20 = vadd.f32 %v994_v12, %v993_v4 }
  0x9a   : > { %v976_v23 = vadd.f32 %v975_v14, %v974_v6  ;;  %v989_v24 = vrot.slane %v988_v15, 2  ;;  %v1550_v25 = vsel %vm1480_vm0, %v957_v13, %v950_v52  ;;  %v890_v26 = vadd.f32 %v889_v16, %v888_v8  ;;  %v297_v8 = vld [vmem:[%s3704_s14 + $0x388] sm:$0xff] }
  0x9b   : > { %v964_v27 = vadd.f32 %v963_v17, %v962_v9  ;;  %v970_v28 = vrot.slane %v969_v18, 1  ;;  %v983_v29 = vadd.f32 %v982_v19, %v981_v11  ;;  %v996_v30 = vrot.slane %v995_v20, 2 }
  0x9c   : > { %v977_v31 = vrot.slane %v976_v23, 1  ;;  %v990_v32 = vadd.f32 %v989_v24, %v988_v15  ;;  %v891_v35 = vrot.slane %v890_v26, 2  ;;  %v895_v36 = vadd.f32 %v315_v22, %v314_v21 }
  0x9d   : > { %v971_v37 = vadd.f32 %v970_v28, %v969_v18  ;;  %v984_v38 = vrot.slane %v983_v29, 1  ;;  %v997_v39 = vadd.f32 %v996_v30, %v995_v20  ;;  %v1551_v40 = vsel %vm1482_vm1, %v964_v27, %v1550_v25 }
  0x9e   : > { %v978_v41 = vadd.f32 %v977_v31, %v976_v23  ;;  %v991_v42 = vrot.slane %v990_v32, 1  ;;  %v892_v45 = vadd.f32 %v891_v35, %v890_v26  ;;  %v896_v46 = vrot.slane %v895_v36, 4 }
  0x9f   : > { %v985_v47 = vadd.f32 %v984_v38, %v983_v29  ;;  %v998_v48 = vrot.slane %v997_v39, 1  ;;  %v1552_v49 = vsel %vm1484_vm2, %v971_v37, %v1551_v40  ;;  %v902_v52 = vadd.f32 %v317_v34, %v316_v33  ;;  %v299_v37 = vld [vmem:[%s3704_s14 + $0x398] sm:$0xff] }
  0xa0   : > { %v992_v53 = vadd.f32 %v991_v42, %v990_v32  ;;  %v1553_v54 = vsel %vm1486_vm3, %v978_v41, %v1552_v49  ;;  %v893_v58 = vrot.slane %v892_v45, 1  ;;  %v897_v59 = vadd.f32 %v896_v46, %v895_v36  ;;  %v298_v36 = vld [vmem:[%s3704_s14 + $0x390] sm:$0xff] }
  0xa1   : > { %v999_v60 = vadd.f32 %v998_v48, %v997_v39  ;;  %v1554_v61 = vsel %vm1488_vm4, %v985_v47, %v1553_v54  ;;  %v903_v1 = vrot.slane %v902_v52, 4  ;;  %v909_v2 = vadd.f32 %v319_v44, %v318_v43 }
  0xa2   : > { %v1555_v3 = vsel %vm1490_vm5, %v992_v53, %v1554_v61  ;;  %v894_v4 = vadd.f32 %v893_v58, %v892_v45  ;;  %v898_v5 = vrot.slane %v897_v59, 2  ;;  %v916_v6 = vadd.f32 %v321_v51, %v320_v50  ;;  %v300_v50 = vld [vmem:[%s3704_s14 + $0x3a0] sm:$0xff]  ;;  %v301_v51 = vld [vmem:[%s3704_s14 + $0x3a8] sm:$0xff]  ;;  %v303_v61 = vld [vmem:[%s3704_s14 + $0x3b8] sm:$0xff] }
  0xa3   : > { %v1556_v9 = vsel %vm1492_vm6, %v999_v60, %v1555_v3  ;;  %v904_v10 = vadd.f32 %v903_v1, %v902_v52  ;;  %v910_v11 = vrot.slane %v909_v2, 4  ;;  %v923_v12 = vadd.f32 %v323_v56, %v322_v55  ;;  %v302_v60 = vld [vmem:[%s3704_s14 + $0x3b0] sm:$0xff] }
  0xa4   : > { %1621 = vmatpush.msra.mxu0 %v1556_v9  ;;  %3052 = vmatpush.msra.mxu1 %v1556_v9  ;;  %v899_v13 = vadd.f32 %v898_v5, %v897_v59  ;;  %v917_v14 = vrot.slane %v916_v6, 4  ;;  %v930_v15 = vadd.f32 %v325_v62, %v324_v57  ;;  %v937_v16 = vadd.f32 %v327_v0, %v326_v63  ;;  %v304_v62 = vld [vmem:[%s3704_s14 + $0x3c0] sm:$0xff]  ;;  %v306_v3 = vld [vmem:[%s3704_s14 + $0x3d0] sm:$0xff] }
  0xa5   : > { %3053 = vmatpush.msra.mxu2 %v1556_v9  ;;  %3054 = vmatpush.msra.mxu3 %v1556_v9  ;;  %v905_v17 = vrot.slane %v904_v10, 2  ;;  %v911_v18 = vadd.f32 %v910_v11, %v909_v2  ;;  %v924_v19 = vrot.slane %v923_v12, 4  ;;  %v832_v20 = vadd.f32 %v297_v8, %v296_v7  ;;  %v305_v2 = vld [vmem:[%s3704_s14 + $0x3c8] sm:$0xff] }
  0xa6   : > { %v900_v21 = vrot.slane %v899_v13, 1  ;;  %v918_v22 = vadd.f32 %v917_v14, %v916_v6  ;;  %v931_v23 = vrot.slane %v930_v15, 4  ;;  %v938_v24 = vrot.slane %v937_v16, 4  ;;  %v309_v11 = vld [vmem:[%s3704_s14 + $0x3e8] sm:$0xff]  ;;  %v310_v14 = vld [vmem:[%s3704_s14 + $0x3f0] sm:$0xff] }
  0xa7   : > { %v906_v25 = vadd.f32 %v905_v17, %v904_v10  ;;  %v912_v26 = vrot.slane %v911_v18, 2  ;;  %v925_v27 = vadd.f32 %v924_v19, %v923_v12  ;;  %v833_v28 = vrot.slane %v832_v20, 4  ;;  %v308_v10 = vld [vmem:[%s3704_s14 + $0x3e0] sm:$0xff] }
  0xa8   : > { %v901_v29 = vadd.f32 %v900_v21, %v899_v13  ;;  %v919_v30 = vrot.slane %v918_v22, 2  ;;  %v932_v31 = vadd.f32 %v931_v23, %v930_v15  ;;  %v939_v32 = vadd.f32 %v938_v24, %v937_v16  ;;  %v311_v15 = vld [vmem:[%s3704_s14 + $0x3f8] sm:$0xff]  ;;  %v280_v23 = vld [vmem:[%s3704_s14 + $0x300] sm:$0xff]  ;;  %v281_v24 = vld [vmem:[%s3704_s14 + $0x308] sm:$0xff] }
  0xa9   : > { %v907_v33 = vrot.slane %v906_v25, 1  ;;  %v913_v34 = vadd.f32 %v912_v26, %v911_v18  ;;  %v926_v35 = vrot.slane %v925_v27, 2  ;;  %v834_v38 = vadd.f32 %v833_v28, %v832_v20 }
  0xaa   : > { %v920_v39 = vadd.f32 %v919_v30, %v918_v22  ;;  %v933_v40 = vrot.slane %v932_v31, 2  ;;  %v940_v41 = vrot.slane %v939_v32, 2  ;;  %v1543_v42 = vsel %vm1480_vm0, %v901_v29, %v894_v4  ;;  %v307_v4 = vld [vmem:[%s3704_s14 + $0x3d8] sm:$0xff] }
  0xab   : > { %v908_v43 = vadd.f32 %v907_v33, %v906_v25  ;;  %v914_v44 = vrot.slane %v913_v34, 1  ;;  %v927_v45 = vadd.f32 %v926_v35, %v925_v27  ;;  %v835_v46 = vrot.slane %v834_v38, 2 }
  0xac   : > { %v921_v47 = vrot.slane %v920_v39, 1  ;;  %v934_v48 = vadd.f32 %v933_v40, %v932_v31  ;;  %v941_v49 = vadd.f32 %v940_v41, %v939_v32  ;;  %v839_v52 = vadd.f32 %v299_v37, %v298_v36 }
  0xad   : > { %v915_v53 = vadd.f32 %v914_v44, %v913_v34  ;;  %v928_v54 = vrot.slane %v927_v45, 1  ;;  %v1544_v55 = vsel %vm1482_vm1, %v908_v43, %v1543_v42  ;;  %v836_v56 = vadd.f32 %v835_v46, %v834_v38 }
  0xae   : > { %v922_v57 = vadd.f32 %v921_v47, %v920_v39  ;;  %v935_v58 = vrot.slane %v934_v48, 1  ;;  %v942_v59 = vrot.slane %v941_v49, 1  ;;  %v840_v63 = vrot.slane %v839_v52, 4 }
  0xaf   : > { %v929_v0 = vadd.f32 %v928_v54, %v927_v45  ;;  %v1545_v1 = vsel %vm1484_vm2, %v915_v53, %v1544_v55  ;;  %v837_v5 = vrot.slane %v836_v56, 1  ;;  %v846_v6 = vadd.f32 %v301_v51, %v300_v50  ;;  %v283_v53 = vld [vmem:[%s3704_s14 + $0x318] sm:$0xff] }
  0xb0   : > { %v936_v7 = vadd.f32 %v935_v58, %v934_v48  ;;  %v943_v8 = vadd.f32 %v942_v59, %v941_v49  ;;  %v1546_v9 = vsel %vm1486_vm3, %v922_v57, %v1545_v1  ;;  %v841_v12 = vadd.f32 %v840_v63, %v839_v52  ;;  %v282_v52 = vld [vmem:[%s3704_s14 + $0x310] sm:$0xff] }
  0xb1   : > { %v1547_v13 = vsel %vm1488_vm4, %v929_v0, %v1546_v9  ;;  %v838_v16 = vadd.f32 %v837_v5, %v836_v56  ;;  %v847_v17 = vrot.slane %v846_v6, 4  ;;  %v853_v18 = vadd.f32 %v303_v61, %v302_v60  ;;  %v287_v9 = vld [vmem:[%s3704_s14 + $0x338] sm:$0xff] }
  0xb2   : > { %v1548_v19 = vsel %vm1490_vm5, %v936_v7, %v1547_v13  ;;  %v842_v20 = vrot.slane %v841_v12, 2  ;;  %v860_v21 = vadd.f32 %v305_v2, %v304_v62  ;;  %v867_v22 = vadd.f32 %v307_v4, %v306_v3  ;;  %v284_v2 = vld [vmem:[%s3704_s14 + $0x320] sm:$0xff]  ;;  %v285_v3 = vld [vmem:[%s3704_s14 + $0x328] sm:$0xff] }
  0xb3   : > { %v1549_v25 = vsel %vm1492_vm6, %v943_v8, %v1548_v19  ;;  %v848_v26 = vadd.f32 %v847_v17, %v846_v6  ;;  %v854_v27 = vrot.slane %v853_v18, 4  ;;  %v874_v28 = vadd.f32 %v309_v11, %v308_v10  ;;  %v286_v8 = vld [vmem:[%s3704_s14 + $0x330] sm:$0xff] }
  0xb4   : > { %1622 = vmatpush.msra.mxu0 %v1549_v25  ;;  %3055 = vmatpush.msra.mxu1 %v1549_v25  ;;  %v843_v29 = vadd.f32 %v842_v20, %v841_v12  ;;  %v861_v30 = vrot.slane %v860_v21, 4  ;;  %v868_v31 = vrot.slane %v867_v22, 4  ;;  %v881_v32 = vadd.f32 %v311_v15, %v310_v14  ;;  %v288_v14 = vld [vmem:[%s3704_s14 + $0x340] sm:$0xff]  ;;  %v289_v15 = vld [vmem:[%s3704_s14 + $0x348] sm:$0xff]  ;;  %v290_v19 = vld [vmem:[%s3704_s14 + $0x350] sm:$0xff] }
  0xb5   : > { %3056 = vmatpush.msra.mxu2 %v1549_v25  ;;  %3057 = vmatpush.msra.mxu3 %v1549_v25  ;;  %v849_v33 = vrot.slane %v848_v26, 2  ;;  %v855_v34 = vadd.f32 %v854_v27, %v853_v18  ;;  %v875_v35 = vrot.slane %v874_v28, 4  ;;  %v776_v36 = vadd.f32 %v281_v24, %v280_v23  ;;  %v291_v20 = vld [vmem:[%s3704_s14 + $0x358] sm:$0xff]  ;;  %v292_v25 = vld [vmem:[%s3704_s14 + $0x360] sm:$0xff] }
  0xb6   : > { %v844_v37 = vrot.slane %v843_v29, 1  ;;  %v862_v38 = vadd.f32 %v861_v30, %v860_v21  ;;  %v869_v39 = vadd.f32 %v868_v31, %v867_v22  ;;  %v882_v40 = vrot.slane %v881_v32, 4  ;;  %v294_v30 = vld [vmem:[%s3704_s14 + $0x370] sm:$0xff]  ;;  %v295_v31 = vld [vmem:[%s3704_s14 + $0x378] sm:$0xff] }
  0xb7   : > { %v850_v41 = vadd.f32 %v849_v33, %v848_v26  ;;  %v856_v42 = vrot.slane %v855_v34, 2  ;;  %v876_v43 = vadd.f32 %v875_v35, %v874_v28  ;;  %v777_v44 = vrot.slane %v776_v36, 4  ;;  %v293_v26 = vld [vmem:[%s3704_s14 + $0x368] sm:$0xff] }
  0xb8   : > { %v845_v45 = vadd.f32 %v844_v37, %v843_v29  ;;  %v863_v46 = vrot.slane %v862_v38, 2  ;;  %v870_v47 = vrot.slane %v869_v39, 2  ;;  %v883_v48 = vadd.f32 %v882_v40, %v881_v32  ;;  %v265_v40 = vld [vmem:[%s3704_s14 + $0x288] sm:$0xff] }
  0xb9   : > { %v851_v49 = vrot.slane %v850_v41, 1  ;;  %v857_v50 = vadd.f32 %v856_v42, %v855_v34  ;;  %v877_v51 = vrot.slane %v876_v43, 2  ;;  %v778_v54 = vadd.f32 %v777_v44, %v776_v36 }
  0xba   : > { %v864_v55 = vadd.f32 %v863_v46, %v862_v38  ;;  %v871_v56 = vadd.f32 %v870_v47, %v869_v39  ;;  %v884_v57 = vrot.slane %v883_v48, 2  ;;  %v1536_v58 = vsel %vm1480_vm0, %v845_v45, %v838_v16  ;;  %v264_v39 = vld [vmem:[%s3704_s14 + $0x280] sm:$0xff] }
  0xbb   : > { %v852_v59 = vadd.f32 %v851_v49, %v850_v41  ;;  %v858_v60 = vrot.slane %v857_v50, 1  ;;  %v878_v61 = vadd.f32 %v877_v51, %v876_v43  ;;  %v779_v62 = vrot.slane %v778_v54, 2 }
  0xbc   : > { %v865_v63 = vrot.slane %v864_v55, 1  ;;  %v872_v0 = vrot.slane %v871_v56, 1  ;;  %v885_v1 = vadd.f32 %v884_v57, %v883_v48  ;;  %v783_v4 = vadd.f32 %v283_v53, %v282_v52 }
  0xbd   : > { %v859_v5 = vadd.f32 %v858_v60, %v857_v50  ;;  %v879_v6 = vrot.slane %v878_v61, 1  ;;  %v1537_v7 = vsel %vm1482_vm1, %v852_v59, %v1536_v58  ;;  %v780_v10 = vadd.f32 %v779_v62, %v778_v54 }
  0xbe   : > { %v866_v11 = vadd.f32 %v865_v63, %v864_v55  ;;  %v873_v12 = vadd.f32 %v872_v0, %v871_v56  ;;  %v886_v13 = vrot.slane %v885_v1, 1  ;;  %v784_v16 = vrot.slane %v783_v4, 4 }
  0xbf   : > { %v880_v17 = vadd.f32 %v879_v6, %v878_v61  ;;  %v1538_v18 = vsel %vm1484_vm2, %v859_v5, %v1537_v7  ;;  %v781_v21 = vrot.slane %v780_v10, 1  ;;  %v790_v22 = vadd.f32 %v285_v3, %v284_v2  ;;  %v267_v5 = vld [vmem:[%s3704_s14 + $0x298] sm:$0xff] }
  0xc0   : > { %v887_v23 = vadd.f32 %v886_v13, %v885_v1  ;;  %v1539_v24 = vsel %vm1486_vm3, %v866_v11, %v1538_v18  ;;  %v785_v27 = vadd.f32 %v784_v16, %v783_v4  ;;  %v797_v28 = vadd.f32 %v287_v9, %v286_v8  ;;  %v266_v4 = vld [vmem:[%s3704_s14 + $0x290] sm:$0xff]  ;;  %v268_v18 = vld [vmem:[%s3704_s14 + $0x2a0] sm:$0xff] }
  0xc1   : > { %v1540_v29 = vsel %vm1488_vm4, %v873_v12, %v1539_v24  ;;  %v782_v32 = vadd.f32 %v781_v21, %v780_v10  ;;  %v791_v33 = vrot.slane %v790_v22, 4  ;;  %v804_v34 = vadd.f32 %v289_v15, %v288_v14  ;;  %v270_v24 = vld [vmem:[%s3704_s14 + $0x2b0] sm:$0xff] }
  0xc2   : > { %v1541_v35 = vsel %vm1490_vm5, %v880_v17, %v1540_v29  ;;  %v786_v36 = vrot.slane %v785_v27, 2  ;;  %v798_v37 = vrot.slane %v797_v28, 4  ;;  %v811_v38 = vadd.f32 %v291_v20, %v290_v19  ;;  %v269_v19 = vld [vmem:[%s3704_s14 + $0x2a8] sm:$0xff] }
  0xc3   : > { %v1542_v41 = vsel %vm1492_vm6, %v887_v23, %v1541_v35  ;;  %v792_v42 = vadd.f32 %v791_v33, %v790_v22  ;;  %v805_v43 = vrot.slane %v804_v34, 4  ;;  %v818_v44 = vadd.f32 %v293_v26, %v292_v25  ;;  %v271_v25 = vld [vmem:[%s3704_s14 + $0x2b8] sm:$0xff]  ;;  %v274_v35 = vld [vmem:[%s3704_s14 + $0x2d0] sm:$0xff] }
  0xc4   : > { %1623 = vmatpush.msra.mxu0 %v1542_v41  ;;  %3058 = vmatpush.msra.mxu1 %v1542_v41  ;;  %v787_v45 = vadd.f32 %v786_v36, %v785_v27  ;;  %v799_v46 = vadd.f32 %v798_v37, %v797_v28  ;;  %v812_v47 = vrot.slane %v811_v38, 4  ;;  %v825_v48 = vadd.f32 %v295_v31, %v294_v30  ;;  %v272_v30 = vld [vmem:[%s3704_s14 + $0x2c0] sm:$0xff]  ;;  %v273_v31 = vld [vmem:[%s3704_s14 + $0x2c8] sm:$0xff]  ;;  %v275_v36 = vld [vmem:[%s3704_s14 + $0x2d8] sm:$0xff] }
  0xc5   : > { %3059 = vmatpush.msra.mxu2 %v1542_v41  ;;  %3060 = vmatpush.msra.mxu3 %v1542_v41  ;;  %v793_v49 = vrot.slane %v792_v42, 2  ;;  %v806_v50 = vadd.f32 %v805_v43, %v804_v34  ;;  %v819_v51 = vrot.slane %v818_v44, 4  ;;  %v720_v52 = vadd.f32 %v265_v40, %v264_v39  ;;  %v276_v37 = vld [vmem:[%s3704_s14 + $0x2e0] sm:$0xff]  ;;  %v278_v43 = vld [vmem:[%s3704_s14 + $0x2f0] sm:$0xff] }
  0xc6   : > { %v788_v53 = vrot.slane %v787_v45, 1  ;;  %v800_v54 = vrot.slane %v799_v46, 2  ;;  %v813_v55 = vadd.f32 %v812_v47, %v811_v38  ;;  %v826_v56 = vrot.slane %v825_v48, 4 }
  0xc7   : > { %v794_v57 = vadd.f32 %v793_v49, %v792_v42  ;;  %v807_v58 = vrot.slane %v806_v50, 2  ;;  %v820_v59 = vadd.f32 %v819_v51, %v818_v44  ;;  %v721_v60 = vrot.slane %v720_v52, 4  ;;  %v277_v42 = vld [vmem:[%s3704_s14 + $0x2e8] sm:$0xff]  ;;  %v279_v44 = vld [vmem:[%s3704_s14 + $0x2f8] sm:$0xff]  ;;  %v248_v51 = vld [vmem:[%s3704_s14 + $0x200] sm:$0xff] }
  0xc8   : > { %v789_v61 = vadd.f32 %v788_v53, %v787_v45  ;;  %v801_v62 = vadd.f32 %v800_v54, %v799_v46  ;;  %v814_v63 = vrot.slane %v813_v55, 2  ;;  %v827_v0 = vadd.f32 %v826_v56, %v825_v48 }
  0xc9   : > { %v795_v1 = vrot.slane %v794_v57, 1  ;;  %v808_v2 = vadd.f32 %v807_v58, %v806_v50  ;;  %v821_v3 = vrot.slane %v820_v59, 2  ;;  %v722_v6 = vadd.f32 %v721_v60, %v720_v52  ;;  %v249_v52 = vld [vmem:[%s3704_s14 + $0x208] sm:$0xff] }
  0xca   : > { %v802_v7 = vrot.slane %v801_v62, 1  ;;  %v815_v8 = vadd.f32 %v814_v63, %v813_v55  ;;  %v828_v9 = vrot.slane %v827_v0, 2  ;;  %v1529_v10 = vsel %vm1480_vm0, %v789_v61, %v782_v32 }
  0xcb   : > { %v796_v11 = vadd.f32 %v795_v1, %v794_v57  ;;  %v809_v12 = vrot.slane %v808_v2, 1  ;;  %v822_v13 = vadd.f32 %v821_v3, %v820_v59  ;;  %v723_v14 = vrot.slane %v722_v6, 2 }
  0xcc   : > { %v803_v15 = vadd.f32 %v802_v7, %v801_v62  ;;  %v816_v16 = vrot.slane %v815_v8, 1  ;;  %v829_v17 = vadd.f32 %v828_v9, %v827_v0  ;;  %v727_v20 = vadd.f32 %v267_v5, %v266_v4 }
  0xcd   : > { %v810_v21 = vadd.f32 %v809_v12, %v808_v2  ;;  %v823_v22 = vrot.slane %v822_v13, 1  ;;  %v1530_v23 = vsel %vm1482_vm1, %v796_v11, %v1529_v10  ;;  %v724_v26 = vadd.f32 %v723_v14, %v722_v6 }
  0xce   : > { %v817_v27 = vadd.f32 %v816_v16, %v815_v8  ;;  %v830_v28 = vrot.slane %v829_v17, 1  ;;  %v1531_v29 = vsel %vm1484_vm2, %v803_v15, %v1530_v23  ;;  %v728_v32 = vrot.slane %v727_v20, 4 }
  0xcf   : > { %v824_v33 = vadd.f32 %v823_v22, %v822_v13  ;;  %v1532_v34 = vsel %vm1486_vm3, %v810_v21, %v1531_v29  ;;  %v725_v38 = vrot.slane %v724_v26, 1  ;;  %v734_v39 = vadd.f32 %v269_v19, %v268_v18  ;;  %v250_v21 = vld [vmem:[%s3704_s14 + $0x210] sm:$0xff]  ;;  %v251_v22 = vld [vmem:[%s3704_s14 + $0x218] sm:$0xff] }
  0xd0   : > { %v831_v40 = vadd.f32 %v830_v28, %v829_v17  ;;  %v1533_v41 = vsel %vm1488_vm4, %v817_v27, %v1532_v34  ;;  %v729_v45 = vadd.f32 %v728_v32, %v727_v20  ;;  %v741_v46 = vadd.f32 %v271_v25, %v270_v24  ;;  %v253_v34 = vld [vmem:[%s3704_s14 + $0x228] sm:$0xff] }
  0xd1   : > { %v1534_v47 = vsel %vm1490_vm5, %v824_v33, %v1533_v41  ;;  %v726_v48 = vadd.f32 %v725_v38, %v724_v26  ;;  %v735_v49 = vrot.slane %v734_v39, 4  ;;  %v748_v50 = vadd.f32 %v273_v31, %v272_v30  ;;  %v252_v33 = vld [vmem:[%s3704_s14 + $0x220] sm:$0xff]  ;;  %v254_v41 = vld [vmem:[%s3704_s14 + $0x230] sm:$0xff] }
  0xd2   : > { %v1535_v53 = vsel %vm1492_vm6, %v831_v40, %v1534_v47  ;;  %v730_v54 = vrot.slane %v729_v45, 2  ;;  %v742_v55 = vrot.slane %v741_v46, 4  ;;  %v755_v56 = vadd.f32 %v275_v36, %v274_v35  ;;  %v258_v47 = vld [vmem:[%s3704_s14 + $0x250] sm:$0xff] }
  0xd3   : > { %1624 = vmatpush.msra.mxu0 %v1535_v53  ;;  %3061 = vmatpush.msra.mxu1 %v1535_v53  ;;  %v736_v57 = vadd.f32 %v735_v49, %v734_v39  ;;  %v749_v58 = vrot.slane %v748_v50, 4  ;;  %v762_v59 = vadd.f32 %v277_v42, %v276_v37  ;;  %v769_v60 = vadd.f32 %v279_v44, %v278_v43  ;;  %v255_v42 = vld [vmem:[%s3704_s14 + $0x238] sm:$0xff]  ;;  %v256_v43 = vld [vmem:[%s3704_s14 + $0x240] sm:$0xff] }
  0xd4   : > { %3062 = vmatpush.msra.mxu2 %v1535_v53  ;;  %3063 = vmatpush.msra.mxu3 %v1535_v53  ;;  %v731_v61 = vadd.f32 %v730_v54, %v729_v45  ;;  %v743_v62 = vadd.f32 %v742_v55, %v741_v46  ;;  %v756_v63 = vrot.slane %v755_v56, 4  ;;  %v664_v0 = vadd.f32 %v249_v52, %v248_v51  ;;  %v257_v46 = vld [vmem:[%s3704_s14 + $0x248] sm:$0xff]  ;;  %v260_v54 = vld [vmem:[%s3704_s14 + $0x260] sm:$0xff] }
  0xd5   : > { %v737_v1 = vrot.slane %v736_v57, 2  ;;  %v750_v2 = vadd.f32 %v749_v58, %v748_v50  ;;  %v763_v3 = vrot.slane %v762_v59, 4  ;;  %v770_v4 = vrot.slane %v769_v60, 4  ;;  %v261_v55 = vld [vmem:[%s3704_s14 + $0x268] sm:$0xff]  ;;  %v262_v58 = vld [vmem:[%s3704_s14 + $0x270] sm:$0xff] }
  0xd6   : > { %v732_v5 = vrot.slane %v731_v61, 1  ;;  %v744_v6 = vrot.slane %v743_v62, 2  ;;  %v757_v7 = vadd.f32 %v756_v63, %v755_v56  ;;  %v665_v8 = vrot.slane %v664_v0, 4 }
  0xd7   : > { %v738_v9 = vadd.f32 %v737_v1, %v736_v57  ;;  %v751_v10 = vrot.slane %v750_v2, 2  ;;  %v764_v11 = vadd.f32 %v763_v3, %v762_v59  ;;  %v771_v12 = vadd.f32 %v770_v4, %v769_v60  ;;  %v263_v59 = vld [vmem:[%s3704_s14 + $0x278] sm:$0xff]  ;;  %v232_v3 = vld [vmem:[%s3704_s14 + $0x180] sm:$0xff]  ;;  %v233_v4 = vld [vmem:[%s3704_s14 + $0x188] sm:$0xff] }
  0xd8   : > { %v733_v13 = vadd.f32 %v732_v5, %v731_v61  ;;  %v745_v14 = vadd.f32 %v744_v6, %v743_v62  ;;  %v758_v15 = vrot.slane %v757_v7, 2  ;;  %v666_v16 = vadd.f32 %v665_v8, %v664_v0 }
  0xd9   : > { %v739_v17 = vrot.slane %v738_v9, 1  ;;  %v752_v18 = vadd.f32 %v751_v10, %v750_v2  ;;  %v765_v19 = vrot.slane %v764_v11, 2  ;;  %v772_v20 = vrot.slane %v771_v12, 2 }
  0xda   : > { %v746_v23 = vrot.slane %v745_v14, 1  ;;  %v759_v24 = vadd.f32 %v758_v15, %v757_v7  ;;  %v1522_v25 = vsel %vm1480_vm0, %v733_v13, %v726_v48  ;;  %v667_v26 = vrot.slane %v666_v16, 2  ;;  %v259_v48 = vld [vmem:[%s3704_s14 + $0x258] sm:$0xff] }
  0xdb   : > { %v740_v27 = vadd.f32 %v739_v17, %v738_v9  ;;  %v753_v28 = vrot.slane %v752_v18, 1  ;;  %v766_v29 = vadd.f32 %v765_v19, %v764_v11  ;;  %v773_v30 = vadd.f32 %v772_v20, %v771_v12 }
  0xdc   : > { %v747_v31 = vadd.f32 %v746_v23, %v745_v14  ;;  %v760_v32 = vrot.slane %v759_v24, 1  ;;  %v668_v35 = vadd.f32 %v667_v26, %v666_v16  ;;  %v671_v36 = vadd.f32 %v251_v22, %v250_v21 }
  0xdd   : > { %v754_v37 = vadd.f32 %v753_v28, %v752_v18  ;;  %v767_v38 = vrot.slane %v766_v29, 1  ;;  %v774_v39 = vrot.slane %v773_v30, 1  ;;  %v1523_v40 = vsel %vm1482_vm1, %v740_v27, %v1522_v25 }
  0xde   : > { %v761_v44 = vadd.f32 %v760_v32, %v759_v24  ;;  %v1524_v45 = vsel %vm1484_vm2, %v747_v31, %v1523_v40  ;;  %v669_v49 = vrot.slane %v668_v35, 1  ;;  %v672_v50 = vrot.slane %v671_v36, 4 }
  0xdf   : > { %v768_v51 = vadd.f32 %v767_v38, %v766_v29  ;;  %v775_v52 = vadd.f32 %v774_v39, %v773_v30  ;;  %v1525_v53 = vsel %vm1486_vm3, %v754_v37, %v1524_v45  ;;  %v678_v56 = vadd.f32 %v253_v34, %v252_v33  ;;  %v234_v37 = vld [vmem:[%s3704_s14 + $0x190] sm:$0xff]  ;;  %v235_v38 = vld [vmem:[%s3704_s14 + $0x198] sm:$0xff] }
  0xe0   : > { %v1526_v57 = vsel %vm1488_vm4, %v761_v44, %v1525_v53  ;;  %v670_v60 = vadd.f32 %v669_v49, %v668_v35  ;;  %v673_v61 = vadd.f32 %v672_v50, %v671_v36  ;;  %v685_v62 = vadd.f32 %v255_v42, %v254_v41  ;;  %v237_v50 = vld [vmem:[%s3704_s14 + $0x1a8] sm:$0xff] }
  0xe1   : > { %v1527_v63 = vsel %vm1490_vm5, %v768_v51, %v1526_v57  ;;  %v679_v0 = vrot.slane %v678_v56, 4  ;;  %v692_v1 = vadd.f32 %v257_v46, %v256_v43  ;;  %v699_v2 = vadd.f32 %v259_v48, %v258_v47  ;;  %v236_v47 = vld [vmem:[%s3704_s14 + $0x1a0] sm:$0xff]  ;;  %v238_v51 = vld [vmem:[%s3704_s14 + $0x1b0] sm:$0xff] }
  0xe2   : > { %v1528_v5 = vsel %vm1492_vm6, %v775_v52, %v1527_v63  ;;  %v674_v6 = vrot.slane %v673_v61, 2  ;;  %v686_v7 = vrot.slane %v685_v62, 4  ;;  %v706_v8 = vadd.f32 %v261_v55, %v260_v54  ;;  %v239_v52 = vld [vmem:[%s3704_s14 + $0x1b8] sm:$0xff]  ;;  %v242_v63 = vld [vmem:[%s3704_s14 + $0x1d0] sm:$0xff] }
  0xe3   : > { %1625 = vmatpush.msra.mxu0 %v1528_v5  ;;  %3064 = vmatpush.msra.mxu1 %v1528_v5  ;;  %v680_v9 = vadd.f32 %v679_v0, %v678_v56  ;;  %v693_v10 = vrot.slane %v692_v1, 4  ;;  %v700_v11 = vrot.slane %v699_v2, 4  ;;  %v713_v12 = vadd.f32 %v263_v59, %v262_v58  ;;  %v240_v59 = vld [vmem:[%s3704_s14 + $0x1c0] sm:$0xff]  ;;  %v243_v0 = vld [vmem:[%s3704_s14 + $0x1d8] sm:$0xff] }
  0xe4   : > { %3065 = vmatpush.msra.mxu2 %v1528_v5  ;;  %3066 = vmatpush.msra.mxu3 %v1528_v5  ;;  %v675_v13 = vadd.f32 %v674_v6, %v673_v61  ;;  %v687_v14 = vadd.f32 %v686_v7, %v685_v62  ;;  %v707_v15 = vrot.slane %v706_v8, 4  ;;  %v608_v16 = vadd.f32 %v233_v4, %v232_v3  ;;  %v244_v5 = vld [vmem:[%s3704_s14 + $0x1e0] sm:$0xff]  ;;  %v245_v6 = vld [vmem:[%s3704_s14 + $0x1e8] sm:$0xff] }
  0xe5   : > { %v681_v17 = vrot.slane %v680_v9, 2  ;;  %v694_v18 = vadd.f32 %v693_v10, %v692_v1  ;;  %v701_v19 = vadd.f32 %v700_v11, %v699_v2  ;;  %v714_v20 = vrot.slane %v713_v12, 4  ;;  %v246_v10 = vld [vmem:[%s3704_s14 + $0x1f0] sm:$0xff]  ;;  %v247_v11 = vld [vmem:[%s3704_s14 + $0x1f8] sm:$0xff] }
  0xe6   : > { %v676_v21 = vrot.slane %v675_v13, 1  ;;  %v688_v22 = vrot.slane %v687_v14, 2  ;;  %v708_v23 = vadd.f32 %v707_v15, %v706_v8  ;;  %v609_v24 = vrot.slane %v608_v16, 4 }
  0xe7   : > { %v682_v25 = vadd.f32 %v681_v17, %v680_v9  ;;  %v695_v26 = vrot.slane %v694_v18, 2  ;;  %v702_v27 = vrot.slane %v701_v19, 2  ;;  %v715_v28 = vadd.f32 %v714_v20, %v713_v12  ;;  %v217_v20 = vld [vmem:[%s3704_s14 + $0x108] sm:$0xff] }
  0xe8   : > { %v677_v29 = vadd.f32 %v676_v21, %v675_v13  ;;  %v689_v30 = vadd.f32 %v688_v22, %v687_v14  ;;  %v709_v31 = vrot.slane %v708_v23, 2  ;;  %v610_v32 = vadd.f32 %v609_v24, %v608_v16 }
  0xe9   : > { %v683_v33 = vrot.slane %v682_v25, 1  ;;  %v696_v34 = vadd.f32 %v695_v26, %v694_v18  ;;  %v703_v35 = vadd.f32 %v702_v27, %v701_v19  ;;  %v716_v36 = vrot.slane %v715_v28, 2  ;;  %v216_v19 = vld [vmem:[%s3704_s14 + $0x100] sm:$0xff] }
  0xea   : > { %v690_v39 = vrot.slane %v689_v30, 1  ;;  %v710_v40 = vadd.f32 %v709_v31, %v708_v23  ;;  %v1515_v41 = vsel %vm1480_vm0, %v677_v29, %v670_v60  ;;  %v611_v42 = vrot.slane %v610_v32, 2  ;;  %v241_v60 = vld [vmem:[%s3704_s14 + $0x1c8] sm:$0xff] }
  0xeb   : > { %v684_v43 = vadd.f32 %v683_v33, %v682_v25  ;;  %v697_v44 = vrot.slane %v696_v34, 1  ;;  %v704_v45 = vrot.slane %v703_v35, 1  ;;  %v717_v46 = vadd.f32 %v716_v36, %v715_v28 }
  0xec   : > { %v691_v48 = vadd.f32 %v690_v39, %v689_v30  ;;  %v711_v49 = vrot.slane %v710_v40, 1  ;;  %v612_v53 = vadd.f32 %v611_v42, %v610_v32  ;;  %v615_v54 = vadd.f32 %v235_v38, %v234_v37 }
  0xed   : > { %v698_v55 = vadd.f32 %v697_v44, %v696_v34  ;;  %v705_v56 = vadd.f32 %v704_v45, %v703_v35  ;;  %v718_v57 = vrot.slane %v717_v46, 1  ;;  %v1516_v58 = vsel %vm1482_vm1, %v684_v43, %v1515_v41 }
  0xee   : > { %v712_v61 = vadd.f32 %v711_v49, %v710_v40  ;;  %v1517_v62 = vsel %vm1484_vm2, %v691_v48, %v1516_v58  ;;  %v613_v1 = vrot.slane %v612_v53, 1  ;;  %v616_v2 = vrot.slane %v615_v54, 4  ;;  %v220_v58 = vld [vmem:[%s3704_s14 + $0x120] sm:$0xff] }
  0xef   : > { %v719_v3 = vadd.f32 %v718_v57, %v717_v46  ;;  %v1518_v4 = vsel %vm1486_vm3, %v698_v55, %v1517_v62  ;;  %v622_v7 = vadd.f32 %v237_v50, %v236_v47  ;;  %v629_v8 = vadd.f32 %v239_v52, %v238_v51 }
  0xf0   : > { %v1519_v9 = vsel %vm1488_vm4, %v705_v56, %v1518_v4  ;;  %v614_v12 = vadd.f32 %v613_v1, %v612_v53  ;;  %v617_v13 = vadd.f32 %v616_v2, %v615_v54  ;;  %v636_v14 = vadd.f32 %v241_v60, %v240_v59  ;;  %v218_v53 = vld [vmem:[%s3704_s14 + $0x110] sm:$0xff]  ;;  %v219_v54 = vld [vmem:[%s3704_s14 + $0x118] sm:$0xff]  ;;  %v221_v59 = vld [vmem:[%s3704_s14 + $0x128] sm:$0xff] }
  0xf1   : > { %v1520_v15 = vsel %vm1490_vm5, %v712_v61, %v1519_v9  ;;  %v623_v16 = vrot.slane %v622_v7, 4  ;;  %v630_v17 = vrot.slane %v629_v8, 4  ;;  %v643_v18 = vadd.f32 %v243_v0, %v242_v63  ;;  %v223_v4 = vld [vmem:[%s3704_s14 + $0x138] sm:$0xff] }
  0xf2   : > { %v1521_v21 = vsel %vm1492_vm6, %v719_v3, %v1520_v15  ;;  %v618_v22 = vrot.slane %v617_v13, 2  ;;  %v637_v23 = vrot.slane %v636_v14, 4  ;;  %v650_v24 = vadd.f32 %v245_v6, %v244_v5  ;;  %v222_v3 = vld [vmem:[%s3704_s14 + $0x130] sm:$0xff] }
  0xf3   : > { %1626 = vmatpush.msra.mxu0 %v1521_v21  ;;  %3067 = vmatpush.msra.mxu1 %v1521_v21  ;;  %v624_v25 = vadd.f32 %v623_v16, %v622_v7  ;;  %v631_v26 = vadd.f32 %v630_v17, %v629_v8  ;;  %v644_v27 = vrot.slane %v643_v18, 4  ;;  %v657_v28 = vadd.f32 %v247_v11, %v246_v10  ;;  %v224_v10 = vld [vmem:[%s3704_s14 + $0x140] sm:$0xff]  ;;  %v225_v11 = vld [vmem:[%s3704_s14 + $0x148] sm:$0xff]  ;;  %v226_v15 = vld [vmem:[%s3704_s14 + $0x150] sm:$0xff] }
  0xf4   : > { %3068 = vmatpush.msra.mxu2 %v1521_v21  ;;  %3069 = vmatpush.msra.mxu3 %v1521_v21  ;;  %v619_v29 = vadd.f32 %v618_v22, %v617_v13  ;;  %v638_v30 = vadd.f32 %v637_v23, %v636_v14  ;;  %v651_v31 = vrot.slane %v650_v24, 4  ;;  %v552_v32 = vadd.f32 %v217_v20, %v216_v19  ;;  %v227_v16 = vld [vmem:[%s3704_s14 + $0x158] sm:$0xff]  ;;  %v228_v21 = vld [vmem:[%s3704_s14 + $0x160] sm:$0xff]  ;;  %v229_v22 = vld [vmem:[%s3704_s14 + $0x168] sm:$0xff] }
  0xf5   : > { %v625_v33 = vrot.slane %v624_v25, 2  ;;  %v632_v34 = vrot.slane %v631_v26, 2  ;;  %v645_v35 = vadd.f32 %v644_v27, %v643_v18  ;;  %v658_v36 = vrot.slane %v657_v28, 4  ;;  %v231_v27 = vld [vmem:[%s3704_s14 + $0x178] sm:$0xff] }
  0xf6   : > { %v620_v37 = vrot.slane %v619_v29, 1  ;;  %v639_v38 = vrot.slane %v638_v30, 2  ;;  %v652_v39 = vadd.f32 %v651_v31, %v650_v24  ;;  %v553_v40 = vrot.slane %v552_v32, 4 }
  0xf7   : > { %v626_v41 = vadd.f32 %v625_v33, %v624_v25  ;;  %v633_v42 = vadd.f32 %v632_v34, %v631_v26  ;;  %v646_v43 = vrot.slane %v645_v35, 2  ;;  %v659_v44 = vadd.f32 %v658_v36, %v657_v28  ;;  %v230_v26 = vld [vmem:[%s3704_s14 + $0x170] sm:$0xff]  ;;  %v201_v36 = vld [vmem:[%s3704_s14 + $0x88] sm:$0xff] }
  0xf8   : > { %v621_v45 = vadd.f32 %v620_v37, %v619_v29  ;;  %v640_v46 = vadd.f32 %v639_v38, %v638_v30  ;;  %v653_v47 = vrot.slane %v652_v39, 2  ;;  %v554_v48 = vadd.f32 %v553_v40, %v552_v32 }
  0xf9   : > { %v627_v49 = vrot.slane %v626_v41, 1  ;;  %v634_v50 = vrot.slane %v633_v42, 1  ;;  %v647_v51 = vadd.f32 %v646_v43, %v645_v35  ;;  %v660_v52 = vrot.slane %v659_v44, 2  ;;  %v200_v35 = vld [vmem:[%s3704_s14 + $0x80] sm:$0xff] }
  0xfa   : > { %v641_v55 = vrot.slane %v640_v46, 1  ;;  %v654_v56 = vadd.f32 %v653_v47, %v652_v39  ;;  %v1508_v57 = vsel %vm1480_vm0, %v621_v45, %v614_v12  ;;  %v555_v60 = vrot.slane %v554_v48, 2 }
  0xfb   : > { %v628_v61 = vadd.f32 %v627_v49, %v626_v41  ;;  %v635_v62 = vadd.f32 %v634_v50, %v633_v42  ;;  %v648_v63 = vrot.slane %v647_v51, 1  ;;  %v661_v0 = vadd.f32 %v660_v52, %v659_v44 }
  0xfc   : > { %v642_v1 = vadd.f32 %v641_v55, %v640_v46  ;;  %v655_v2 = vrot.slane %v654_v56, 1  ;;  %v556_v5 = vadd.f32 %v555_v60, %v554_v48  ;;  %v559_v6 = vadd.f32 %v219_v54, %v218_v53 }
  0xfd   : > { %v649_v7 = vadd.f32 %v648_v63, %v647_v51  ;;  %v662_v8 = vrot.slane %v661_v0, 1  ;;  %v1509_v9 = vsel %vm1482_vm1, %v628_v61, %v1508_v57  ;;  %v566_v12 = vadd.f32 %v221_v59, %v220_v58 }
  0xfe   : > { %v656_v13 = vadd.f32 %v655_v2, %v654_v56  ;;  %v1510_v14 = vsel %vm1484_vm2, %v635_v62, %v1509_v9  ;;  %v557_v17 = vrot.slane %v556_v5, 1  ;;  %v560_v18 = vrot.slane %v559_v6, 4 }
  0xff   : > { %v663_v19 = vadd.f32 %v662_v8, %v661_v0  ;;  %v1511_v20 = vsel %vm1486_vm3, %v642_v1, %v1510_v14  ;;  %v567_v23 = vrot.slane %v566_v12, 4  ;;  %v573_v24 = vadd.f32 %v223_v4, %v222_v3 }
 0x100   : > { %v1512_v25 = vsel %vm1488_vm4, %v649_v7, %v1511_v20  ;;  %v558_v28 = vadd.f32 %v557_v17, %v556_v5  ;;  %v561_v29 = vadd.f32 %v560_v18, %v559_v6  ;;  %v580_v30 = vadd.f32 %v225_v11, %v224_v10  ;;  %v202_v5 = vld [vmem:[%s3704_s14 + $0x90] sm:$0xff]  ;;  %v203_v6 = vld [vmem:[%s3704_s14 + $0x98] sm:$0xff]  ;;  %v204_v10 = vld [vmem:[%s3704_s14 + $0xa0] sm:$0xff] }
 0x101   : > { %v1513_v31 = vsel %vm1490_vm5, %v656_v13, %v1512_v25  ;;  %v568_v32 = vadd.f32 %v567_v23, %v566_v12  ;;  %v574_v33 = vrot.slane %v573_v24, 4  ;;  %v587_v34 = vadd.f32 %v227_v16, %v226_v15  ;;  %v205_v11 = vld [vmem:[%s3704_s14 + $0xa8] sm:$0xff]  ;;  %v207_v20 = vld [vmem:[%s3704_s14 + $0xb8] sm:$0xff] }
 0x102   : > { %v1514_v37 = vsel %vm1492_vm6, %v663_v19, %v1513_v31  ;;  %v562_v38 = vrot.slane %v561_v29, 2  ;;  %v581_v39 = vrot.slane %v580_v30, 4  ;;  %v594_v40 = vadd.f32 %v229_v22, %v228_v21  ;;  %v206_v19 = vld [vmem:[%s3704_s14 + $0xb0] sm:$0xff] }
 0x103   : > { %1627 = vmatpush.msra.mxu0 %v1514_v37  ;;  %3070 = vmatpush.msra.mxu1 %v1514_v37  ;;  %v569_v41 = vrot.slane %v568_v32, 2  ;;  %v575_v42 = vadd.f32 %v574_v33, %v573_v24  ;;  %v588_v43 = vrot.slane %v587_v34, 4  ;;  %v601_v44 = vadd.f32 %v231_v27, %v230_v26  ;;  %v208_v26 = vld [vmem:[%s3704_s14 + $0xc0] sm:$0xff]  ;;  %v209_v27 = vld [vmem:[%s3704_s14 + $0xc8] sm:$0xff]  ;;  %v210_v31 = vld [vmem:[%s3704_s14 + $0xd0] sm:$0xff] }
 0x104   : > { %3071 = vmatpush.msra.mxu2 %v1514_v37  ;;  %3072 = vmatpush.msra.mxu3 %v1514_v37  ;;  %v563_v45 = vadd.f32 %v562_v38, %v561_v29  ;;  %v582_v46 = vadd.f32 %v581_v39, %v580_v30  ;;  %v595_v47 = vrot.slane %v594_v40, 4  ;;  %v496_v48 = vadd.f32 %v201_v36, %v200_v35  ;;  %v212_v33 = vld [vmem:[%s3704_s14 + $0xe0] sm:$0xff]  ;;  %v213_v38 = vld [vmem:[%s3704_s14 + $0xe8] sm:$0xff]  ;;  %v214_v39 = vld [vmem:[%s3704_s14 + $0xf0] sm:$0xff] }
 0x105   : > { %v570_v49 = vadd.f32 %v569_v41, %v568_v32  ;;  %v576_v50 = vrot.slane %v575_v42, 2  ;;  %v589_v51 = vadd.f32 %v588_v43, %v587_v34  ;;  %v602_v52 = vrot.slane %v601_v44, 4  ;;  %v211_v32 = vld [vmem:[%s3704_s14 + $0xd8] sm:$0xff] }
 0x106   : > { %v564_v53 = vrot.slane %v563_v45, 1  ;;  %v583_v54 = vrot.slane %v582_v46, 2  ;;  %v596_v55 = vadd.f32 %v595_v47, %v594_v40  ;;  %v497_v56 = vrot.slane %v496_v48, 4  ;;  %v215_v40 = vld [vmem:[%s3704_s14 + $0xf8] sm:$0xff]  ;;  %v4052_v47 = vld [vmem:[%s3704_s14] sm:$0xff] }
 0x107   : > { %v571_v57 = vrot.slane %v570_v49, 1  ;;  %v577_v58 = vadd.f32 %v576_v50, %v575_v42  ;;  %v590_v59 = vrot.slane %v589_v51, 2  ;;  %v603_v60 = vadd.f32 %v602_v52, %v601_v44 }
 0x108   : > { %v565_v61 = vadd.f32 %v564_v53, %v563_v45  ;;  %v584_v62 = vadd.f32 %v583_v54, %v582_v46  ;;  %v597_v63 = vrot.slane %v596_v55, 2  ;;  %v498_v0 = vadd.f32 %v497_v56, %v496_v48  ;;  %v4055_v48 = vld [vmem:[%s3704_s14 + $0x8] sm:$0xff] }
 0x109   : > { %v572_v1 = vadd.f32 %v571_v57, %v570_v49  ;;  %v578_v2 = vrot.slane %v577_v58, 1  ;;  %v591_v3 = vadd.f32 %v590_v59, %v589_v51  ;;  %v604_v4 = vrot.slane %v603_v60, 2 }
 0x10a   : > { %v585_v7 = vrot.slane %v584_v62, 1  ;;  %v598_v8 = vadd.f32 %v597_v63, %v596_v55  ;;  %v1501_v9 = vsel %vm1480_vm0, %v565_v61, %v558_v28  ;;  %v499_v12 = vrot.slane %v498_v0, 2 }
 0x10b   : > { %v579_v13 = vadd.f32 %v578_v2, %v577_v58  ;;  %v592_v14 = vrot.slane %v591_v3, 1  ;;  %v605_v15 = vadd.f32 %v604_v4, %v603_v60  ;;  %v1502_v16 = vsel %vm1482_vm1, %v572_v1, %v1501_v9 }
 0x10c   : > { %v586_v17 = vadd.f32 %v585_v7, %v584_v62  ;;  %v599_v18 = vrot.slane %v598_v8, 1  ;;  %v500_v21 = vadd.f32 %v499_v12, %v498_v0  ;;  %v503_v22 = vadd.f32 %v203_v6, %v202_v5 }
 0x10d   : > { %v593_v23 = vadd.f32 %v592_v14, %v591_v3  ;;  %v606_v24 = vrot.slane %v605_v15, 1  ;;  %v1503_v25 = vsel %vm1484_vm2, %v579_v13, %v1502_v16  ;;  %v510_v28 = vadd.f32 %v205_v11, %v204_v10 }
 0x10e   : > { %v600_v29 = vadd.f32 %v599_v18, %v598_v8  ;;  %v1504_v30 = vsel %vm1486_vm3, %v586_v17, %v1503_v25  ;;  %v501_v34 = vrot.slane %v500_v21, 1  ;;  %v504_v35 = vrot.slane %v503_v22, 4 }
 0x10f   : > { %v607_v36 = vadd.f32 %v606_v24, %v605_v15  ;;  %v1505_v37 = vsel %vm1488_vm4, %v593_v23, %v1504_v30  ;;  %v511_v41 = vrot.slane %v510_v28, 4  ;;  %v517_v42 = vadd.f32 %v207_v20, %v206_v19  ;;  %v4061_v20 = vld [vmem:[%s3704_s14 + $0x10] sm:$0xff] }
 0x110   : > { %v1506_v43 = vsel %vm1490_vm5, %v600_v29, %v1505_v37  ;;  %v502_v44 = vadd.f32 %v501_v34, %v500_v21  ;;  %v505_v45 = vadd.f32 %v504_v35, %v503_v22  ;;  %v524_v46 = vadd.f32 %v209_v27, %v208_v26  ;;  %v4064_v21 = vld [vmem:[%s3704_s14 + $0x18] sm:$0xff]  ;;  %v4068_v27 = vld [vmem:[%s3704_s14 + $0x20] sm:$0xff] }
 0x111   : > { %v1507_v49 = vsel %vm1492_vm6, %v607_v36, %v1506_v43  ;;  %v512_v50 = vadd.f32 %v511_v41, %v510_v28  ;;  %v518_v51 = vrot.slane %v517_v42, 4  ;;  %v531_v52 = vadd.f32 %v211_v32, %v210_v31  ;;  %v4071_v28 = vld [vmem:[%s3704_s14 + $0x28] sm:$0xff]  ;;  %v4075_v36 = vld [vmem:[%s3704_s14 + $0x30] sm:$0xff]  ;;  %v4078_v37 = vld [vmem:[%s3704_s14 + $0x38] sm:$0xff] }
 0x112   : > { %1628 = vmatpush.msra.mxu0 %v1507_v49  ;;  %3073 = vmatpush.msra.mxu1 %v1507_v49  ;;  %v506_v53 = vrot.slane %v505_v45, 2  ;;  %v525_v54 = vrot.slane %v524_v46, 4  ;;  %v538_v55 = vadd.f32 %v213_v38, %v212_v33  ;;  %v545_v56 = vadd.f32 %v215_v40, %v214_v39  ;;  %v4081_v38 = vld [vmem:[%s3704_s14 + $0x40] sm:$0xff]  ;;  %v4090_v43 = vld [vmem:[%s3704_s14 + $0x50] sm:$0xff] }
 0x113   : > { %3074 = vmatpush.msra.mxu2 %v1507_v49  ;;  %3075 = vmatpush.msra.mxu3 %v1507_v49  ;;  %v513_v57 = vrot.slane %v512_v50, 2  ;;  %v519_v58 = vadd.f32 %v518_v51, %v517_v42  ;;  %v532_v59 = vrot.slane %v531_v52, 4  ;;  %v440_v60 = vadd.f32 %v4055_v48, %v4052_v47  ;;  %v4087_v42 = vld [vmem:[%s3704_s14 + $0x48] sm:$0xff]  ;;  %v4099_v51 = vld [vmem:[%s3704_s14 + $0x60] sm:$0xff] }
 0x114   : > { %v507_v61 = vadd.f32 %v506_v53, %v505_v45  ;;  %v526_v62 = vadd.f32 %v525_v54, %v524_v46  ;;  %v539_v63 = vrot.slane %v538_v55, 4  ;;  %v546_v0 = vrot.slane %v545_v56, 4 }
 0x115   : > { %v514_v1 = vadd.f32 %v513_v57, %v512_v50  ;;  %v520_v2 = vrot.slane %v519_v58, 2  ;;  %v533_v3 = vadd.f32 %v532_v59, %v531_v52  ;;  %v441_v4 = vrot.slane %v440_v60, 4  ;;  %v4102_v52 = vld [vmem:[%s3704_s14 + $0x68] sm:$0xff] }
 0x116   : > { %v508_v5 = vrot.slane %v507_v61, 1  ;;  %v527_v6 = vrot.slane %v526_v62, 2  ;;  %v540_v7 = vadd.f32 %v539_v63, %v538_v55  ;;  %v547_v8 = vadd.f32 %v546_v0, %v545_v56  ;;  %v4106_v55 = vld [vmem:[%s3704_s14 + $0x70] sm:$0xff]  ;;  %v4109_v56 = vld [vmem:[%s3704_s14 + $0x78] sm:$0xff] }
 0x117   : > { %v515_v9 = vrot.slane %v514_v1, 1  ;;  %v521_v10 = vadd.f32 %v520_v2, %v519_v58  ;;  %v534_v11 = vrot.slane %v533_v3, 2  ;;  %v442_v12 = vadd.f32 %v441_v4, %v440_v60 }
 0x118   : > { %v509_v13 = vadd.f32 %v508_v5, %v507_v61  ;;  %v528_v14 = vadd.f32 %v527_v6, %v526_v62  ;;  %v541_v15 = vrot.slane %v540_v7, 2  ;;  %v548_v16 = vrot.slane %v547_v8, 2 }
 0x119   : > { %v516_v17 = vadd.f32 %v515_v9, %v514_v1  ;;  %v522_v18 = vrot.slane %v521_v10, 1  ;;  %v535_v19 = vadd.f32 %v534_v11, %v533_v3  ;;  %v443_v22 = vrot.slane %v442_v12, 2 }
 0x11a   : > { %v529_v23 = vrot.slane %v528_v14, 1  ;;  %v542_v24 = vadd.f32 %v541_v15, %v540_v7  ;;  %v549_v25 = vadd.f32 %v548_v16, %v547_v8  ;;  %v1494_v26 = vsel %vm1480_vm0, %v509_v13, %v502_v44  ;;  %v4093_v44 = vld [vmem:[%s3704_s14 + $0x58] sm:$0xff] }
 0x11b   : > { %v523_v29 = vadd.f32 %v522_v18, %v521_v10  ;;  %v536_v30 = vrot.slane %v535_v19, 1  ;;  %v1495_v31 = vsel %vm1482_vm1, %v516_v17, %v1494_v26  ;;  %v444_v32 = vadd.f32 %v443_v22, %v442_v12 }
 0x11c   : > { %v530_v33 = vadd.f32 %v529_v23, %v528_v14  ;;  %v543_v34 = vrot.slane %v542_v24, 1  ;;  %v550_v35 = vrot.slane %v549_v25, 1  ;;  %v447_v39 = vadd.f32 %v4064_v21, %v4061_v20 }
 0x11d   : > { %v537_v40 = vadd.f32 %v536_v30, %v535_v19  ;;  %v1496_v41 = vsel %vm1484_vm2, %v523_v29, %v1495_v31  ;;  %v454_v45 = vadd.f32 %v4071_v28, %v4068_v27  ;;  %v445_v57 = vrot.slane %v444_v32, 1 }
 0x11e   : > { %v544_v46 = vadd.f32 %v543_v34, %v542_v24  ;;  %v551_v49 = vadd.f32 %v550_v35, %v549_v25  ;;  %v1497_v50 = vsel %vm1486_vm3, %v530_v33, %v1496_v41  ;;  %v448_v53 = vrot.slane %v447_v39, 4 }
 0x11f   : > { %v1498_v54 = vsel %vm1488_vm4, %v537_v40, %v1497_v50  ;;  %v455_v58 = vrot.slane %v454_v45, 4  ;;  %v461_v59 = vadd.f32 %v4078_v37, %v4075_v36  ;;  %v468_v62 = vadd.f32 %v4087_v42, %v4081_v38 }
 0x120   : > { %v1499_v60 = vsel %vm1490_vm5, %v544_v46, %v1498_v54  ;;  %v449_v61 = vadd.f32 %v448_v53, %v447_v39  ;;  %v475_v63 = vadd.f32 %v4093_v44, %v4090_v43  ;;  %v482_v3 = vadd.f32 %v4102_v52, %v4099_v51 }
 0x121   : > { %v1500_v0 = vsel %vm1492_vm6, %v551_v49, %v1499_v60  ;;  %v456_v1 = vadd.f32 %v455_v58, %v454_v45  ;;  %v462_v2 = vrot.slane %v461_v59, 4  ;;  %v469_v5 = vrot.slane %v468_v62, 4 }
 0x122   : > { %1629 = vmatpush.msra.mxu0 %v1500_v0  ;;  %3076 = vmatpush.msra.mxu1 %v1500_v0  ;;  %v450_v4 = vrot.slane %v449_v61, 2  ;;  %v476_v6 = vrot.slane %v475_v63, 4  ;;  %v489_v7 = vadd.f32 %v4109_v56, %v4106_v55  ;;  %v483_v10 = vrot.slane %v482_v3, 4 }
 0x123   : > { %3077 = vmatpush.msra.mxu2 %v1500_v0  ;;  %3078 = vmatpush.msra.mxu3 %v1500_v0  ;;  %v457_v8 = vrot.slane %v456_v1, 2  ;;  %v463_v9 = vadd.f32 %v462_v2, %v461_v59  ;;  %v470_v12 = vadd.f32 %v469_v5, %v468_v62  ;;  %v446_v15 = vadd.f32 %v445_v57, %v444_v32  ;;  %v1336_v2 = vld [vmem:[#allocation5] sm:$0xff] }
 0x124   : > { %v451_v11 = vadd.f32 %v450_v4, %v449_v61  ;;  %v477_v13 = vadd.f32 %v476_v6, %v475_v63  ;;  %v490_v14 = vrot.slane %v489_v7, 4  ;;  %v484_v18 = vadd.f32 %v483_v10, %v482_v3  ;;  %v1340_v3 = vld [vmem:[#allocation5 + $0x20] sm:$0xff]  ;;  %v1337_v6 = vld [vmem:[#allocation5 + $0x8] sm:$0xff]  ;;  %v1338_v10 = vld [vmem:[#allocation5 + $0x10] sm:$0xff] }
 0x125   : > { %v458_v16 = vadd.f32 %v457_v8, %v456_v1  ;;  %v464_v17 = vrot.slane %v463_v9, 2  ;;  %v471_v22 = vrot.slane %v470_v12, 2  ;;  %v1344_v4 = vld [vmem:[#allocation5 + $0x40] sm:$0xff]  ;;  %v1345_v8 = vld [vmem:[#allocation5 + $0x48] sm:$0xff] }
 0x126   : > { %v452_v19 = vrot.slane %v451_v11, 1  ;;  %v478_v23 = vrot.slane %v477_v13, 2  ;;  %v491_v24 = vadd.f32 %v490_v14, %v489_v7  ;;  %v485_v29 = vrot.slane %v484_v18, 2  ;;  %v1348_v5 = vld [vmem:[#allocation5 + $0x60] sm:$0xff]  ;;  %v1341_v7 = vld [vmem:[#allocation5 + $0x28] sm:$0xff]  ;;  %v1339_v14 = vld [vmem:[#allocation5 + $0x18] sm:$0xff] }
 0x127   : > { %v459_v25 = vrot.slane %v458_v16, 1  ;;  %v465_v26 = vadd.f32 %v464_v17, %v463_v9  ;;  %v472_v31 = vadd.f32 %v471_v22, %v470_v12  ;;  %v1349_v9 = vld [vmem:[#allocation5 + $0x68] sm:$0xff]  ;;  %v1346_v12 = vld [vmem:[#allocation5 + $0x50] sm:$0xff]  ;;  %v1351_v17 = vld [vmem:[#allocation5 + $0x78] sm:$0xff] }
 0x128   : > { %v453_v30 = vadd.f32 %v452_v19, %v451_v11  ;;  %v479_v33 = vadd.f32 %v478_v23, %v477_v13  ;;  %v492_v34 = vrot.slane %v491_v24, 2  ;;  %v486_v40 = vadd.f32 %v485_v29, %v484_v18  ;;  %v1342_v11 = vld [vmem:[#allocation5 + $0x30] sm:$0xff] }
 0x129   : > { %v460_v35 = vadd.f32 %v459_v25, %v458_v16  ;;  %v466_v39 = vrot.slane %v465_v26, 1  ;;  %v473_v41 = vrot.slane %v472_v31, 1  ;;  %v1350_v13 = vld [vmem:[#allocation5 + $0x70] sm:$0xff]  ;;  %v1347_v16 = vld [vmem:[#allocation5 + $0x58] sm:$0xff] }
 0x12a   : > { %v480_v45 = vrot.slane %v479_v33, 1  ;;  %v493_v32 = vadd.f32 %v492_v34, %v491_v24  ;;  %v1481_v46 = vsel %vm1480_vm0, %v453_v30, %v446_v15  ;;  %v487_v50 = vrot.slane %v486_v40, 1  ;;  %v1343_v15 = vld [vmem:[#allocation5 + $0x38] sm:$0xff] }
 0x12b   : > { %v467_v49 = vadd.f32 %v466_v39, %v465_v26  ;;  %v1483_v53 = vsel %vm1482_vm1, %v460_v35, %v1481_v46  ;;  %v474_v54 = vadd.f32 %v473_v41, %v472_v31 }
 0x12c   : > { %v481_v57 = vadd.f32 %v480_v45, %v479_v33  ;;  %v494_v58 = vrot.slane %v493_v32, 1  ;;  %v488_v59 = vadd.f32 %v487_v50, %v486_v40 }
 0x12d   : > { %v1485_v60 = vsel %vm1484_vm2, %v467_v49, %v1483_v53 }
 0x12e   : > { %v495_v61 = vadd.f32 %v494_v58, %v493_v32  ;;  %v1487_v62 = vsel %vm1486_vm3, %v474_v54, %v1485_v60 }
 0x12f   : > { %v1489_v63 = vsel %vm1488_vm4, %v481_v57, %v1487_v62 }
 0x130   : > { %v1491_v0 = vsel %vm1490_vm5, %v488_v59, %v1489_v63 }
 0x131   : > { %v1493_v1 = vsel %vm1492_vm6, %v495_v61, %v1491_v0 }
 0x132   : > { %1630 = vmatpush.msra.mxu0 %v1493_v1  ;;  %3079 = vmatpush.msra.mxu1 %v1493_v1 }
 0x133   : > { %3080 = vmatpush.msra.mxu2 %v1493_v1  ;;  %3081 = vmatpush.msra.mxu3 %v1493_v1 }
 0x134   : > { %1631 = vmatmul.f32.vlgmr.msra.gmra.mxu0 %v1336_v2  ;;  %1643 = vmatmul.f32.vlgmr.msra.gmra.mxu1 %v1340_v3 }
 0x135   : > { %1655 = vmatmul.f32.vlgmr.msra.gmra.mxu2 %v1344_v4  ;;  %1667 = vmatmul.f32.vlgmr.msra.gmra.mxu3 %v1348_v5 }
 0x13c   : > { %1634 = vmatmul.f32.gmra.mxu0 %v1337_v6  ;;  %1646 = vmatmul.f32.gmra.mxu1 %v1341_v7 }
 0x13d   : > { %1658 = vmatmul.f32.gmra.mxu2 %v1345_v8  ;;  %1670 = vmatmul.f32.gmra.mxu3 %v1349_v9 }
 0x144   : > { %1637 = vmatmul.f32.gmra.mxu0 %v1338_v10  ;;  %1649 = vmatmul.f32.gmra.mxu1 %v1342_v11 }
 0x145   : > { %1661 = vmatmul.f32.gmra.mxu2 %v1346_v12  ;;  %1673 = vmatmul.f32.gmra.mxu3 %v1350_v13 }
 0x14c   : > { %1640 = vmatmul.f32.gmra.mxu0 %v1339_v14  ;;  %1652 = vmatmul.f32.gmra.mxu1 %v1343_v15 }
 0x14d   : > { %1664 = vmatmul.f32.gmra.mxu2 %v1347_v16  ;;  %1676 = vmatmul.f32.gmra.mxu3 %v1351_v17 }
 0x1b1   : > { %v1632_v18 = vpop.f32.mrf.mxu0  ;;  %v1644_v19 = vpop.f32.mrf.mxu1 }
 0x1b2   : > { %v1680_v22 = vrot.slane %v1632_v18, 4  ;;  %v1704_v23 = vrot.slane %v1644_v19, 4 }
 0x1b4   : > { %v1681_v24 = vmax.f32 %v1632_v18, %v1680_v22  ;;  %v1705_v25 = vmax.f32 %v1644_v19, %v1704_v23 }
 0x1b6   : > { %v1682_v26 = vrot.slane %v1681_v24, 2  ;;  %v1706_v29 = vrot.slane %v1705_v25, 2 }
 0x1b8   : > { %v1683_v30 = vmax.f32 %v1681_v24, %v1682_v26  ;;  %v1707_v31 = vmax.f32 %v1705_v25, %v1706_v29  ;;  %v1656_v33 = vpop.f32.mrf.mxu2  ;;  %v1668_v53 = vpop.f32.mrf.mxu3 }
 0x1b9   : > { %v1728_v34 = vrot.slane %v1656_v33, 4  ;;  %v1752_v58 = vrot.slane %v1668_v53, 4 }
 0x1ba   : > { %v1684_v35 = vrot.slane %v1683_v30, 1  ;;  %v1708_v39 = vrot.slane %v1707_v31, 1 }
 0x1bb   : > { %v1729_v40 = vmax.f32 %v1656_v33, %v1728_v34  ;;  %v1753_v60 = vmax.f32 %v1668_v53, %v1752_v58 }
 0x1bc   : > { %v1685_v41 = vmax.f32 %v1683_v30, %v1684_v35  ;;  %v1709_v45 = vmax.f32 %v1707_v31, %v1708_v39 }
 0x1bd   : > { %v1730_v32 = vrot.slane %v1729_v40, 2  ;;  %v1754_v62 = vrot.slane %v1753_v60, 2 }
 0x1be   : > { %v1776_v46 = vsub.f32 %v1632_v18, %v1685_v41  ;;  %v1780_v49 = vsub.f32 %v1644_v19, %v1709_v45  ;;  %v1635_v19 = vpop.f32.mrf.mxu0 }
 0x1bf   : > { %v1731_v50 = vmax.f32 %v1729_v40, %v1730_v32  ;;  %v1755_v0 = vmax.f32 %v1753_v60, %v1754_v62  ;;  %v1686_v24 = vrot.slane %v1635_v19, 4 }
 0x1c0   : > { %v1792_v54 = vmul.f32 1.442695, %v1776_v46  ;;  %v1800_v57 = vmul.f32 1.442695, %v1780_v49 }
 0x1c1   : > { %v1732_v59 = vrot.slane %v1731_v50, 1  ;;  %v1756_v3 = vrot.slane %v1755_v0, 1  ;;  %v1687_v30 = vmax.f32 %v1635_v19, %v1686_v24 }
 0x1c2   : > { %3143 = vpow2.f32 %v1792_v54 }
 0x1c3   : > { %3145 = vpow2.f32 %v1800_v57  ;;  %v1733_v61 = vmax.f32 %v1731_v50, %v1732_v59  ;;  %v1757_v7 = vmax.f32 %v1755_v0, %v1756_v3 }
 0x1c5   : > { %v1784_v63 = vsub.f32 %v1656_v33, %v1733_v61  ;;  %v1788_v10 = vsub.f32 %v1668_v53, %v1757_v7  ;;  %v1688_v33 = vrot.slane %v1687_v30, 2 }
 0x1c7   : > { %v1808_v1 = vmul.f32 1.442695, %v1784_v63  ;;  %v1816_v15 = vmul.f32 1.442695, %v1788_v10  ;;  %v1689_v32 = vmax.f32 %v1687_v30, %v1688_v33 }
 0x1c8   : > { %v3144_v2 = vpop.eup %3143 }
 0x1c9   : > { %v3146_v4 = vpop.eup %3145  ;;  %v1824_v5 = vrot.slane %v3144_v2, 4  ;;  %3147 = vpow2.f32 %v1808_v1  ;;  %v1690_v57 = vrot.slane %v1689_v32, 1 }
 0x1ca   : > { %v1848_v6 = vrot.slane %v3146_v4, 4  ;;  %3149 = vpow2.f32 %v1816_v15 }
 0x1cb   : > { %v1825_v8 = vadd.f32 %v3144_v2, %v1824_v5  ;;  %v1691_v62 = vmax.f32 %v1689_v32, %v1690_v57  ;;  %v3207_v57 = vld [vmem:[%s3704_s14 + $0x200] sm:$0xff] }
 0x1cc   : > { %v1849_v9 = vadd.f32 %v3146_v4, %v1848_v6 }
 0x1cd   : > { %v1826_v11 = vrot.slane %v1825_v8, 2  ;;  %v1777_v10 = vsub.f32 %v1635_v19, %v1691_v62 }
 0x1ce   : > { %v1850_v12 = vrot.slane %v1849_v9, 2 }
 0x1cf   : > { %v4130_v13 = vpop.eup %3147  ;;  %v1827_v14 = vadd.f32 %v1826_v11, %v1825_v8 }
 0x1d0   : > { %v1851_v16 = vadd.f32 %v1850_v12, %v1849_v9  ;;  %v1872_v17 = vrot.slane %v4130_v13, 4  ;;  %v4134_v34 = vpop.eup %3149 }
 0x1d1   : > { %v1828_v18 = vrot.slane %v1827_v14, 1  ;;  %v1896_v45 = vrot.slane %v4134_v34, 4 }
 0x1d2   : > { %v1852_v22 = vrot.slane %v1851_v16, 1  ;;  %v1873_v23 = vadd.f32 %v4130_v13, %v1872_v17 }
 0x1d3   : > { %v1829_v25 = vadd.f32 %v1828_v18, %v1827_v14  ;;  %v1897_v54 = vadd.f32 %v4134_v34, %v1896_v45 }
 0x1d4   : > { %v1853_v26 = vadd.f32 %v1852_v22, %v1851_v16  ;;  %v1874_v29 = vrot.slane %v1873_v23, 2 }
 0x1d5   : > { %3151 = vrcp.f32 %v1829_v25  ;;  %v1898_v61 = vrot.slane %v1897_v54, 2 }
 0x1d6   : > { %3153 = vrcp.f32 %v1853_v26  ;;  %v1875_v31 = vadd.f32 %v1874_v29, %v1873_v23 }
 0x1d7   : > { %v1899_v9 = vadd.f32 %v1898_v61, %v1897_v54 }
 0x1d8   : > { %v1876_v39 = vrot.slane %v1875_v31, 1 }
 0x1da   : > { %v1877_v50 = vadd.f32 %v1876_v39, %v1875_v31 }
 0x1db   : > { %v3152_v35 = vpop.eup %3151 }
 0x1dc   : > { %v3154_v40 = vpop.eup %3153  ;;  %v1936_v41 = vmul.f32 %v3152_v35, %v1829_v25  ;;  %3155 = vrcp.f32 %v1877_v50 }
 0x1dd   : > { %v1940_v46 = vmul.f32 %v3154_v40, %v1853_v26 }
 0x1de   : > { %v1952_v49 = vsub.f32 2.0, %v1936_v41 }
 0x1df   : > { %v1956_v58 = vsub.f32 2.0, %v1940_v46 }
 0x1e0   : > { %v1968_v53 = vmul.f32 %v3152_v35, %v1952_v49 }
 0x1e1   : > { %v1972_v63 = vmul.f32 %v3154_v40, %v1956_v58 }
 0x1e2   : > { %v1984_v59 = vmul.f32 %v3144_v2, %v1968_v53  ;;  %v3156_v11 = vpop.eup %3155 }
 0x1e3   : > { %v1988_v15 = vmul.f32 %v3146_v4, %v1972_v63  ;;  %v1794_v4 = vmul.f32 1.442695, %v1777_v10  ;;  %v3211_v10 = vld [vmem:[%s3704_s14 + $0x220] sm:$0xff] }
 0x1e4   : > { %v2000_v60 = vmul.f32 16.0, %v1984_v59 }
 0x1e5   : > { %v4154_v26 = vmul.f32 16.0, %v1988_v15  ;;  %3157 = vpow2.f32 %v1794_v4 }
 0x1e6   : > { %v2032_v0 = vrot.slane %v2000_v60, 1  ;;  %v2033_v1 = vrot.slane %v2000_v60, 2  ;;  %v2034_v3 = vrot.slane %v2000_v60, 3  ;;  %v2035_v5 = vrot.slane %v2000_v60, 4 }
 0x1e7   : > { %v2144_v6 = vperm.slane %v2000_v60, 0  ;;  %v2036_v12 = vrot.slane %v2000_v60, 5  ;;  %v2037_v22 = vrot.slane %v2000_v60, 6  ;;  %v2038_v19 = vrot.slane %v2000_v60, 7  ;;  %v3208_v60 = vld [vmem:[%s3704_s14 + $0x208] sm:$0xff] }
 0x1e8   : > { %v2145_v7 = vperm.slane %v2032_v0, 0  ;;  %v2146_v8 = vperm.slane %v2033_v1, 0  ;;  %v2147_v14 = vperm.slane %v2034_v3, 0  ;;  %v2148_v23 = vperm.slane %v2035_v5, 0  ;;  %v3210_v5 = vld [vmem:[%s3704_s14 + $0x218] sm:$0xff] }
 0x1e9   : > { %v2400_v2 = vmul.f32 %v2144_v6, %v4052_v47  ;;  %v2401_v16 = vmul.f32 %v2144_v6, %v4055_v48  ;;  %v4148_v47 = vpop.f32.mrf.mxu1  ;;  %v2061_v45 = vrot.slane %v4154_v26, 2  ;;  %v2176_v32 = vperm.slane %v4154_v26, 0 }
 0x1ea   : > { %v2402_v17 = vmul.f32 %v2145_v7, %v4061_v20  ;;  %v2403_v18 = vmul.f32 %v2145_v7, %v4064_v21  ;;  %v2404_v24 = vmul.f32 %v2146_v8, %v4068_v27  ;;  %v2405_v48 = vmul.f32 %v2146_v8, %v4071_v28 }
 0x1eb   : > { %2656 = vst [vmem:[%s4145_s15] sm:$0xff] %v2400_v2  ;;  %v1944_v20 = vmul.f32 %v3156_v11, %v1877_v50  ;;  %v1900_v21 = vrot.slane %v1899_v9, 1  ;;  %v2149_v27 = vperm.slane %v2036_v12, 0  ;;  %v2406_v25 = vmul.f32 %v2147_v14, %v4075_v36  ;;  %v4178_v50 = vpop.eup %3157  ;;  %v4197_v12 = vpop.f32.mrf.mxu2  ;;  %v3212_v2 = vld [vmem:[%s3704_s14 + $0x228] sm:$0xff] }
 0x1ec   : > { %2657 = vst [vmem:[%s4145_s15 + $0x8] sm:$0xff] %v2401_v16  ;;  %v2407_v29 = vmul.f32 %v2147_v14, %v4078_v37  ;;  %v1710_v30 = vrot.slane %v4148_v47, 4  ;;  %v2150_v28 = vperm.slane %v2037_v22, 0  ;;  %v2408_v31 = vmul.f32 %v2148_v23, %v4081_v38  ;;  %v3213_v16 = vld [vmem:[%s3704_s14 + $0x230] sm:$0xff] }
 0x1ed   : > { %2658 = vst [vmem:[%s4145_s15 + $0x10] sm:$0xff] %v2402_v17  ;;  %v2409_v33 = vmul.f32 %v2148_v23, %v4087_v42  ;;  %v1901_v35 = vadd.f32 %v1900_v21, %v1899_v9  ;;  %v2151_v36 = vperm.slane %v2038_v19, 0  ;;  %v2410_v39 = vmul.f32 %v2149_v27, %v4090_v43  ;;  %v3215_v19 = vld [vmem:[%s3704_s14 + $0x240] sm:$0xff] }
 0x1ee   : > { %2659 = vst [vmem:[%s4145_s15 + $0x18] sm:$0xff] %v2403_v18  ;;  %v2060_v37 = vrot.slane %v4154_v26, 1  ;;  %v1960_v40 = vsub.f32 2.0, %v1944_v20  ;;  %v2411_v41 = vmul.f32 %v2149_v27, %v4093_v44  ;;  %v1711_v38 = vmax.f32 %v4148_v47, %v1710_v30  ;;  %v3217_v30 = vld [vmem:[%s3704_s14 + $0x250] sm:$0xff] }
 0x1ef   : > { %2660 = vst [vmem:[%s4145_s15 + $0x20] sm:$0xff] %v2404_v24  ;;  %v2412_v42 = vmul.f32 %v2150_v28, %v4099_v51  ;;  %v2413_v43 = vmul.f32 %v2150_v28, %v4102_v52  ;;  %3159 = vrcp.f32 %v1901_v35  ;;  %v2414_v44 = vmul.f32 %v2151_v36, %v4106_v55  ;;  %v3214_v24 = vld [vmem:[%s3704_s14 + $0x238] sm:$0xff] }
 0x1f0   : > { %2661 = vst [vmem:[%s4145_s15 + $0x28] sm:$0xff] %v2405_v48  ;;  %v2062_v46 = vrot.slane %v4154_v26, 3  ;;  %v2177_v51 = vperm.slane %v2060_v37, 0  ;;  %v1976_v49 = vmul.f32 %v3156_v11, %v1960_v40  ;;  %v2415_v53 = vmul.f32 %v2151_v36, %v4109_v56  ;;  %v3209_v56 = vld [vmem:[%s3704_s14 + $0x210] sm:$0xff]  ;;  %v3218_v36 = vld [vmem:[%s3704_s14 + $0x258] sm:$0xff] }
 0x1f1   : > { %2662 = vst [vmem:[%s4145_s15 + $0x30] sm:$0xff] %v2406_v25  ;;  %v1712_v54 = vrot.slane %v1711_v38, 2  ;;  %v2063_v52 = vrot.slane %v4154_v26, 4  ;;  %v2178_v55 = vperm.slane %v2061_v45, 0  ;;  %v2464_v58 = vmul.f32 %v3207_v57, %v2176_v32 }
 0x1f2   : > { %2663 = vst [vmem:[%s4145_s15 + $0x38] sm:$0xff] %v2407_v29  ;;  %v2064_v59 = vrot.slane %v4154_v26, 5  ;;  %v2465_v61 = vmul.f32 %v3208_v60, %v2176_v32  ;;  %v2179_v62 = vperm.slane %v2062_v46, 0  ;;  %v2466_v63 = vmul.f32 %v3209_v56, %v2177_v51  ;;  %v4224_v32 = vpop.f32.mrf.mxu3  ;;  %v3221_v46 = vld [vmem:[%s3704_s14 + $0x270] sm:$0xff]  ;;  %v3223_v56 = vld [vmem:[%s3704_s14 + $0x400] sm:$0xff] }
 0x1f3   : > { %2664 = vst [vmem:[%s4145_s15 + $0x40] sm:$0xff] %v2408_v31  ;;  %v1992_v0 = vmul.f32 %v4130_v13, %v1976_v49  ;;  %v1830_v1 = vrot.slane %v4178_v50, 4  ;;  %v2467_v6 = vmul.f32 %v3210_v5, %v2177_v51  ;;  %v1713_v7 = vmax.f32 %v1711_v38, %v1712_v54  ;;  %v3225_v5 = vld [vmem:[%s3704_s14 + $0x410] sm:$0xff] }
 0x1f4   : > { %2665 = vst [vmem:[%s4145_s15 + $0x48] sm:$0xff] %v2409_v33  ;;  %v2065_v8 = vrot.slane %v4154_v26, 6  ;;  %v2180_v9 = vperm.slane %v2063_v52, 0  ;;  %v2468_v11 = vmul.f32 %v3211_v10, %v2178_v55  ;;  %v2066_v13 = vrot.slane %v4154_v26, 7  ;;  %v3216_v26 = vld [vmem:[%s3704_s14 + $0x248] sm:$0xff] }
 0x1f5   : > { %2666 = vst [vmem:[%s4145_s15 + $0x50] sm:$0xff] %v2410_v39  ;;  %v3160_v3 = vpop.eup %3159  ;;  %v2181_v14 = vperm.slane %v2064_v59, 0  ;;  %v2469_v15 = vmul.f32 %v3212_v2, %v2178_v55  ;;  %v2470_v17 = vmul.f32 %v3213_v16, %v2179_v62  ;;  %v4204_v18 = vmul.f32 16.0, %v1992_v0  ;;  %v3222_v55 = vld [vmem:[%s3704_s14 + $0x278] sm:$0xff]  ;;  %v3227_v16 = vld [vmem:[%s3704_s14 + $0x420] sm:$0xff] }
 0x1f6   : > { %2667 = vst [vmem:[%s4145_s15 + $0x58] sm:$0xff] %v2411_v41  ;;  %v1948_v22 = vmul.f32 %v3160_v3, %v1901_v35  ;;  %v1831_v23 = vadd.f32 %v4178_v50, %v1830_v1  ;;  %v2471_v48 = vmul.f32 %v3214_v24, %v2179_v62  ;;  %v1714_v20 = vrot.slane %v1713_v7, 1  ;;  %v3219_v41 = vld [vmem:[%s3704_s14 + $0x260] sm:$0xff]  ;;  %v3224_v1 = vld [vmem:[%s3704_s14 + $0x408] sm:$0xff] }
 0x1f7   : > { %2668 = vst [vmem:[%s4145_s15 + $0x60] sm:$0xff] %v2412_v42  ;;  %v1734_v21 = vrot.slane %v4197_v12, 4  ;;  %v2182_v4 = vperm.slane %v2065_v8, 0  ;;  %v2472_v27 = vmul.f32 %v3215_v19, %v2180_v9  ;;  %v2183_v25 = vperm.slane %v2066_v13, 0  ;;  %v3230_v19 = vld [vmem:[%s3704_s14 + $0x438] sm:$0xff] }
 0x1f8   : > { %2669 = vst [vmem:[%s4145_s15 + $0x68] sm:$0xff] %v2413_v43  ;;  %v2473_v29 = vmul.f32 %v3216_v26, %v2180_v9  ;;  %v2474_v28 = vmul.f32 %v3217_v30, %v2181_v14  ;;  %v2088_v31 = vrot.slane %v4204_v18, 1  ;;  %v1964_v33 = vsub.f32 2.0, %v1948_v22  ;;  %v3220_v43 = vld [vmem:[%s3704_s14 + $0x268] sm:$0xff]  ;;  %v3226_v9 = vld [vmem:[%s3704_s14 + $0x418] sm:$0xff] }
 0x1f9   : > { %2670 = vst [vmem:[%s4145_s15 + $0x70] sm:$0xff] %v2414_v44  ;;  %v1832_v35 = vrot.slane %v1831_v23, 2  ;;  %v2475_v39 = vmul.f32 %v3218_v36, %v2181_v14  ;;  %v1715_v37 = vmax.f32 %v1713_v7, %v1714_v20  ;;  %v1735_v40 = vmax.f32 %v4197_v12, %v1734_v21  ;;  %v3228_v22 = vld [vmem:[%s3704_s14 + $0x428] sm:$0xff] }
 0x1fa   : > { %2671 = vst [vmem:[%s4145_s15 + $0x78] sm:$0xff] %v2415_v53  ;;  %v2476_v38 = vmul.f32 %v3219_v41, %v2182_v4  ;;  %v2089_v42 = vrot.slane %v4204_v18, 2  ;;  %v2208_v45 = vperm.slane %v4204_v18, 0  ;;  %v2477_v44 = vmul.f32 %v3220_v43, %v2182_v4  ;;  %v3234_v41 = vld [vmem:[%s3704_s14 + $0x458] sm:$0xff] }
 0x1fb   : > { %2720 = vst [vmem:[%s4145_s15 + $0x200] sm:$0xff] %v2464_v58  ;;  %v2478_v51 = vmul.f32 %v3221_v46, %v2183_v25  ;;  %v2090_v49 = vrot.slane %v4204_v18, 3  ;;  %v2209_v53 = vperm.slane %v2088_v31, 0  ;;  %v1980_v54 = vmul.f32 %v3160_v3, %v1964_v33  ;;  %v3232_v31 = vld [vmem:[%s3704_s14 + $0x448] sm:$0xff] }
 0x1fc   : > { %2721 = vst [vmem:[%s4145_s15 + $0x208] sm:$0xff] %v2465_v61  ;;  %v1833_v52 = vadd.f32 %v1832_v35, %v1831_v23  ;;  %v2479_v57 = vmul.f32 %v3222_v55, %v2183_v25  ;;  %v1781_v58 = vsub.f32 %v4148_v47, %v1715_v37  ;;  %v1736_v59 = vrot.slane %v1735_v40, 2  ;;  %v3237_v55 = vld [vmem:[%s3704_s14 + $0x470] sm:$0xff] }
 0x1fd   : > { %2722 = vst [vmem:[%s4145_s15 + $0x210] sm:$0xff] %v2466_v63  ;;  %v1758_v60 = vrot.slane %v4224_v32, 4  ;;  %v2091_v61 = vrot.slane %v4204_v18, 4  ;;  %v2210_v62 = vperm.slane %v2089_v42, 0  ;;  %v2528_v63 = vmul.f32 %v3223_v56, %v2208_v45 }
 0x1fe   : > { %2723 = vst [vmem:[%s4145_s15 + $0x218] sm:$0xff] %v2467_v6  ;;  %v2092_v0 = vrot.slane %v4204_v18, 5  ;;  %v2529_v3 = vmul.f32 %v3224_v1, %v2208_v45  ;;  %v2211_v47 = vperm.slane %v2090_v49, 0  ;;  %v2530_v6 = vmul.f32 %v3225_v5, %v2209_v53 }
 0x1ff   : > { %2724 = vst [vmem:[%s4145_s15 + $0x220] sm:$0xff] %v2468_v11  ;;  %v1996_v7 = vmul.f32 %v4134_v34, %v1980_v54  ;;  %v1834_v8 = vrot.slane %v1833_v52, 1  ;;  %v2531_v10 = vmul.f32 %v3226_v9, %v2209_v53  ;;  %v1802_v11 = vmul.f32 1.442695, %v1781_v58  ;;  %v4274_v54 = vpop.f32.mrf.mxu0 }
 0x200   : > { %2725 = vst [vmem:[%s4145_s15 + $0x228] sm:$0xff] %v2469_v15  ;;  %v1737_v13 = vmax.f32 %v1735_v40, %v1736_v59  ;;  %v1759_v14 = vmax.f32 %v4224_v32, %v1758_v60  ;;  %v2093_v2 = vrot.slane %v4204_v18, 6  ;;  %v2212_v15 = vperm.slane %v2091_v61, 0  ;;  %v3238_v61 = vld [vmem:[%s3704_s14 + $0x478] sm:$0xff] }
 0x201   : > { %2726 = vst [vmem:[%s4145_s15 + $0x230] sm:$0xff] %v2470_v17  ;;  %v2532_v17 = vmul.f32 %v3227_v16, %v2210_v62  ;;  %v2094_v34 = vrot.slane %v4204_v18, 7  ;;  %v2533_v23 = vmul.f32 %v3228_v22, %v2210_v62  ;;  %v2213_v24 = vperm.slane %v2092_v0, 0  ;;  %v3241_v16 = vld [vmem:[%s3704_s14 + $0x610] sm:$0xff] }
 0x202   : > { %2727 = vst [vmem:[%s4145_s15 + $0x238] sm:$0xff] %v2471_v48  ;;  %v3229_v48 = vld [vmem:[%s3704_s14 + $0x430] sm:$0xff]  ;;  %v4255_v21 = vmul.f32 16.0, %v1996_v7  ;;  %v1835_v4 = vadd.f32 %v1834_v8, %v1833_v52  ;;  %3161 = vpow2.f32 %v1802_v11  ;;  %v1738_v18 = vrot.slane %v1737_v13, 1 }
 0x203   : > { %2728 = vst [vmem:[%s4145_s15 + $0x240] sm:$0xff] %v2472_v27  ;;  %v2534_v20 = vmul.f32 %v3229_v48, %v2211_v47  ;;  %v2535_v27 = vmul.f32 %v3230_v19, %v2211_v47  ;;  %v1760_v25 = vrot.slane %v1759_v14, 2  ;;  %v2214_v26 = vperm.slane %v2093_v2, 0 }
 0x204   : > { %2729 = vst [vmem:[%s4145_s15 + $0x248] sm:$0xff] %v2473_v29  ;;  %v3231_v29 = vld [vmem:[%s3704_s14 + $0x440] sm:$0xff]  ;;  %3163 = vrcp.f32 %v1835_v4  ;;  %v2537_v33 = vmul.f32 %v3232_v31, %v2212_v15  ;;  %v1739_v35 = vmax.f32 %v1737_v13, %v1738_v18  ;;  %v2116_v40 = vrot.slane %v4255_v21, 1  ;;  %v3244_v18 = vld [vmem:[%s3704_s14 + $0x628] sm:$0xff] }
 0x205   : > { %2730 = vst [vmem:[%s4145_s15 + $0x250] sm:$0xff] %v2474_v28  ;;  %v2536_v30 = vmul.f32 %v3231_v29, %v2212_v15  ;;  %v2215_v28 = vperm.slane %v2094_v34, 0  ;;  %v1761_v36 = vmax.f32 %v1759_v14, %v1760_v25  ;;  %v2117_v42 = vrot.slane %v4255_v21, 2 }
 0x206   : > { %2731 = vst [vmem:[%s4145_s15 + $0x258] sm:$0xff] %v2475_v39  ;;  %v3233_v39 = vld [vmem:[%s3704_s14 + $0x450] sm:$0xff]  ;;  %v1785_v45 = vsub.f32 %v4197_v12, %v1739_v35  ;;  %v2240_v53 = vperm.slane %v4255_v21, 0  ;;  %v1692_v59 = vrot.slane %v4274_v54, 4  ;;  %v2118_v56 = vrot.slane %v4255_v21, 3 }
 0x207   : > { %2732 = vst [vmem:[%s4145_s15 + $0x260] sm:$0xff] %v2476_v38  ;;  %v2538_v37 = vmul.f32 %v3233_v39, %v2213_v24  ;;  %v2539_v38 = vmul.f32 %v3234_v41, %v2213_v24  ;;  %v1762_v43 = vrot.slane %v1761_v36, 1  ;;  %v2543_v62 = vmul.f32 %v3238_v61, %v2215_v28  ;;  %v3252_v61 = vld [vmem:[%s3704_s14 + $0x668] sm:$0xff] }
 0x208   : > { %2733 = vst [vmem:[%s4145_s15 + $0x268] sm:$0xff] %v2477_v44  ;;  %v3235_v44 = vld [vmem:[%s3704_s14 + $0x460] sm:$0xff]  ;;  %v4276_v52 = vpop.eup %3161  ;;  %v1810_v12 = vmul.f32 1.442695, %v1785_v45  ;;  %v2119_v1 = vrot.slane %v4255_v21, 4  ;;  %v1693_v5 = vmax.f32 %v4274_v54, %v1692_v59  ;;  %v2120_v2 = vrot.slane %v4255_v21, 5 }
 0x209   : > { %2734 = vst [vmem:[%s4145_s15 + $0x270] sm:$0xff] %v2478_v51  ;;  %v2540_v46 = vmul.f32 %v3235_v44, %v2214_v26  ;;  %v3236_v51 = vld [vmem:[%s3704_s14 + $0x468] sm:$0xff]  ;;  %v1763_v58 = vmax.f32 %v1761_v36, %v1762_v43  ;;  %v1854_v0 = vrot.slane %v4276_v52, 4  ;;  %v2243_v15 = vperm.slane %v2118_v56, 0  ;;  %v3246_v36 = vld [vmem:[%s3704_s14 + $0x638] sm:$0xff] }
 0x20a   : > { %2735 = vst [vmem:[%s4145_s15 + $0x278] sm:$0xff] %v2479_v57  ;;  %v2541_v49 = vmul.f32 %v3236_v51, %v2214_v26  ;;  %v2542_v57 = vmul.f32 %v3237_v55, %v2215_v28  ;;  %v3164_v60 = vpop.eup %3163  ;;  %3165 = vpow2.f32 %v1810_v12  ;;  %v1694_v14 = vrot.slane %v1693_v5, 2 }
 0x20b   : > { %2784 = vst [vmem:[%s4145_s15 + $0x400] sm:$0xff] %v2528_v63  ;;  %v2241_v63 = vperm.slane %v2116_v40, 0  ;;  %v1937_v47 = vmul.f32 %v3164_v60, %v1835_v4  ;;  %v1855_v8 = vadd.f32 %v4276_v52, %v1854_v0  ;;  %v1789_v9 = vsub.f32 %v4224_v32, %v1763_v58  ;;  %v3242_v32 = vld [vmem:[%s3704_s14 + $0x618] sm:$0xff] }
 0x20c   : > { %2785 = vst [vmem:[%s4145_s15 + $0x408] sm:$0xff] %v2529_v3  ;;  %v2242_v3 = vperm.slane %v2117_v42, 0  ;;  %v2121_v22 = vrot.slane %v4255_v21, 6  ;;  %v2244_v48 = vperm.slane %v2119_v1, 0  ;;  %v1695_v29 = vmax.f32 %v1693_v5, %v1694_v14  ;;  %v3253_v1 = vld [vmem:[%s3704_s14 + $0x670] sm:$0xff]  ;;  %v3256_v14 = vld [vmem:[%s3704_s14 + $0x88] sm:$0xff] }
 0x20d   : > { %2786 = vst [vmem:[%s4145_s15 + $0x410] sm:$0xff] %v2530_v6  ;;  %v3239_v6 = vld [vmem:[%s3704_s14 + $0x600] sm:$0xff]  ;;  %v1953_v13 = vsub.f32 2.0, %v1937_v47  ;;  %v1856_v34 = vrot.slane %v1855_v8, 2  ;;  %v2122_v28 = vrot.slane %v4255_v21, 7  ;;  %v2245_v31 = vperm.slane %v2120_v2, 0 }
 0x20e   : > { %2787 = vst [vmem:[%s4145_s15 + $0x418] sm:$0xff] %v2531_v10  ;;  %v2592_v7 = vmul.f32 %v3239_v6, %v2240_v53  ;;  %v3240_v10 = vld [vmem:[%s3704_s14 + $0x608] sm:$0xff]  ;;  %v2597_v25 = vmul.f32 %v3244_v18, %v2242_v3  ;;  %v2599_v39 = vmul.f32 %v3246_v36, %v2243_v15  ;;  %v2246_v40 = vperm.slane %v2121_v22, 0  ;;  %v3254_v6 = vld [vmem:[%s3704_s14 + $0x678] sm:$0xff] }
 0x20f   : > { %2788 = vst [vmem:[%s4145_s15 + $0x420] sm:$0xff] %v2532_v17  ;;  %v2593_v11 = vmul.f32 %v3240_v10, %v2240_v53  ;;  %v2594_v17 = vmul.f32 %v3241_v16, %v2241_v63  ;;  %v1969_v24 = vmul.f32 %v3164_v60, %v1953_v13  ;;  %v1857_v19 = vadd.f32 %v1856_v34, %v1855_v8  ;;  %v3250_v53 = vld [vmem:[%s3704_s14 + $0x658] sm:$0xff]  ;;  %v4338_v8 = vpop.f32.mrf.mxu1 }
 0x210   : > { %2789 = vst [vmem:[%s4145_s15 + $0x428] sm:$0xff] %v2533_v23  ;;  %v2595_v23 = vmul.f32 %v3242_v32, %v2241_v63  ;;  %v1696_v43 = vrot.slane %v1695_v29, 1  ;;  %v2247_v44 = vperm.slane %v2122_v28, 0  ;;  %v2603_v55 = vmul.f32 %v3250_v53, %v2245_v31  ;;  %v3257_v32 = vld [vmem:[%s3704_s14 + $0x90] sm:$0xff] }
 0x211   : > { %2790 = vst [vmem:[%s4145_s15 + $0x430] sm:$0xff] %v2534_v20  ;;  %v3243_v20 = vld [vmem:[%s3704_s14 + $0x620] sm:$0xff]  ;;  %v1985_v26 = vmul.f32 %v4178_v50, %v1969_v24  ;;  %v1858_v21 = vrot.slane %v1857_v19, 1  ;;  %v1716_v24 = vrot.slane %v4338_v8, 4 }
 0x212   : > { %2791 = vst [vmem:[%s4145_s15 + $0x438] sm:$0xff] %v2535_v27  ;;  %v2596_v4 = vmul.f32 %v3243_v20, %v2242_v3  ;;  %v1818_v27 = vmul.f32 1.442695, %v1789_v9  ;;  %v3247_v50 = vld [vmem:[%s3704_s14 + $0x640] sm:$0xff]  ;;  %v1697_v63 = vmax.f32 %v1695_v29, %v1696_v43  ;;  %v2606_v3 = vmul.f32 %v3253_v1, %v2247_v44  ;;  %v3260_v29 = vld [vmem:[%s3704_s14 + $0xa8] sm:$0xff] }
 0x213   : > { %2792 = vst [vmem:[%s4145_s15 + $0x440] sm:$0xff] %v2536_v30  ;;  %v4305_v30 = vpop.eup %3165  ;;  %v2600_v41 = vmul.f32 %v3247_v50, %v2244_v48  ;;  %v1859_v60 = vadd.f32 %v1858_v21, %v1857_v19  ;;  %v3262_v21 = vld [vmem:[%s3704_s14 + $0xb8] sm:$0xff] }
 0x214   : > { %2793 = vst [vmem:[%s4145_s15 + $0x448] sm:$0xff] %v2537_v33  ;;  %v3245_v33 = vld [vmem:[%s3704_s14 + $0x630] sm:$0xff]  ;;  %3167 = vpow2.f32 %v1818_v27  ;;  %v1878_v45 = vrot.slane %v4305_v30, 4 }
 0x215   : > { %2794 = vst [vmem:[%s4145_s15 + $0x450] sm:$0xff] %v2538_v37  ;;  %v2598_v35 = vmul.f32 %v3245_v33, %v2243_v15  ;;  %v4312_v37 = vmul.f32 16.0, %v1985_v26  ;;  %3169 = vrcp.f32 %v1859_v60 }
 0x216   : > { %2795 = vst [vmem:[%s4145_s15 + $0x458] sm:$0xff] %v2539_v38  ;;  %v3248_v38 = vld [vmem:[%s3704_s14 + $0x648] sm:$0xff]  ;;  %v1879_v56 = vadd.f32 %v4305_v30, %v1878_v45 }
 0x217   : > { %2796 = vst [vmem:[%s4145_s15 + $0x460] sm:$0xff] %v2540_v46  ;;  %v2601_v42 = vmul.f32 %v3248_v38, %v2244_v48  ;;  %v3249_v46 = vld [vmem:[%s3704_s14 + $0x650] sm:$0xff]  ;;  %v2040_v58 = vrot.slane %v4312_v37, 2  ;;  %v2152_v59 = vperm.slane %v4312_v37, 0  ;;  %v2041_v47 = vrot.slane %v4312_v37, 3  ;;  %v3258_v48 = vld [vmem:[%s3704_s14 + $0x98] sm:$0xff] }
 0x218   : > { %2797 = vst [vmem:[%s4145_s15 + $0x468] sm:$0xff] %v2541_v49  ;;  %v2602_v51 = vmul.f32 %v3249_v46, %v2245_v31  ;;  %v2039_v49 = vrot.slane %v4312_v37, 1  ;;  %v2042_v9 = vrot.slane %v4312_v37, 4  ;;  %v1880_v15 = vrot.slane %v1879_v56, 2  ;;  %v3263_v46 = vld [vmem:[%s3704_s14 + $0xc0] sm:$0xff] }
 0x219   : > { %2798 = vst [vmem:[%s4145_s15 + $0x470] sm:$0xff] %v2542_v57  ;;  %v3251_v57 = vld [vmem:[%s3704_s14 + $0x660] sm:$0xff]  ;;  %v2154_v10 = vperm.slane %v2040_v58, 0  ;;  %v2417_v2 = vmul.f32 %v3256_v14, %v2152_v59  ;;  %v2043_v34 = vrot.slane %v4312_v37, 5  ;;  %v2155_v22 = vperm.slane %v2041_v47, 0  ;;  %v3268_v47 = vld [vmem:[%s3704_s14 + $0xe8] sm:$0xff] }
 0x21a   : > { %2799 = vst [vmem:[%s4145_s15 + $0x478] sm:$0xff] %v2543_v62  ;;  %v2604_v12 = vmul.f32 %v3251_v57, %v2246_v40  ;;  %v2605_v62 = vmul.f32 %v3252_v61, %v2246_v40  ;;  %v4331_v0 = vpop.eup %3167  ;;  %v2153_v5 = vperm.slane %v2039_v49, 0  ;;  %v2156_v18 = vperm.slane %v2042_v9, 0  ;;  %v3261_v40 = vld [vmem:[%s3704_s14 + $0xb0] sm:$0xff]  ;;  %v3266_v61 = vld [vmem:[%s3704_s14 + $0xd8] sm:$0xff] }
 0x21b   : > { %2848 = vst [vmem:[%s4145_s15 + $0x600] sm:$0xff] %v2592_v7  ;;  %v2607_v7 = vmul.f32 %v3254_v6, %v2247_v44  ;;  %v1902_v16 = vrot.slane %v4331_v0, 4  ;;  %v2421_v28 = vmul.f32 %v3260_v29, %v2154_v10  ;;  %v2045_v36 = vrot.slane %v4312_v37, 7  ;;  %v3269_v9 = vld [vmem:[%s3704_s14 + $0xf0] sm:$0xff] }
 0x21c   : > { %2849 = vst [vmem:[%s4145_s15 + $0x608] sm:$0xff] %v2593_v11  ;;  %v3255_v11 = vld [vmem:[%s3704_s14 + $0x80] sm:$0xff]  ;;  %v2419_v20 = vmul.f32 %v3258_v48, %v2153_v5  ;;  %v2422_v50 = vmul.f32 %v3261_v40, %v2155_v22  ;;  %v2423_v38 = vmul.f32 %v3262_v21, %v2155_v22  ;;  %v3276_v21 = vld [vmem:[%s3704_s14 + $0x2a8] sm:$0xff] }
 0x21d   : > { %2850 = vst [vmem:[%s4145_s15 + $0x610] sm:$0xff] %v2594_v17  ;;  %v2416_v13 = vmul.f32 %v3255_v11, %v2152_v59  ;;  %v1778_v17 = vsub.f32 %v4274_v54, %v1697_v63  ;;  %v1903_v19 = vadd.f32 %v4331_v0, %v1902_v16  ;;  %v2044_v54 = vrot.slane %v4312_v37, 6  ;;  %v3267_v63 = vld [vmem:[%s3704_s14 + $0xe0] sm:$0xff] }
 0x21e   : > { %2851 = vst [vmem:[%s4145_s15 + $0x618] sm:$0xff] %v2595_v23  ;;  %v2418_v23 = vmul.f32 %v3257_v32, %v2153_v5  ;;  %v2424_v37 = vmul.f32 %v3263_v46, %v2156_v18  ;;  %v2159_v57 = vperm.slane %v2045_v36, 0  ;;  %v3275_v40 = vld [vmem:[%s3704_s14 + $0x2a0] sm:$0xff] }
 0x21f   : > { %2852 = vst [vmem:[%s4145_s15 + $0x620] sm:$0xff] %v2596_v4  ;;  %v1881_v4 = vadd.f32 %v1880_v15, %v1879_v56  ;;  %v1796_v27 = vmul.f32 1.442695, %v1778_v17  ;;  %v1904_v33 = vrot.slane %v1903_v19, 2  ;;  %v2158_v44 = vperm.slane %v2044_v54, 0 }
 0x220   : > { %2853 = vst [vmem:[%s4145_s15 + $0x628] sm:$0xff] %v2597_v25  ;;  %v3259_v25 = vld [vmem:[%s3704_s14 + $0xa0] sm:$0xff] }
 0x221   : > { %2854 = vst [vmem:[%s4145_s15 + $0x630] sm:$0xff] %v2598_v35  ;;  %v2420_v26 = vmul.f32 %v3259_v25, %v2154_v10  ;;  %v1882_v31 = vrot.slane %v1881_v4, 1  ;;  %3171 = vpow2.f32 %v1796_v27  ;;  %v3170_v35 = vpop.eup %3169  ;;  %v1905_v43 = vadd.f32 %v1904_v33, %v1903_v19  ;;  %v3271_v19 = vld [vmem:[%s3704_s14 + $0x280] sm:$0xff] }
 0x222   : > { %2855 = vst [vmem:[%s4145_s15 + $0x638] sm:$0xff] %v2599_v39  ;;  %v2157_v39 = vperm.slane %v2043_v34, 0  ;;  %v2428_v1 = vmul.f32 %v3267_v63, %v2158_v44  ;;  %v2429_v5 = vmul.f32 %v3268_v47, %v2158_v44  ;;  %v2430_v10 = vmul.f32 %v3269_v9, %v2159_v57  ;;  %v3281_v47 = vld [vmem:[%s3704_s14 + $0x2d0] sm:$0xff] }
 0x223   : > { %2856 = vst [vmem:[%s4145_s15 + $0x640] sm:$0xff] %v2600_v41  ;;  %v1717_v41 = vmax.f32 %v4338_v8, %v1716_v24  ;;  %v1883_v45 = vadd.f32 %v1882_v31, %v1881_v4 }
 0x224   : > { %2857 = vst [vmem:[%s4145_s15 + $0x648] sm:$0xff] %v2601_v42  ;;  %v1941_v42 = vmul.f32 %v3170_v35, %v1859_v60 }
 0x225   : > { %2858 = vst [vmem:[%s4145_s15 + $0x650] sm:$0xff] %v2602_v51  ;;  %v3264_v51 = vld [vmem:[%s3704_s14 + $0xc8] sm:$0xff]  ;;  %v1718_v59 = vrot.slane %v1717_v41, 2  ;;  %3173 = vrcp.f32 %v1883_v45 }
 0x226   : > { %2859 = vst [vmem:[%s4145_s15 + $0x658] sm:$0xff] %v2603_v55  ;;  %v2425_v49 = vmul.f32 %v3264_v51, %v2156_v18  ;;  %v1957_v53 = vsub.f32 2.0, %v1941_v42  ;;  %v1906_v55 = vrot.slane %v1905_v43, 1  ;;  %v3272_v18 = vld [vmem:[%s3704_s14 + $0x288] sm:$0xff] }
 0x227   : > { %2860 = vst [vmem:[%s4145_s15 + $0x660] sm:$0xff] %v2604_v12  ;;  %v3265_v12 = vld [vmem:[%s3704_s14 + $0xd0] sm:$0xff]  ;;  %v4371_v60 = vpop.eup %3171  ;;  %v1719_v11 = vmax.f32 %v1717_v41, %v1718_v59 }
 0x228   : > { %2861 = vst [vmem:[%s4145_s15 + $0x668] sm:$0xff] %v2605_v62  ;;  %v2426_v58 = vmul.f32 %v3265_v12, %v2157_v39  ;;  %v2427_v62 = vmul.f32 %v3266_v61, %v2157_v39  ;;  %v1973_v56 = vmul.f32 %v3170_v35, %v1957_v53  ;;  %v4405_v61 = vpop.f32.mrf.mxu2 }
 0x229   : > { %2862 = vst [vmem:[%s4145_s15 + $0x670] sm:$0xff] %v2606_v3  ;;  %v1907_v3 = vadd.f32 %v1906_v55, %v1905_v43  ;;  %v3277_v43 = vld [vmem:[%s3704_s14 + $0x2b0] sm:$0xff]  ;;  %v1740_v9 = vrot.slane %v4405_v61, 4 }
 0x22a   : > { %2863 = vst [vmem:[%s4145_s15 + $0x678] sm:$0xff] %v2607_v7  ;;  %v1989_v6 = vmul.f32 %v4276_v52, %v1973_v56  ;;  %v1836_v7 = vrot.slane %v4371_v60, 4 }
 0x22b   : > { %2672 = vst [vmem:[%s4145_s15 + $0x80] sm:$0xff] %v2416_v13  ;;  %v3270_v13 = vld [vmem:[%s3704_s14 + $0xf8] sm:$0xff]  ;;  %3175 = vrcp.f32 %v1907_v3  ;;  %v3174_v15 = vpop.eup %3173 }
 0x22c   : > { %2673 = vst [vmem:[%s4145_s15 + $0x88] sm:$0xff] %v2417_v2  ;;  %v2431_v14 = vmul.f32 %v3270_v13, %v2159_v57  ;;  %v2005_v2 = vmul.f32 16.0, %v1989_v6  ;;  %v1837_v34 = vadd.f32 %v4371_v60, %v1836_v7  ;;  %v1945_v54 = vmul.f32 %v3174_v15, %v1883_v45  ;;  %v3279_v57 = vld [vmem:[%s3704_s14 + $0x2c0] sm:$0xff]  ;;  %v3282_v7 = vld [vmem:[%s3704_s14 + $0x2d8] sm:$0xff] }
 0x22d   : > { %2674 = vst [vmem:[%s4145_s15 + $0x90] sm:$0xff] %v2418_v23  ;;  %v1720_v23 = vrot.slane %v1719_v11, 1 }
 0x22e   : > { %2675 = vst [vmem:[%s4145_s15 + $0x98] sm:$0xff] %v2419_v20  ;;  %v2067_v16 = vrot.slane %v2005_v2, 1  ;;  %v2068_v52 = vrot.slane %v2005_v2, 2  ;;  %v2069_v17 = vrot.slane %v2005_v2, 3  ;;  %v2070_v22 = vrot.slane %v2005_v2, 4 }
 0x22f   : > { %2676 = vst [vmem:[%s4145_s15 + $0xa0] sm:$0xff] %v2420_v26  ;;  %v2184_v32 = vperm.slane %v2005_v2, 0  ;;  %v2071_v20 = vrot.slane %v2005_v2, 5  ;;  %v3273_v26 = vld [vmem:[%s3704_s14 + $0x290] sm:$0xff]  ;;  %v1838_v33 = vrot.slane %v1837_v34, 2  ;;  %v2072_v36 = vrot.slane %v2005_v2, 6 }
 0x230   : > { %2677 = vst [vmem:[%s4145_s15 + $0xa8] sm:$0xff] %v2421_v28  ;;  %v2185_v24 = vperm.slane %v2067_v16, 0  ;;  %v2186_v48 = vperm.slane %v2068_v52, 0  ;;  %v2187_v4 = vperm.slane %v2069_v17, 0  ;;  %v3274_v28 = vld [vmem:[%s3704_s14 + $0x298] sm:$0xff]  ;;  %v2188_v39 = vperm.slane %v2070_v22, 0 }
 0x231   : > { %2678 = vst [vmem:[%s4145_s15 + $0xb0] sm:$0xff] %v2422_v50  ;;  %v2480_v27 = vmul.f32 %v3271_v19, %v2184_v32  ;;  %v2481_v25 = vmul.f32 %v3272_v18, %v2184_v32  ;;  %v3176_v35 = vpop.eup %3175  ;;  %v1721_v41 = vmax.f32 %v1719_v11, %v1720_v23  ;;  %v2073_v42 = vrot.slane %v2005_v2, 7  ;;  %v3284_v2 = vld [vmem:[%s3704_s14 + $0x2e8] sm:$0xff]  ;;  %v3285_v52 = vld [vmem:[%s3704_s14 + $0x2f0] sm:$0xff]  ;;  %v3286_v23 = vld [vmem:[%s3704_s14 + $0x2f8] sm:$0xff] }
 0x232   : > { %2679 = vst [vmem:[%s4145_s15 + $0xb8] sm:$0xff] %v2423_v38  ;;  %v2482_v29 = vmul.f32 %v3273_v26, %v2185_v24  ;;  %v2483_v31 = vmul.f32 %v3274_v28, %v2185_v24  ;;  %v2484_v50 = vmul.f32 %v3275_v40, %v2186_v48  ;;  %v2485_v38 = vmul.f32 %v3276_v21, %v2186_v48  ;;  %v3287_v18 = vld [vmem:[%s3704_s14 + $0x480] sm:$0xff] }
 0x233   : > { %2680 = vst [vmem:[%s4145_s15 + $0xc0] sm:$0xff] %v2424_v37  ;;  %v2189_v45 = vperm.slane %v2071_v20, 0  ;;  %v2486_v44 = vmul.f32 %v3277_v43, %v2187_v4  ;;  %v1961_v46 = vsub.f32 2.0, %v1945_v54  ;;  %v3278_v37 = vld [vmem:[%s3704_s14 + $0x2b8] sm:$0xff]  ;;  %v1839_v53 = vadd.f32 %v1838_v33, %v1837_v34  ;;  %v4434_v54 = vpop.f32.mrf.mxu3  ;;  %v3292_v43 = vld [vmem:[%s3704_s14 + $0x4a8] sm:$0xff] }
 0x234   : > { %2681 = vst [vmem:[%s4145_s15 + $0xc8] sm:$0xff] %v2425_v49  ;;  %v2487_v51 = vmul.f32 %v3278_v37, %v2187_v4  ;;  %v1949_v49 = vmul.f32 %v3176_v35, %v1907_v3  ;;  %v2190_v55 = vperm.slane %v2072_v36, 0  ;;  %v2488_v12 = vmul.f32 %v3279_v57, %v2188_v39  ;;  %v3294_v57 = vld [vmem:[%s3704_s14 + $0x4b8] sm:$0xff] }
 0x235   : > { %2682 = vst [vmem:[%s4145_s15 + $0xd0] sm:$0xff] %v2426_v58  ;;  %v1977_v58 = vmul.f32 %v3174_v15, %v1961_v46  ;;  %v1782_v59 = vsub.f32 %v4338_v8, %v1721_v41  ;;  %v2191_v3 = vperm.slane %v2073_v42, 0  ;;  %v2491_v8 = vmul.f32 %v3282_v7, %v2189_v45 }
 0x236   : > { %2683 = vst [vmem:[%s4145_s15 + $0xd8] sm:$0xff] %v2427_v62  ;;  %v3280_v62 = vld [vmem:[%s3704_s14 + $0x2c8] sm:$0xff]  ;;  %v1965_v63 = vsub.f32 2.0, %v1949_v49  ;;  %v2493_v15 = vmul.f32 %v3284_v2, %v2190_v55  ;;  %v1741_v20 = vmax.f32 %v4405_v61, %v1740_v9  ;;  %v3298_v9 = vld [vmem:[%s3704_s14 + $0x4d8] sm:$0xff]  ;;  %v3299_v2 = vld [vmem:[%s3704_s14 + $0x4e0] sm:$0xff] }
 0x237   : > { %2684 = vst [vmem:[%s4145_s15 + $0xe0] sm:$0xff] %v2428_v1  ;;  %v2489_v56 = vmul.f32 %v3280_v62, %v2188_v39  ;;  %v1840_v1 = vrot.slane %v1839_v53, 1  ;;  %v1993_v6 = vmul.f32 %v4305_v30, %v1977_v58  ;;  %v2494_v17 = vmul.f32 %v3285_v52, %v2191_v3  ;;  %v3290_v39 = vld [vmem:[%s3704_s14 + $0x498] sm:$0xff] }
 0x238   : > { %2685 = vst [vmem:[%s4145_s15 + $0xe8] sm:$0xff] %v2429_v5  ;;  %v2490_v5 = vmul.f32 %v3281_v47, %v2189_v45  ;;  %v1981_v16 = vmul.f32 %v3176_v35, %v1965_v63  ;;  %v2495_v24 = vmul.f32 %v3286_v23, %v2191_v3  ;;  %v3289_v35 = vld [vmem:[%s3704_s14 + $0x490] sm:$0xff]  ;;  %v3296_v3 = vld [vmem:[%s3704_s14 + $0x4c8] sm:$0xff]  ;;  %v4481_v23 = vpop.f32.mrf.mxu0 }
 0x239   : > { %2686 = vst [vmem:[%s4145_s15 + $0xf0] sm:$0xff] %v2430_v10  ;;  %v3283_v10 = vld [vmem:[%s3704_s14 + $0x2e0] sm:$0xff]  ;;  %v4417_v13 = vmul.f32 16.0, %v1993_v6  ;;  %v4421_v30 = vadd.f32 %v1840_v1, %v1839_v53 }
 0x23a   : > { %2687 = vst [vmem:[%s4145_s15 + $0xf8] sm:$0xff] %v2431_v14  ;;  %v2492_v11 = vmul.f32 %v3283_v10, %v2190_v55  ;;  %v1804_v14 = vmul.f32 1.442695, %v1782_v59  ;;  %v1997_v26 = vmul.f32 %v4331_v0, %v1981_v16  ;;  %v1742_v0 = vrot.slane %v1741_v20, 2 }
 0x23b   : > { %2736 = vst [vmem:[%s4145_s15 + $0x280] sm:$0xff] %v2480_v27  ;;  %v2095_v34 = vrot.slane %v4417_v13, 1  ;;  %v2096_v22 = vrot.slane %v4417_v13, 2  ;;  %v2097_v32 = vrot.slane %v4417_v13, 3  ;;  %v2216_v48 = vperm.slane %v4417_v13, 0 }
 0x23c   : > { %2737 = vst [vmem:[%s4145_s15 + $0x288] sm:$0xff] %v2481_v25  ;;  %v2098_v4 = vrot.slane %v4417_v13, 4  ;;  %3177 = vpow2.f32 %v1804_v14  ;;  %v2100_v41 = vrot.slane %v4417_v13, 6  ;;  %v2101_v45 = vrot.slane %v4417_v13, 7 }
 0x23d   : > { %2738 = vst [vmem:[%s4145_s15 + $0x290] sm:$0xff] %v2482_v29  ;;  %v2217_v19 = vperm.slane %v2095_v34, 0  ;;  %v2218_v27 = vperm.slane %v2096_v22, 0  ;;  %v2544_v25 = vmul.f32 %v3287_v18, %v2216_v48  ;;  %3179 = vrcp.f32 %v4421_v30  ;;  %v3301_v34 = vld [vmem:[%s3704_s14 + $0x4f0] sm:$0xff] }
 0x23e   : > { %2739 = vst [vmem:[%s4145_s15 + $0x298] sm:$0xff] %v2483_v31  ;;  %v2099_v29 = vrot.slane %v4417_v13, 5  ;;  %v2219_v28 = vperm.slane %v2097_v32, 0  ;;  %v3288_v31 = vld [vmem:[%s3704_s14 + $0x488] sm:$0xff]  ;;  %v2220_v21 = vperm.slane %v2098_v4, 0  ;;  %v4457_v53 = vmul.f32 16.0, %v1997_v26 }
 0x23f   : > { %2740 = vst [vmem:[%s4145_s15 + $0x2a0] sm:$0xff] %v2484_v50  ;;  %v2545_v33 = vmul.f32 %v3288_v31, %v2216_v48  ;;  %v2546_v36 = vmul.f32 %v3289_v35, %v2217_v19  ;;  %v2547_v40 = vmul.f32 %v3290_v39, %v2217_v19  ;;  %v1764_v50 = vrot.slane %v4434_v54, 4  ;;  %v3303_v31 = vld [vmem:[%s3704_s14 + $0x680] sm:$0xff]  ;;  %v3304_v39 = vld [vmem:[%s3704_s14 + $0x688] sm:$0xff] }
 0x240   : > { %2741 = vst [vmem:[%s4145_s15 + $0x2a8] sm:$0xff] %v2485_v38  ;;  %v3291_v38 = vld [vmem:[%s3704_s14 + $0x4a0] sm:$0xff]  ;;  %v2221_v37 = vperm.slane %v2099_v29, 0  ;;  %v1743_v58 = vmax.f32 %v1741_v20, %v1742_v0  ;;  %v2222_v62 = vperm.slane %v2100_v41, 0  ;;  %v2223_v1 = vperm.slane %v2101_v45, 0  ;;  %v3305_v41 = vld [vmem:[%s3704_s14 + $0x690] sm:$0xff] }
 0x241   : > { %2742 = vst [vmem:[%s4145_s15 + $0x2b0] sm:$0xff] %v2486_v44  ;;  %v2548_v42 = vmul.f32 %v3291_v38, %v2218_v27  ;;  %v2549_v44 = vmul.f32 %v3292_v43, %v2218_v27  ;;  %v1765_v59 = vmax.f32 %v4434_v54, %v1764_v50  ;;  %v2553_v47 = vmul.f32 %v3296_v3, %v2220_v21  ;;  %v3306_v43 = vld [vmem:[%s3704_s14 + $0x698] sm:$0xff] }
 0x242   : > { %2743 = vst [vmem:[%s4145_s15 + $0x2b8] sm:$0xff] %v2487_v51  ;;  %v4453_v46 = vpop.eup %3177  ;;  %v3293_v51 = vld [vmem:[%s3704_s14 + $0x4b0] sm:$0xff]  ;;  %v2123_v7 = vrot.slane %v4457_v53, 1  ;;  %v2555_v10 = vmul.f32 %v3298_v9, %v2221_v37  ;;  %v1744_v13 = vrot.slane %v1743_v58, 1  ;;  %v2124_v16 = vrot.slane %v4457_v53, 2  ;;  %v3310_v3 = vld [vmem:[%s3704_s14 + $0x6b8] sm:$0xff] }
 0x243   : > { %2744 = vst [vmem:[%s4145_s15 + $0x2c0] sm:$0xff] %v2488_v12  ;;  %v2550_v49 = vmul.f32 %v3293_v51, %v2219_v28  ;;  %v3180_v55 = vpop.eup %3179  ;;  %v2551_v12 = vmul.f32 %v3294_v57, %v2219_v28  ;;  %v1766_v14 = vrot.slane %v1765_v59, 2  ;;  %v2248_v52 = vperm.slane %v4457_v53, 0  ;;  %v3312_v9 = vld [vmem:[%s3704_s14 + $0x6c8] sm:$0xff] }
 0x244   : > { %2745 = vst [vmem:[%s4145_s15 + $0x2c8] sm:$0xff] %v2489_v56  ;;  %v3295_v56 = vld [vmem:[%s3704_s14 + $0x4c0] sm:$0xff]  ;;  %v2558_v22 = vmul.f32 %v3301_v34, %v2223_v1  ;;  %v2125_v32 = vrot.slane %v4457_v53, 3  ;;  %v2126_v20 = vrot.slane %v4457_v53, 4  ;;  %v2249_v4 = vperm.slane %v2123_v7, 0 }
 0x245   : > { %2746 = vst [vmem:[%s4145_s15 + $0x2d0] sm:$0xff] %v2490_v5  ;;  %v2552_v63 = vmul.f32 %v3295_v56, %v2220_v21  ;;  %v3297_v5 = vld [vmem:[%s3704_s14 + $0x4d0] sm:$0xff]  ;;  %v1745_v18 = vmax.f32 %v1743_v58, %v1744_v13  ;;  %v1698_v26 = vrot.slane %v4481_v23, 4  ;;  %v2127_v29 = vrot.slane %v4457_v53, 5  ;;  %v3311_v7 = vld [vmem:[%s3704_s14 + $0x6c0] sm:$0xff] }
 0x246   : > { %2747 = vst [vmem:[%s4145_s15 + $0x2d8] sm:$0xff] %v2491_v8  ;;  %v2554_v6 = vmul.f32 %v3297_v5, %v2221_v37  ;;  %v1938_v8 = vmul.f32 %v3180_v55, %v4421_v30  ;;  %v2250_v28 = vperm.slane %v2124_v16, 0  ;;  %v2610_v21 = vmul.f32 %v3305_v41, %v2249_v4  ;;  %v3309_v56 = vld [vmem:[%s3704_s14 + $0x6b0] sm:$0xff] }
 0x247   : > { %2748 = vst [vmem:[%s4145_s15 + $0x2e0] sm:$0xff] %v2492_v11  ;;  %v1860_v11 = vrot.slane %v4453_v46, 4  ;;  %v1786_v50 = vsub.f32 %v4405_v61, %v1745_v18  ;;  %v1699_v45 = vmax.f32 %v4481_v23, %v1698_v26  ;;  %v2128_v51 = vrot.slane %v4457_v53, 6 }
 0x248   : > { %2749 = vst [vmem:[%s4145_s15 + $0x2e8] sm:$0xff] %v2493_v15  ;;  %v2556_v15 = vmul.f32 %v3299_v2, %v2222_v62  ;;  %v1954_v19 = vsub.f32 2.0, %v1938_v8  ;;  %v2129_v61 = vrot.slane %v4457_v53, 7 }
 0x249   : > { %2750 = vst [vmem:[%s4145_s15 + $0x2f0] sm:$0xff] %v2494_v17  ;;  %v3300_v17 = vld [vmem:[%s3704_s14 + $0x4e8] sm:$0xff]  ;;  %v1861_v27 = vadd.f32 %v4453_v46, %v1860_v11  ;;  %v1812_v37 = vmul.f32 1.442695, %v1786_v50  ;;  %v2254_v5 = vperm.slane %v2128_v51, 0 }
 0x24a   : > { %2751 = vst [vmem:[%s4145_s15 + $0x2f8] sm:$0xff] %v2495_v24  ;;  %v2557_v30 = vmul.f32 %v3300_v17, %v2222_v62  ;;  %v3302_v24 = vld [vmem:[%s3704_s14 + $0x4f8] sm:$0xff]  ;;  %v1970_v35 = vmul.f32 %v3180_v55, %v1954_v19  ;;  %v3307_v55 = vld [vmem:[%s3704_s14 + $0x6a0] sm:$0xff]  ;;  %v2253_v62 = vperm.slane %v2127_v29, 0 }
 0x24b   : > { %2800 = vst [vmem:[%s4145_s15 + $0x480] sm:$0xff] %v2544_v25  ;;  %v2559_v48 = vmul.f32 %v3302_v24, %v2223_v1  ;;  %v1767_v25 = vmax.f32 %v1765_v59, %v1766_v14  ;;  %v1862_v0 = vrot.slane %v1861_v27, 2  ;;  %v2612_v57 = vmul.f32 %v3307_v55, %v2250_v28  ;;  %v3313_v14 = vld [vmem:[%s3704_s14 + $0x6d0] sm:$0xff]  ;;  %v3314_v17 = vld [vmem:[%s3704_s14 + $0x6d8] sm:$0xff]  ;;  %v3315_v24 = vld [vmem:[%s3704_s14 + $0x6e0] sm:$0xff] }
 0x24c   : > { %2801 = vst [vmem:[%s4145_s15 + $0x488] sm:$0xff] %v2545_v33  ;;  %v2608_v33 = vmul.f32 %v3303_v31, %v2248_v52  ;;  %v1986_v38 = vmul.f32 %v4371_v60, %v1970_v35  ;;  %v3308_v60 = vld [vmem:[%s3704_s14 + $0x6a8] sm:$0xff]  ;;  %3181 = vpow2.f32 %v1812_v37  ;;  %v1700_v1 = vrot.slane %v1699_v45, 2 }
 0x24d   : > { %2802 = vst [vmem:[%s4145_s15 + $0x490] sm:$0xff] %v2546_v36  ;;  %v2251_v36 = vperm.slane %v2125_v32, 0  ;;  %v1863_v59 = vadd.f32 %v1862_v0, %v1861_v27  ;;  %v2618_v2 = vmul.f32 %v3313_v14, %v2253_v62  ;;  %v4527_v32 = vpop.f32.mrf.mxu1  ;;  %v3318_v27 = vld [vmem:[%s3704_s14 + $0x6f8] sm:$0xff] }
 0x24e   : > { %2803 = vst [vmem:[%s4145_s15 + $0x498] sm:$0xff] %v2547_v40  ;;  %v2609_v40 = vmul.f32 %v3304_v39, %v2248_v52  ;;  %v4507_v58 = vmul.f32 16.0, %v1986_v38  ;;  %v1701_v16 = vmax.f32 %v1699_v45, %v1700_v1  ;;  %v1722_v35 = vrot.slane %v4527_v32, 4  ;;  %v3320_v45 = vld [vmem:[%s3704_s14 + $0x108] sm:$0xff] }
 0x24f   : > { %2804 = vst [vmem:[%s4145_s15 + $0x4a0] sm:$0xff] %v2548_v42  ;;  %v1768_v42 = vrot.slane %v1767_v25, 1  ;;  %v2614_v53 = vmul.f32 %v3309_v56, %v2251_v36  ;;  %v1864_v13 = vrot.slane %v1863_v59, 1 }
 0x250   : > { %2805 = vst [vmem:[%s4145_s15 + $0x4a8] sm:$0xff] %v2549_v44  ;;  %v2611_v44 = vmul.f32 %v3306_v43, %v2249_v4  ;;  %v2046_v11 = vrot.slane %v4507_v58, 1  ;;  %v2047_v34 = vrot.slane %v4507_v58, 2  ;;  %v3317_v4 = vld [vmem:[%s3704_s14 + $0x6f0] sm:$0xff]  ;;  %v2050_v38 = vrot.slane %v4507_v58, 5 }
 0x251   : > { %2806 = vst [vmem:[%s4145_s15 + $0x4b0] sm:$0xff] %v2550_v49  ;;  %v2252_v49 = vperm.slane %v2126_v20, 0  ;;  %v3316_v20 = vld [vmem:[%s3704_s14 + $0x6e8] sm:$0xff]  ;;  %v1865_v29 = vadd.f32 %v1864_v13, %v1863_v59  ;;  %v2051_v55 = vrot.slane %v4507_v58, 6  ;;  %v3323_v59 = vld [vmem:[%s3704_s14 + $0x120] sm:$0xff]  ;;  %v2052_v1 = vrot.slane %v4507_v58, 7 }
 0x252   : > { %2807 = vst [vmem:[%s4145_s15 + $0x4b8] sm:$0xff] %v2551_v12  ;;  %v2613_v12 = vmul.f32 %v3308_v60, %v2250_v28  ;;  %v4521_v52 = vpop.eup %3181  ;;  %v2161_v26 = vperm.slane %v2046_v11, 0  ;;  %v2162_v39 = vperm.slane %v2047_v34, 0  ;;  %v3322_v60 = vld [vmem:[%s3704_s14 + $0x118] sm:$0xff]  ;;  %v3328_v34 = vld [vmem:[%s3704_s14 + $0x148] sm:$0xff] }
 0x253   : > { %2808 = vst [vmem:[%s4145_s15 + $0x4c0] sm:$0xff] %v2552_v63  ;;  %v1769_v63 = vmax.f32 %v1767_v25, %v1768_v42  ;;  %v2616_v8 = vmul.f32 %v3311_v7, %v2252_v49  ;;  %v2048_v25 = vrot.slane %v4507_v58, 3  ;;  %v1884_v28 = vrot.slane %v4521_v52, 4  ;;  %v3325_v7 = vld [vmem:[%s3704_s14 + $0x130] sm:$0xff]  ;;  %v3326_v13 = vld [vmem:[%s3704_s14 + $0x138] sm:$0xff] }
 0x254   : > { %2809 = vst [vmem:[%s4145_s15 + $0x4c8] sm:$0xff] %v2553_v47  ;;  %v2615_v47 = vmul.f32 %v3310_v3, %v2251_v36  ;;  %v2049_v36 = vrot.slane %v4507_v58, 4  ;;  %3183 = vrcp.f32 %v1865_v29  ;;  %v2165_v3 = vperm.slane %v2050_v38, 0 }
 0x255   : > { %2810 = vst [vmem:[%s4145_s15 + $0x4d0] sm:$0xff] %v2554_v6  ;;  %v2255_v6 = vperm.slane %v2129_v61, 0  ;;  %v1885_v50 = vadd.f32 %v4521_v52, %v1884_v28  ;;  %v2163_v42 = vperm.slane %v2048_v25, 0  ;;  %v3331_v25 = vld [vmem:[%s3704_s14 + $0x160] sm:$0xff] }
 0x256   : > { %2811 = vst [vmem:[%s4145_s15 + $0x4d8] sm:$0xff] %v2555_v10  ;;  %v2617_v10 = vmul.f32 %v3312_v9, %v2252_v49 }
 0x257   : > { %2812 = vst [vmem:[%s4145_s15 + $0x4e0] sm:$0xff] %v2556_v15  ;;  %v1790_v15 = vsub.f32 %v4434_v54, %v1769_v63  ;;  %v2621_v54 = vmul.f32 %v3316_v20, %v2254_v5  ;;  %v2622_v19 = vmul.f32 %v3317_v4, %v2255_v6  ;;  %v2623_v18 = vmul.f32 %v3318_v27, %v2255_v6 }
 0x258   : > { %2813 = vst [vmem:[%s4145_s15 + $0x4e8] sm:$0xff] %v2557_v30  ;;  %v2619_v30 = vmul.f32 %v3314_v17, %v2253_v62  ;;  %v1886_v51 = vrot.slane %v1885_v50, 2  ;;  %v2436_v62 = vmul.f32 %v3323_v59, %v2162_v39 }
 0x259   : > { %2814 = vst [vmem:[%s4145_s15 + $0x4f0] sm:$0xff] %v2558_v22  ;;  %v2160_v22 = vperm.slane %v4507_v58, 0  ;;  %v1820_v31 = vmul.f32 1.442695, %v1790_v15  ;;  %v2439_v58 = vmul.f32 %v3326_v13, %v2163_v42  ;;  %v3327_v15 = vld [vmem:[%s3704_s14 + $0x140] sm:$0xff]  ;;  %v3341_v13 = vld [vmem:[%s3704_s14 + $0x330] sm:$0xff] }
 0x25a   : > { %2815 = vst [vmem:[%s4145_s15 + $0x4f8] sm:$0xff] %v2559_v48  ;;  %v2620_v48 = vmul.f32 %v3315_v24, %v2254_v5  ;;  %v1887_v56 = vadd.f32 %v1886_v51, %v1885_v50  ;;  %v3329_v24 = vld [vmem:[%s3704_s14 + $0x150] sm:$0xff] }
 0x25b   : > { %2864 = vst [vmem:[%s4145_s15 + $0x680] sm:$0xff] %v2608_v33  ;;  %v1702_v33 = vrot.slane %v1701_v16, 1  ;;  %3185 = vpow2.f32 %v1820_v31  ;;  %v2433_v43 = vmul.f32 %v3320_v45, %v2160_v22  ;;  %v3332_v31 = vld [vmem:[%s3704_s14 + $0x168] sm:$0xff] }
 0x25c   : > { %2865 = vst [vmem:[%s4145_s15 + $0x688] sm:$0xff] %v2609_v40  ;;  %v3319_v40 = vld [vmem:[%s3704_s14 + $0x100] sm:$0xff] }
 0x25d   : > { %2866 = vst [vmem:[%s4145_s15 + $0x690] sm:$0xff] %v2610_v21  ;;  %v2432_v0 = vmul.f32 %v3319_v40, %v2160_v22  ;;  %v1703_v41 = vmax.f32 %v1701_v16, %v1702_v33  ;;  %v1723_v21 = vmax.f32 %v4527_v32, %v1722_v35  ;;  %v3333_v35 = vld [vmem:[%s3704_s14 + $0x170] sm:$0xff] }
 0x25e   : > { %2867 = vst [vmem:[%s4145_s15 + $0x698] sm:$0xff] %v2611_v44  ;;  %v3321_v44 = vld [vmem:[%s3704_s14 + $0x110] sm:$0xff] }
 0x25f   : > { %2868 = vst [vmem:[%s4145_s15 + $0x6a0] sm:$0xff] %v2612_v57  ;;  %v2434_v37 = vmul.f32 %v3321_v44, %v2161_v26  ;;  %v1779_v61 = vsub.f32 %v4481_v23, %v1703_v41  ;;  %v1724_v49 = vrot.slane %v1723_v21, 2  ;;  %v2164_v57 = vperm.slane %v2049_v36, 0  ;;  %v3184_v23 = vpop.eup %3183 }
 0x260   : > { %2869 = vst [vmem:[%s4145_s15 + $0x6a8] sm:$0xff] %v2613_v12  ;;  %v2435_v12 = vmul.f32 %v3322_v60, %v2161_v26  ;;  %v1942_v9 = vmul.f32 %v3184_v23, %v1865_v29 }
 0x261   : > { %2870 = vst [vmem:[%s4145_s15 + $0x6b0] sm:$0xff] %v2614_v53  ;;  %v1798_v53 = vmul.f32 1.442695, %v1779_v61  ;;  %v1725_v63 = vmax.f32 %v1723_v21, %v1724_v49  ;;  %v4559_v6 = vpop.eup %3185  ;;  %v2440_v16 = vmul.f32 %v3327_v15, %v2164_v57  ;;  %v2441_v22 = vmul.f32 %v3328_v34, %v2164_v57  ;;  %v3335_v49 = vld [vmem:[%s3704_s14 + $0x300] sm:$0xff]  ;;  %v3342_v15 = vld [vmem:[%s3704_s14 + $0x338] sm:$0xff] }
 0x262   : > { %2871 = vst [vmem:[%s4145_s15 + $0x6b8] sm:$0xff] %v2615_v47  ;;  %v3324_v47 = vld [vmem:[%s3704_s14 + $0x128] sm:$0xff]  ;;  %v1908_v14 = vrot.slane %v4559_v6, 4  ;;  %v1958_v17 = vsub.f32 2.0, %v1942_v9 }
 0x263   : > { %2872 = vst [vmem:[%s4145_s15 + $0x6c0] sm:$0xff] %v2616_v8  ;;  %v2437_v5 = vmul.f32 %v3324_v47, %v2162_v39  ;;  %v2438_v8 = vmul.f32 %v3325_v7, %v2163_v42  ;;  %v1726_v11 = vrot.slane %v1725_v63, 1  ;;  %3187 = vpow2.f32 %v1798_v53  ;;  %v3338_v53 = vld [vmem:[%s3704_s14 + $0x318] sm:$0xff]  ;;  %v3339_v47 = vld [vmem:[%s3704_s14 + $0x320] sm:$0xff]  ;;  %v4602_v7 = vpop.f32.mrf.mxu2  ;;  %v3340_v9 = vld [vmem:[%s3704_s14 + $0x328] sm:$0xff] }
 0x264   : > { %2873 = vst [vmem:[%s4145_s15 + $0x6c8] sm:$0xff] %v2617_v10  ;;  %v1888_v10 = vrot.slane %v1887_v56, 1  ;;  %v1974_v20 = vmul.f32 %v3184_v23, %v1958_v17 }
 0x265   : > { %2874 = vst [vmem:[%s4145_s15 + $0x6d0] sm:$0xff] %v2618_v2  ;;  %v2166_v2 = vperm.slane %v2051_v55, 0  ;;  %v1727_v4 = vmax.f32 %v1725_v63, %v1726_v11 }
 0x266   : > { %2875 = vst [vmem:[%s4145_s15 + $0x6d8] sm:$0xff] %v2619_v30  ;;  %v2167_v30 = vperm.slane %v2052_v1, 0  ;;  %v1990_v29 = vmul.f32 %v4453_v46, %v1974_v20 }
 0x267   : > { %2876 = vst [vmem:[%s4145_s15 + $0x6e0] sm:$0xff] %v2620_v48  ;;  %v2442_v48 = vmul.f32 %v3329_v24, %v2165_v3  ;;  %v2444_v26 = vmul.f32 %v3331_v25, %v2166_v2  ;;  %v2445_v33 = vmul.f32 %v3332_v31, %v2166_v2  ;;  %v1783_v40 = vsub.f32 %v4527_v32, %v1727_v4  ;;  %v3344_v4 = vld [vmem:[%s3704_s14 + $0x348] sm:$0xff] }
 0x268   : > { %2877 = vst [vmem:[%s4145_s15 + $0x6e8] sm:$0xff] %v2621_v54  ;;  %v4572_v54 = vadd.f32 %v1888_v10, %v1887_v56  ;;  %v2446_v36 = vmul.f32 %v3333_v35, %v2167_v30  ;;  %v2006_v39 = vmul.f32 16.0, %v1990_v29 }
 0x269   : > { %2878 = vst [vmem:[%s4145_s15 + $0x6f0] sm:$0xff] %v2622_v19  ;;  %v3330_v19 = vld [vmem:[%s3704_s14 + $0x158] sm:$0xff]  ;;  %v4580_v28 = vpop.eup %3187 }
 0x26a   : > { %2879 = vst [vmem:[%s4145_s15 + $0x6f8] sm:$0xff] %v2623_v18  ;;  %v2443_v27 = vmul.f32 %v3330_v19, %v2165_v3  ;;  %v1909_v18 = vadd.f32 %v4559_v6, %v1908_v14  ;;  %3189 = vrcp.f32 %v4572_v54  ;;  %v2074_v41 = vrot.slane %v2006_v39, 1 }
 0x26b   : > { %2688 = vst [vmem:[%s4145_s15 + $0x100] sm:$0xff] %v2432_v0  ;;  %v3334_v0 = vld [vmem:[%s3704_s14 + $0x178] sm:$0xff]  ;;  %v2075_v21 = vrot.slane %v2006_v39, 2  ;;  %v2076_v38 = vrot.slane %v2006_v39, 3  ;;  %v1842_v42 = vrot.slane %v4580_v28, 4  ;;  %v2077_v45 = vrot.slane %v2006_v39, 4 }
 0x26c   : > { %2689 = vst [vmem:[%s4145_s15 + $0x108] sm:$0xff] %v2433_v43  ;;  %v2447_v50 = vmul.f32 %v3334_v0, %v2167_v30  ;;  %v1910_v46 = vrot.slane %v1909_v18, 2  ;;  %v2192_v43 = vperm.slane %v2006_v39, 0  ;;  %v2193_v32 = vperm.slane %v2074_v41, 0  ;;  %v3349_v41 = vld [vmem:[%s3704_s14 + $0x370] sm:$0xff] }
 0x26d   : > { %2690 = vst [vmem:[%s4145_s15 + $0x110] sm:$0xff] %v2434_v37  ;;  %v2194_v44 = vperm.slane %v2075_v21, 0  ;;  %v1806_v37 = vmul.f32 1.442695, %v1783_v40  ;;  %v2078_v51 = vrot.slane %v2006_v39, 5  ;;  %v2195_v61 = vperm.slane %v2076_v38, 0 }
 0x26e   : > { %2691 = vst [vmem:[%s4145_s15 + $0x118] sm:$0xff] %v2435_v12  ;;  %v2496_v55 = vmul.f32 %v3335_v49, %v2192_v43  ;;  %v1911_v57 = vadd.f32 %v1910_v46, %v1909_v18  ;;  %v3336_v12 = vld [vmem:[%s3704_s14 + $0x308] sm:$0xff]  ;;  %v2499_v63 = vmul.f32 %v3338_v53, %v2193_v32  ;;  %v1843_v23 = vadd.f32 %v4580_v28, %v1842_v42 }
 0x26f   : > { %2692 = vst [vmem:[%s4145_s15 + $0x120] sm:$0xff] %v2436_v62  ;;  %v2497_v59 = vmul.f32 %v3336_v12, %v2192_v43  ;;  %v3337_v62 = vld [vmem:[%s3704_s14 + $0x310] sm:$0xff]  ;;  %v2079_v1 = vrot.slane %v2006_v39, 6  ;;  %v2196_v3 = vperm.slane %v2077_v45, 0  ;;  %v2501_v10 = vmul.f32 %v3340_v9, %v2194_v44 }
 0x270   : > { %2693 = vst [vmem:[%s4145_s15 + $0x128] sm:$0xff] %v2437_v5  ;;  %v3190_v60 = vpop.eup %3189  ;;  %v2498_v56 = vmul.f32 %v3337_v62, %v2193_v32  ;;  %v2500_v5 = vmul.f32 %v3339_v47, %v2194_v44  ;;  %3191 = vpow2.f32 %v1806_v37  ;;  %v2197_v11 = vperm.slane %v2078_v51, 0  ;;  %v3350_v32 = vld [vmem:[%s3704_s14 + $0x378] sm:$0xff] }
 0x271   : > { %2694 = vst [vmem:[%s4145_s15 + $0x130] sm:$0xff] %v2438_v8  ;;  %v2080_v8 = vrot.slane %v2006_v39, 7  ;;  %v1946_v14 = vmul.f32 %v3190_v60, %v4572_v54  ;;  %v1912_v2 = vrot.slane %v1911_v57, 1  ;;  %v1844_v17 = vrot.slane %v1843_v23, 2  ;;  %v3347_v39 = vld [vmem:[%s3704_s14 + $0x360] sm:$0xff] }
 0x272   : > { %2695 = vst [vmem:[%s4145_s15 + $0x138] sm:$0xff] %v2439_v58  ;;  %v2502_v58 = vmul.f32 %v3341_v13, %v2195_v61  ;;  %v1746_v30 = vrot.slane %v4602_v7, 4  ;;  %v2198_v34 = vperm.slane %v2079_v1, 0  ;;  %v2505_v54 = vmul.f32 %v3344_v4, %v2196_v3  ;;  %v3355_v13 = vld [vmem:[%s3704_s14 + $0x520] sm:$0xff] }
 0x273   : > { %2696 = vst [vmem:[%s4145_s15 + $0x140] sm:$0xff] %v2440_v16  ;;  %v2503_v16 = vmul.f32 %v3342_v15, %v2195_v61  ;;  %v2199_v20 = vperm.slane %v2080_v8, 0  ;;  %v1845_v19 = vadd.f32 %v1844_v17, %v1843_v23  ;;  %v3352_v23 = vld [vmem:[%s3704_s14 + $0x508] sm:$0xff]  ;;  %v4658_v17 = vpop.f32.mrf.mxu3 }
 0x274   : > { %2697 = vst [vmem:[%s4145_s15 + $0x148] sm:$0xff] %v2441_v22  ;;  %v3343_v22 = vld [vmem:[%s3704_s14 + $0x340] sm:$0xff]  ;;  %v1747_v29 = vmax.f32 %v4602_v7, %v1746_v30  ;;  %v2508_v40 = vmul.f32 %v3347_v39, %v2198_v34  ;;  %v3361_v39 = vld [vmem:[%s3704_s14 + $0x550] sm:$0xff] }
 0x275   : > { %2698 = vst [vmem:[%s4145_s15 + $0x150] sm:$0xff] %v2442_v48  ;;  %v2504_v24 = vmul.f32 %v3343_v22, %v2196_v3  ;;  %v1962_v48 = vsub.f32 2.0, %v1946_v14  ;;  %v2510_v21 = vmul.f32 %v3349_v41, %v2199_v20  ;;  %v3353_v3 = vld [vmem:[%s3704_s14 + $0x510] sm:$0xff]  ;;  %v3356_v14 = vld [vmem:[%s3704_s14 + $0x528] sm:$0xff] }
 0x276   : > { %2699 = vst [vmem:[%s4145_s15 + $0x158] sm:$0xff] %v2443_v27  ;;  %v3345_v27 = vld [vmem:[%s3704_s14 + $0x350] sm:$0xff]  ;;  %v4621_v31 = vpop.eup %3191  ;;  %v1748_v43 = vrot.slane %v1747_v29, 2 }
 0x277   : > { %2700 = vst [vmem:[%s4145_s15 + $0x160] sm:$0xff] %v2444_v26  ;;  %v2506_v18 = vmul.f32 %v3345_v27, %v2197_v11  ;;  %v1978_v25 = vmul.f32 %v3190_v60, %v1962_v48  ;;  %v4618_v26 = vadd.f32 %v1912_v2, %v1911_v57  ;;  %v1866_v45 = vrot.slane %v4621_v31, 4  ;;  %v3357_v22 = vld [vmem:[%s3704_s14 + $0x530] sm:$0xff]  ;;  %v3359_v27 = vld [vmem:[%s3704_s14 + $0x540] sm:$0xff] }
 0x278   : > { %2701 = vst [vmem:[%s4145_s15 + $0x168] sm:$0xff] %v2445_v33  ;;  %v3346_v33 = vld [vmem:[%s3704_s14 + $0x358] sm:$0xff]  ;;  %v1749_v12 = vmax.f32 %v1747_v29, %v1748_v43  ;;  %v1770_v29 = vrot.slane %v4658_v17, 4 }
 0x279   : > { %2702 = vst [vmem:[%s4145_s15 + $0x170] sm:$0xff] %v2446_v36  ;;  %v2507_v35 = vmul.f32 %v3346_v33, %v2197_v11  ;;  %v1846_v36 = vrot.slane %v1845_v19, 1  ;;  %v1994_v0 = vmul.f32 %v4521_v52, %v1978_v25  ;;  %3193 = vrcp.f32 %v4618_v26  ;;  %v3360_v33 = vld [vmem:[%s3704_s14 + $0x548] sm:$0xff] }
 0x27a   : > { %2703 = vst [vmem:[%s4145_s15 + $0x178] sm:$0xff] %v2447_v50  ;;  %v3348_v50 = vld [vmem:[%s3704_s14 + $0x368] sm:$0xff]  ;;  %v2511_v52 = vmul.f32 %v3350_v32, %v2199_v20  ;;  %v1867_v60 = vadd.f32 %v4621_v31, %v1866_v45  ;;  %v3358_v20 = vld [vmem:[%s3704_s14 + $0x538] sm:$0xff]  ;;  %v1771_v43 = vmax.f32 %v4658_v17, %v1770_v29 }
 0x27b   : > { %2752 = vst [vmem:[%s4145_s15 + $0x300] sm:$0xff] %v2496_v55  ;;  %v2509_v46 = vmul.f32 %v3348_v50, %v2198_v34  ;;  %v1847_v38 = vadd.f32 %v1846_v36, %v1845_v19  ;;  %v4632_v42 = vmul.f32 16.0, %v1994_v0  ;;  %v3364_v32 = vld [vmem:[%s3704_s14 + $0x568] sm:$0xff] }
 0x27c   : > { %2753 = vst [vmem:[%s4145_s15 + $0x308] sm:$0xff] %v2497_v59  ;;  %v1868_v15 = vrot.slane %v1867_v60, 2 }
 0x27d   : > { %2754 = vst [vmem:[%s4145_s15 + $0x310] sm:$0xff] %v2498_v56  ;;  %3195 = vrcp.f32 %v1847_v38  ;;  %v2102_v44 = vrot.slane %v4632_v42, 1  ;;  %v2103_v37 = vrot.slane %v4632_v42, 2  ;;  %v2104_v51 = vrot.slane %v4632_v42, 3  ;;  %v3351_v56 = vld [vmem:[%s3704_s14 + $0x500] sm:$0xff] }
 0x27e   : > { %2755 = vst [vmem:[%s4145_s15 + $0x318] sm:$0xff] %v2499_v63  ;;  %v2105_v61 = vrot.slane %v4632_v42, 4  ;;  %v2224_v49 = vperm.slane %v4632_v42, 0  ;;  %v2106_v59 = vrot.slane %v4632_v42, 5  ;;  %v2108_v30 = vrot.slane %v4632_v42, 7 }
 0x27f   : > { %2756 = vst [vmem:[%s4145_s15 + $0x320] sm:$0xff] %v2500_v5  ;;  %v2225_v55 = vperm.slane %v2102_v44, 0  ;;  %v2226_v57 = vperm.slane %v2103_v37, 0  ;;  %v2227_v62 = vperm.slane %v2104_v51, 0  ;;  %v3194_v63 = vpop.eup %3193  ;;  %v3354_v5 = vld [vmem:[%s3704_s14 + $0x518] sm:$0xff]  ;;  %v3365_v37 = vld [vmem:[%s3704_s14 + $0x570] sm:$0xff] }
 0x280   : > { %2757 = vst [vmem:[%s4145_s15 + $0x328] sm:$0xff] %v2501_v10  ;;  %v2560_v53 = vmul.f32 %v3351_v56, %v2224_v49  ;;  %v2561_v1 = vmul.f32 %v3352_v23, %v2224_v49  ;;  %v2107_v10 = vrot.slane %v4632_v42, 6  ;;  %v2228_v11 = vperm.slane %v2105_v61, 0 }
 0x281   : > { %2758 = vst [vmem:[%s4145_s15 + $0x330] sm:$0xff] %v2502_v58  ;;  %v2562_v47 = vmul.f32 %v3353_v3, %v2225_v55  ;;  %v2563_v8 = vmul.f32 %v3354_v5, %v2225_v55  ;;  %v2564_v58 = vmul.f32 %v3355_v13, %v2226_v57  ;;  %v2565_v2 = vmul.f32 %v3356_v14, %v2226_v57  ;;  %v3366_v55 = vld [vmem:[%s3704_s14 + $0x578] sm:$0xff]  ;;  %v3367_v5 = vld [vmem:[%s3704_s14 + $0x700] sm:$0xff]  ;;  %v3369_v13 = vld [vmem:[%s3704_s14 + $0x710] sm:$0xff] }
 0x282   : > { %2759 = vst [vmem:[%s4145_s15 + $0x338] sm:$0xff] %v2503_v16  ;;  %v1750_v16 = vrot.slane %v1749_v12, 1  ;;  %v2229_v34 = vperm.slane %v2106_v59, 0  ;;  %v1950_v48 = vmul.f32 %v3194_v63, %v4618_v26  ;;  %v2567_v4 = vmul.f32 %v3358_v20, %v2227_v62  ;;  %v3370_v14 = vld [vmem:[%s3704_s14 + $0x718] sm:$0xff] }
 0x283   : > { %2760 = vst [vmem:[%s4145_s15 + $0x340] sm:$0xff] %v2504_v24  ;;  %v3196_v9 = vpop.eup %3195  ;;  %v2566_v24 = vmul.f32 %v3357_v22, %v2227_v62  ;;  %v2230_v19 = vperm.slane %v2107_v10, 0  ;;  %v1869_v26 = vadd.f32 %v1868_v15, %v1867_v60  ;;  %v2231_v36 = vperm.slane %v2108_v30, 0  ;;  %v3368_v10 = vld [vmem:[%s3704_s14 + $0x708] sm:$0xff] }
 0x284   : > { %2761 = vst [vmem:[%s4145_s15 + $0x348] sm:$0xff] %v2505_v54  ;;  %v1939_v54 = vmul.f32 %v3196_v9, %v1847_v38  ;;  %v1966_v25 = vsub.f32 2.0, %v1950_v48  ;;  %v1751_v50 = vmax.f32 %v1749_v12, %v1750_v16  ;;  %v3363_v38 = vld [vmem:[%s3704_s14 + $0x560] sm:$0xff]  ;;  %v1772_v62 = vrot.slane %v1771_v43, 2 }
 0x285   : > { %2762 = vst [vmem:[%s4145_s15 + $0x350] sm:$0xff] %v2506_v18  ;;  %v2568_v18 = vmul.f32 %v3359_v27, %v2228_v11  ;;  %v2572_v42 = vmul.f32 %v3363_v38, %v2230_v19  ;;  %v1870_v44 = vrot.slane %v1869_v26, 1  ;;  %v2574_v51 = vmul.f32 %v3365_v37, %v2231_v36  ;;  %v3374_v27 = vld [vmem:[%s3704_s14 + $0x738] sm:$0xff] }
 0x286   : > { %2763 = vst [vmem:[%s4145_s15 + $0x358] sm:$0xff] %v2507_v35  ;;  %v2569_v35 = vmul.f32 %v3360_v33, %v2228_v11  ;;  %v1982_v0 = vmul.f32 %v3194_v63, %v1966_v25  ;;  %v1787_v49 = vsub.f32 %v4602_v7, %v1751_v50  ;;  %v2575_v57 = vmul.f32 %v3366_v55, %v2231_v36  ;;  %v3375_v33 = vld [vmem:[%s3704_s14 + $0x740] sm:$0xff]  ;;  %v3376_v36 = vld [vmem:[%s3704_s14 + $0x748] sm:$0xff] }
 0x287   : > { %2764 = vst [vmem:[%s4145_s15 + $0x360] sm:$0xff] %v2508_v40  ;;  %v2570_v40 = vmul.f32 %v3361_v39, %v2229_v34  ;;  %v4688_v63 = vadd.f32 %v1870_v44, %v1869_v26  ;;  %v1773_v15 = vmax.f32 %v1771_v43, %v1772_v62  ;;  %v3380_v44 = vld [vmem:[%s3704_s14 + $0x768] sm:$0xff] }
 0x288   : > { %2765 = vst [vmem:[%s4145_s15 + $0x368] sm:$0xff] %v2509_v46  ;;  %v3362_v46 = vld [vmem:[%s3704_s14 + $0x558] sm:$0xff]  ;;  %v1998_v45 = vmul.f32 %v4559_v6, %v1982_v0  ;;  %v3377_v0 = vld [vmem:[%s3704_s14 + $0x750] sm:$0xff] }
 0x289   : > { %2766 = vst [vmem:[%s4145_s15 + $0x370] sm:$0xff] %v2510_v21  ;;  %v2571_v41 = vmul.f32 %v3362_v46, %v2229_v34  ;;  %v1955_v21 = vsub.f32 2.0, %v1939_v54  ;;  %v3371_v34 = vld [vmem:[%s3704_s14 + $0x720] sm:$0xff]  ;;  %3197 = vrcp.f32 %v4688_v63  ;;  %v1774_v25 = vrot.slane %v1773_v15, 1 }
 0x28a   : > { %2767 = vst [vmem:[%s4145_s15 + $0x378] sm:$0xff] %v2511_v52  ;;  %v2573_v52 = vmul.f32 %v3364_v32, %v2230_v19  ;;  %v2014_v61 = vmul.f32 16.0, %v1998_v45  ;;  %v3379_v45 = vld [vmem:[%s3704_s14 + $0x760] sm:$0xff] }
 0x28b   : > { %2816 = vst [vmem:[%s4145_s15 + $0x500] sm:$0xff] %v2560_v53  ;;  %v1971_v60 = vmul.f32 %v3196_v9, %v1955_v21  ;;  %v3378_v21 = vld [vmem:[%s3704_s14 + $0x758] sm:$0xff] }
 0x28c   : > { %2817 = vst [vmem:[%s4145_s15 + $0x508] sm:$0xff] %v2561_v1  ;;  %v2130_v6 = vrot.slane %v2014_v61, 1  ;;  %v2131_v12 = vrot.slane %v2014_v61, 2  ;;  %v2132_v59 = vrot.slane %v2014_v61, 3  ;;  %v2133_v56 = vrot.slane %v2014_v61, 4 }
 0x28d   : > { %2818 = vst [vmem:[%s4145_s15 + $0x510] sm:$0xff] %v2562_v47  ;;  %v2256_v53 = vperm.slane %v2014_v61, 0  ;;  %v1814_v1 = vmul.f32 1.442695, %v1787_v49  ;;  %v2134_v3 = vrot.slane %v2014_v61, 5  ;;  %v1987_v9 = vmul.f32 %v4580_v28, %v1971_v60 }
 0x28e   : > { %2819 = vst [vmem:[%s4145_s15 + $0x518] sm:$0xff] %v2563_v8  ;;  %v2257_v7 = vperm.slane %v2130_v6, 0  ;;  %v2258_v23 = vperm.slane %v2131_v12, 0  ;;  %v2259_v47 = vperm.slane %v2132_v59, 0  ;;  %v2135_v16 = vrot.slane %v2014_v61, 6  ;;  %v3382_v6 = vld [vmem:[%s3704_s14 + $0x778] sm:$0xff] }
 0x28f   : > { %2820 = vst [vmem:[%s4145_s15 + $0x520] sm:$0xff] %v2564_v58  ;;  %v2624_v8 = vmul.f32 %v3367_v5, %v2256_v53  ;;  %v2625_v11 = vmul.f32 %v3368_v10, %v2256_v53  ;;  %v2260_v30 = vperm.slane %v2133_v56, 0  ;;  %v2136_v28 = vrot.slane %v2014_v61, 7  ;;  %v3383_v53 = vld [vmem:[%s3704_s14 + $0x180] sm:$0xff]  ;;  %v3386_v10 = vld [vmem:[%s3704_s14 + $0x198] sm:$0xff] }
 0x290   : > { %2821 = vst [vmem:[%s4145_s15 + $0x528] sm:$0xff] %v2565_v2  ;;  %v2626_v58 = vmul.f32 %v3369_v13, %v2257_v7  ;;  %v2627_v2 = vmul.f32 %v3370_v14, %v2257_v7  ;;  %v2628_v22 = vmul.f32 %v3371_v34, %v2258_v23  ;;  %3199 = vpow2.f32 %v1814_v1  ;;  %v3384_v1 = vld [vmem:[%s3704_s14 + $0x188] sm:$0xff] }
 0x291   : > { %2822 = vst [vmem:[%s4145_s15 + $0x530] sm:$0xff] %v2566_v24  ;;  %v3372_v24 = vld [vmem:[%s3704_s14 + $0x728] sm:$0xff]  ;;  %v2261_v20 = vperm.slane %v2134_v3, 0  ;;  %v4704_v19 = vmul.f32 16.0, %v1987_v9  ;;  %v2262_v29 = vperm.slane %v2135_v16, 0  ;;  %v2263_v26 = vperm.slane %v2136_v28, 0 }
 0x292   : > { %2823 = vst [vmem:[%s4145_s15 + $0x538] sm:$0xff] %v2567_v4  ;;  %v2629_v48 = vmul.f32 %v3372_v24, %v2258_v23  ;;  %v3373_v4 = vld [vmem:[%s3704_s14 + $0x730] sm:$0xff]  ;;  %v2633_v39 = vmul.f32 %v3376_v36, %v2260_v30  ;;  %v3388_v34 = vld [vmem:[%s3704_s14 + $0x1a8] sm:$0xff] }
 0x293   : > { %2824 = vst [vmem:[%s4145_s15 + $0x540] sm:$0xff] %v2568_v18  ;;  %v2630_v54 = vmul.f32 %v3373_v4, %v2259_v47  ;;  %v2631_v18 = vmul.f32 %v3374_v27, %v2259_v47  ;;  %v2634_v50 = vmul.f32 %v3377_v0, %v2261_v20  ;;  %v2053_v46 = vrot.slane %v4704_v19, 1 }
 0x294   : > { %2825 = vst [vmem:[%s4145_s15 + $0x548] sm:$0xff] %v2569_v35  ;;  %v2632_v35 = vmul.f32 %v3375_v33, %v2260_v30  ;;  %v2635_v38 = vmul.f32 %v3378_v21, %v2261_v20  ;;  %v2636_v43 = vmul.f32 %v3379_v45, %v2262_v29  ;;  %v2054_v32 = vrot.slane %v4704_v19, 2 }
 0x295   : > { %2826 = vst [vmem:[%s4145_s15 + $0x550] sm:$0xff] %v2570_v40  ;;  %v3198_v40 = vpop.eup %3197  ;;  %v2637_v37 = vmul.f32 %v3380_v44, %v2262_v29  ;;  %v2055_v49 = vrot.slane %v4704_v19, 3  ;;  %v2169_v55 = vperm.slane %v2053_v46, 0  ;;  %v2639_v12 = vmul.f32 %v3382_v6, %v2263_v26  ;;  %v3392_v29 = vld [vmem:[%s3704_s14 + $0x1c8] sm:$0xff]  ;;  %v3395_v46 = vld [vmem:[%s3704_s14 + $0x1e0] sm:$0xff] }
 0x296   : > { %2827 = vst [vmem:[%s4145_s15 + $0x558] sm:$0xff] %v2571_v41  ;;  %v4715_v41 = vpop.eup %3199  ;;  %v2056_v59 = vrot.slane %v4704_v19, 4  ;;  %v2170_v56 = vperm.slane %v2054_v32, 0  ;;  %v2057_v47 = vrot.slane %v4704_v19, 5  ;;  %v2058_v14 = vrot.slane %v4704_v19, 6  ;;  %v3399_v6 = vld [vmem:[%s3704_s14 + $0x380] sm:$0xff] }
 0x297   : > { %2828 = vst [vmem:[%s4145_s15 + $0x560] sm:$0xff] %v2572_v42  ;;  %v1775_v42 = vmax.f32 %v1773_v15, %v1774_v25  ;;  %v1890_v60 = vrot.slane %v4715_v41, 4  ;;  %v2171_v5 = vperm.slane %v2055_v49, 0  ;;  %v3387_v15 = vld [vmem:[%s3704_s14 + $0x1a0] sm:$0xff]  ;;  %v2059_v28 = vrot.slane %v4704_v19, 7 }
 0x298   : > { %2829 = vst [vmem:[%s4145_s15 + $0x568] sm:$0xff] %v2573_v52  ;;  %v2168_v52 = vperm.slane %v4704_v19, 0  ;;  %v2452_v16 = vmul.f32 %v3387_v15, %v2170_v56  ;;  %v2173_v24 = vperm.slane %v2057_v47, 0  ;;  %v3391_v25 = vld [vmem:[%s3704_s14 + $0x1c0] sm:$0xff] }
 0x299   : > { %2830 = vst [vmem:[%s4145_s15 + $0x570] sm:$0xff] %v2574_v51  ;;  %v3381_v51 = vld [vmem:[%s3704_s14 + $0x770] sm:$0xff]  ;;  %v1791_v62 = vsub.f32 %v4658_v17, %v1775_v42 }
 0x29a   : > { %2831 = vst [vmem:[%s4145_s15 + $0x578] sm:$0xff] %v2575_v57  ;;  %v2638_v61 = vmul.f32 %v3381_v51, %v2263_v26  ;;  %v1943_v57 = vmul.f32 %v3198_v40, %v4688_v63  ;;  %v2448_v7 = vmul.f32 %v3383_v53, %v2168_v52  ;;  %v1891_v63 = vadd.f32 %v4715_v41, %v1890_v60  ;;  %v3385_v17 = vld [vmem:[%s3704_s14 + $0x190] sm:$0xff] }
 0x29b   : > { %2880 = vst [vmem:[%s4145_s15 + $0x700] sm:$0xff] %v2624_v8  ;;  %v2449_v3 = vmul.f32 %v3384_v1, %v2168_v52  ;;  %v2450_v8 = vmul.f32 %v3385_v17, %v2169_v55  ;;  %v3393_v26 = vld [vmem:[%s3704_s14 + $0x1d0] sm:$0xff] }
 0x29c   : > { %2881 = vst [vmem:[%s4145_s15 + $0x708] sm:$0xff] %v2625_v11  ;;  %v1959_v23 = vsub.f32 2.0, %v1943_v57  ;;  %v2451_v11 = vmul.f32 %v3386_v10, %v2169_v55  ;;  %v1892_v13 = vrot.slane %v1891_v63, 2  ;;  %v2458_v36 = vmul.f32 %v3393_v26, %v2173_v24  ;;  %v3397_v52 = vld [vmem:[%s3704_s14 + $0x1f0] sm:$0xff] }
 0x29d   : > { %2882 = vst [vmem:[%s4145_s15 + $0x710] sm:$0xff] %v2626_v58  ;;  %v1822_v58 = vmul.f32 1.442695, %v1791_v62  ;;  %v3400_v62 = vld [vmem:[%s3704_s14 + $0x388] sm:$0xff] }
 0x29e   : > { %2883 = vst [vmem:[%s4145_s15 + $0x718] sm:$0xff] %v2627_v2  ;;  %v1975_v9 = vmul.f32 %v3198_v40, %v1959_v23  ;;  %v2172_v2 = vperm.slane %v2056_v59, 0  ;;  %v3394_v40 = vld [vmem:[%s3704_s14 + $0x1d8] sm:$0xff]  ;;  %v3401_v23 = vld [vmem:[%s3704_s14 + $0x390] sm:$0xff] }
 0x29f   : > { %2884 = vst [vmem:[%s4145_s15 + $0x720] sm:$0xff] %v2628_v22  ;;  %v2453_v22 = vmul.f32 %v3388_v34, %v2170_v56  ;;  %3201 = vpow2.f32 %v1822_v58  ;;  %v2459_v0 = vmul.f32 %v3394_v40, %v2173_v24  ;;  %v3406_v34 = vld [vmem:[%s3704_s14 + $0x3b8] sm:$0xff]  ;;  %v3407_v24 = vld [vmem:[%s3704_s14 + $0x3c0] sm:$0xff]  ;;  %v3412_v40 = vld [vmem:[%s3704_s14 + $0x3e8] sm:$0xff] }
 0x2a0   : > { %2885 = vst [vmem:[%s4145_s15 + $0x728] sm:$0xff] %v2629_v48  ;;  %v1991_v30 = vmul.f32 %v4621_v31, %v1975_v9  ;;  %v3389_v48 = vld [vmem:[%s3704_s14 + $0x1b0] sm:$0xff]  ;;  %v1893_v31 = vadd.f32 %v1892_v13, %v1891_v63  ;;  %v2456_v19 = vmul.f32 %v3391_v25, %v2172_v2  ;;  %v2457_v33 = vmul.f32 %v3392_v29, %v2172_v2  ;;  %v3410_v29 = vld [vmem:[%s3704_s14 + $0x3d8] sm:$0xff] }
 0x2a1   : > { %2886 = vst [vmem:[%s4145_s15 + $0x730] sm:$0xff] %v2630_v54  ;;  %v2454_v20 = vmul.f32 %v3389_v48, %v2171_v5  ;;  %v3390_v54 = vld [vmem:[%s3704_s14 + $0x1b8] sm:$0xff]  ;;  %v3405_v2 = vld [vmem:[%s3704_s14 + $0x3b0] sm:$0xff] }
 0x2a2   : > { %2887 = vst [vmem:[%s4145_s15 + $0x738] sm:$0xff] %v2631_v18  ;;  %v4753_v4 = vmul.f32 16.0, %v1991_v30  ;;  %v2455_v27 = vmul.f32 %v3390_v54, %v2171_v5  ;;  %v2174_v18 = vperm.slane %v2058_v14, 0  ;;  %v3408_v54 = vld [vmem:[%s3704_s14 + $0x3c8] sm:$0xff] }
 0x2a3   : > { %2888 = vst [vmem:[%s4145_s15 + $0x740] sm:$0xff] %v2632_v35  ;;  %v2175_v35 = vperm.slane %v2059_v28, 0 }
 0x2a4   : > { %2889 = vst [vmem:[%s4145_s15 + $0x748] sm:$0xff] %v2633_v39  ;;  %v2081_v39 = vrot.slane %v4753_v4, 1  ;;  %v2460_v21 = vmul.f32 %v3395_v46, %v2174_v18  ;;  %v2200_v42 = vperm.slane %v4753_v4, 0  ;;  %v2084_v57 = vrot.slane %v4753_v4, 4 }
 0x2a5   : > { %2890 = vst [vmem:[%s4145_s15 + $0x750] sm:$0xff] %v2634_v50  ;;  %v1894_v50 = vrot.slane %v1893_v31, 1  ;;  %v4770_v45 = vpop.eup %3201  ;;  %v2462_v44 = vmul.f32 %v3397_v52, %v2175_v35  ;;  %v2085_v53 = vrot.slane %v4753_v4, 5  ;;  %v2086_v5 = vrot.slane %v4753_v4, 6 }
 0x2a6   : > { %2891 = vst [vmem:[%s4145_s15 + $0x758] sm:$0xff] %v2635_v38  ;;  %v2082_v38 = vrot.slane %v4753_v4, 2  ;;  %v2201_v51 = vperm.slane %v2081_v39, 0  ;;  %v1914_v59 = vrot.slane %v4770_v45, 4  ;;  %v2513_v56 = vmul.f32 %v3400_v62, %v2200_v42  ;;  %v3417_v62 = vld [vmem:[%s3704_s14 + $0x590] sm:$0xff] }
 0x2a7   : > { %2892 = vst [vmem:[%s4145_s15 + $0x760] sm:$0xff] %v2636_v43  ;;  %v3396_v43 = vld [vmem:[%s3704_s14 + $0x1e8] sm:$0xff]  ;;  %v1895_v55 = vadd.f32 %v1894_v50, %v1893_v31  ;;  %v2204_v17 = vperm.slane %v2084_v57, 0  ;;  %v2087_v58 = vrot.slane %v4753_v4, 7  ;;  %v2205_v14 = vperm.slane %v2085_v53, 0  ;;  %v3413_v50 = vld [vmem:[%s3704_s14 + $0x3f0] sm:$0xff] }
 0x2a8   : > { %2893 = vst [vmem:[%s4145_s15 + $0x768] sm:$0xff] %v2637_v37  ;;  %v2461_v32 = vmul.f32 %v3396_v43, %v2174_v18  ;;  %v2083_v37 = vrot.slane %v4753_v4, 3  ;;  %v2202_v60 = vperm.slane %v2082_v38, 0  ;;  %v2514_v63 = vmul.f32 %v3401_v23, %v2201_v51  ;;  %v3409_v18 = vld [vmem:[%s3704_s14 + $0x3d0] sm:$0xff]  ;;  %v3414_v38 = vld [vmem:[%s3704_s14 + $0x3f8] sm:$0xff]  ;;  %v3415_v57 = vld [vmem:[%s3704_s14 + $0x580] sm:$0xff] }
 0x2a9   : > { %2894 = vst [vmem:[%s4145_s15 + $0x770] sm:$0xff] %v2638_v61  ;;  %v3398_v61 = vld [vmem:[%s3704_s14 + $0x1f8] sm:$0xff]  ;;  %3203 = vrcp.f32 %v1895_v55  ;;  %v1915_v1 = vadd.f32 %v4770_v45, %v1914_v59  ;;  %v2206_v28 = vperm.slane %v2086_v5, 0  ;;  %v2520_v48 = vmul.f32 %v3407_v24, %v2204_v17 }
 0x2aa   : > { %2895 = vst [vmem:[%s4145_s15 + $0x778] sm:$0xff] %v2639_v12  ;;  %v2463_v49 = vmul.f32 %v3398_v61, %v2175_v35  ;;  %v2512_v12 = vmul.f32 %v3399_v6, %v2200_v42  ;;  %v2207_v31 = vperm.slane %v2087_v58, 0  ;;  %v2522_v25 = vmul.f32 %v3409_v18, %v2205_v14  ;;  %v3411_v35 = vld [vmem:[%s3704_s14 + $0x3e0] sm:$0xff]  ;;  %v3418_v53 = vld [vmem:[%s3704_s14 + $0x598] sm:$0xff]  ;;  %v3428_v18 = vld [vmem:[%s3704_s14 + $0x5e8] sm:$0xff] }
 0x2ab   : > { %2704 = vst [vmem:[%s4145_s15 + $0x180] sm:$0xff] %v2448_v7  ;;  %v2203_v7 = vperm.slane %v2083_v37, 0  ;;  %v1916_v10 = vrot.slane %v1915_v1, 2  ;;  %v2524_v26 = vmul.f32 %v3411_v35, %v2206_v28  ;;  %v3430_v35 = vld [vmem:[%s3704_s14 + $0x5f8] sm:$0xff] }
 0x2ac   : > { %2705 = vst [vmem:[%s4145_s15 + $0x188] sm:$0xff] %v2449_v3  ;;  %v3402_v3 = vld [vmem:[%s3704_s14 + $0x398] sm:$0xff]  ;;  %v2526_v46 = vmul.f32 %v3413_v50, %v2207_v31  ;;  %v2527_v42 = vmul.f32 %v3414_v38, %v2207_v31 }
 0x2ad   : > { %2706 = vst [vmem:[%s4145_s15 + $0x190] sm:$0xff] %v2450_v8  ;;  %v2515_v47 = vmul.f32 %v3402_v3, %v2201_v51  ;;  %v3403_v8 = vld [vmem:[%s3704_s14 + $0x3a0] sm:$0xff]  ;;  %v2518_v15 = vmul.f32 %v3405_v2, %v2203_v7 }
 0x2ae   : > { %2707 = vst [vmem:[%s4145_s15 + $0x198] sm:$0xff] %v2451_v11  ;;  %v2516_v9 = vmul.f32 %v3403_v8, %v2202_v60  ;;  %v3404_v11 = vld [vmem:[%s3704_s14 + $0x3a8] sm:$0xff]  ;;  %v3423_v2 = vld [vmem:[%s3704_s14 + $0x5c0] sm:$0xff] }
 0x2af   : > { %2708 = vst [vmem:[%s4145_s15 + $0x1a0] sm:$0xff] %v2452_v16  ;;  %v2517_v13 = vmul.f32 %v3404_v11, %v2202_v60  ;;  %v1917_v16 = vadd.f32 %v1916_v10, %v1915_v1  ;;  %v3204_v30 = vpop.eup %3203  ;;  %v3419_v1 = vld [vmem:[%s3704_s14 + $0x5a0] sm:$0xff] }
 0x2b0   : > { %2709 = vst [vmem:[%s4145_s15 + $0x1a8] sm:$0xff] %v2453_v22  ;;  %v2519_v22 = vmul.f32 %v3406_v34, %v2203_v7 }
 0x2b1   : > { %2710 = vst [vmem:[%s4145_s15 + $0x1b0] sm:$0xff] %v2454_v20  ;;  %v1947_v20 = vmul.f32 %v3204_v30, %v1895_v55  ;;  %v1918_v4 = vrot.slane %v1917_v16, 1 }
 0x2b2   : > { %2711 = vst [vmem:[%s4145_s15 + $0x1b8] sm:$0xff] %v2455_v27  ;;  %v2521_v27 = vmul.f32 %v3408_v54, %v2204_v17  ;;  %v3427_v54 = vld [vmem:[%s3704_s14 + $0x5e0] sm:$0xff] }
 0x2b3   : > { %2712 = vst [vmem:[%s4145_s15 + $0x1c0] sm:$0xff] %v2456_v19  ;;  %v1963_v19 = vsub.f32 2.0, %v1947_v20  ;;  %v1919_v39 = vadd.f32 %v1918_v4, %v1917_v16  ;;  %v3426_v20 = vld [vmem:[%s3704_s14 + $0x5d8] sm:$0xff] }
 0x2b4   : > { %2713 = vst [vmem:[%s4145_s15 + $0x1c8] sm:$0xff] %v2457_v33  ;;  %v2523_v33 = vmul.f32 %v3410_v29, %v2205_v14 }
 0x2b5   : > { %2714 = vst [vmem:[%s4145_s15 + $0x1d0] sm:$0xff] %v2458_v36  ;;  %v1979_v36 = vmul.f32 %v3204_v30, %v1963_v19  ;;  %3205 = vrcp.f32 %v1919_v39  ;;  %v3424_v30 = vld [vmem:[%s3704_s14 + $0x5c8] sm:$0xff]  ;;  %v3429_v19 = vld [vmem:[%s3704_s14 + $0x5f0] sm:$0xff] }
 0x2b6   : > { %2715 = vst [vmem:[%s4145_s15 + $0x1d8] sm:$0xff] %v2459_v0  ;;  %v2525_v0 = vmul.f32 %v3412_v40, %v2206_v28  ;;  %v3425_v28 = vld [vmem:[%s3704_s14 + $0x5d0] sm:$0xff] }
 0x2b7   : > { %2716 = vst [vmem:[%s4145_s15 + $0x1e0] sm:$0xff] %v2460_v21  ;;  %v1995_v21 = vmul.f32 %v4715_v41, %v1979_v36 }
 0x2b8   : > { %2717 = vst [vmem:[%s4145_s15 + $0x1e8] sm:$0xff] %v2461_v32 }
 0x2b9   : > { %2718 = vst [vmem:[%s4145_s15 + $0x1f0] sm:$0xff] %v2462_v44  ;;  %v2011_v43 = vmul.f32 16.0, %v1995_v21 }
 0x2ba   : > { %2719 = vst [vmem:[%s4145_s15 + $0x1f8] sm:$0xff] %v2463_v49 }
 0x2bb   : > { %2768 = vst [vmem:[%s4145_s15 + $0x380] sm:$0xff] %v2512_v12  ;;  %v2109_v32 = vrot.slane %v2011_v43, 1  ;;  %v2110_v52 = vrot.slane %v2011_v43, 2  ;;  %v2111_v44 = vrot.slane %v2011_v43, 3  ;;  %v2112_v37 = vrot.slane %v2011_v43, 4  ;;  %v3206_v6 = vpop.eup %3205  ;;  %v3416_v12 = vld [vmem:[%s3704_s14 + $0x588] sm:$0xff] }
 0x2bc   : > { %2769 = vst [vmem:[%s4145_s15 + $0x388] sm:$0xff] %v2513_v56  ;;  %v2232_v51 = vperm.slane %v2011_v43, 0  ;;  %v2113_v49 = vrot.slane %v2011_v43, 5  ;;  %v2114_v23 = vrot.slane %v2011_v43, 6  ;;  %v2115_v17 = vrot.slane %v2011_v43, 7 }
 0x2bd   : > { %2770 = vst [vmem:[%s4145_s15 + $0x390] sm:$0xff] %v2514_v63  ;;  %v2233_v41 = vperm.slane %v2109_v32, 0  ;;  %v2234_v61 = vperm.slane %v2110_v52, 0  ;;  %v2235_v55 = vperm.slane %v2111_v44, 0  ;;  %v2236_v63 = vperm.slane %v2112_v37, 0  ;;  %v3432_v32 = vld [vmem:[%s3704_s14 + $0x788] sm:$0xff] }
 0x2be   : > { %2771 = vst [vmem:[%s4145_s15 + $0x398] sm:$0xff] %v2515_v47  ;;  %v2576_v60 = vmul.f32 %v3415_v57, %v2232_v51  ;;  %v2577_v59 = vmul.f32 %v3416_v12, %v2232_v51  ;;  %v3420_v47 = vld [vmem:[%s3704_s14 + $0x5a8] sm:$0xff]  ;;  %v2237_v8 = vperm.slane %v2113_v49, 0  ;;  %v1951_v11 = vmul.f32 %v3206_v6, %v1919_v39  ;;  %v3433_v44 = vld [vmem:[%s3704_s14 + $0x790] sm:$0xff]  ;;  %v3434_v51 = vld [vmem:[%s3704_s14 + $0x798] sm:$0xff] }
 0x2bf   : > { %2772 = vst [vmem:[%s4145_s15 + $0x3a0] sm:$0xff] %v2516_v9  ;;  %v2578_v56 = vmul.f32 %v3417_v62, %v2233_v41  ;;  %v2579_v7 = vmul.f32 %v3418_v53, %v2233_v41  ;;  %v2580_v3 = vmul.f32 %v3419_v1, %v2234_v61  ;;  %v2581_v5 = vmul.f32 %v3420_v47, %v2234_v61  ;;  %v3421_v9 = vld [vmem:[%s3704_s14 + $0x5b0] sm:$0xff]  ;;  %v3438_v53 = vld [vmem:[%s3704_s14 + $0x7b8] sm:$0xff] }
 0x2c0   : > { %2773 = vst [vmem:[%s4145_s15 + $0x3a8] sm:$0xff] %v2517_v13  ;;  %v2582_v10 = vmul.f32 %v3421_v9, %v2235_v55  ;;  %v3422_v13 = vld [vmem:[%s3704_s14 + $0x5b8] sm:$0xff]  ;;  %v2238_v14 = vperm.slane %v2114_v23, 0  ;;  %v1967_v16 = vsub.f32 2.0, %v1951_v11  ;;  %v2585_v34 = vmul.f32 %v3424_v30, %v2236_v63  ;;  %v3437_v62 = vld [vmem:[%s3704_s14 + $0x7b0] sm:$0xff]  ;;  %v3443_v11 = vld [vmem:[%s3704_s14 + $0x7e0] sm:$0xff] }
 0x2c1   : > { %2774 = vst [vmem:[%s4145_s15 + $0x3b0] sm:$0xff] %v2518_v15  ;;  %v2583_v58 = vmul.f32 %v3422_v13, %v2235_v55  ;;  %v2584_v15 = vmul.f32 %v3423_v2, %v2236_v63  ;;  %v2586_v24 = vmul.f32 %v3425_v28, %v2237_v8  ;;  %v2587_v4 = vmul.f32 %v3426_v20, %v2237_v8  ;;  %v3435_v55 = vld [vmem:[%s3704_s14 + $0x7a0] sm:$0xff]  ;;  %v3442_v9 = vld [vmem:[%s3704_s14 + $0x7d8] sm:$0xff]  ;;  %v3445_v2 = vld [vmem:[%s3704_s14 + $0x7f0] sm:$0xff] }
 0x2c2   : > { %2775 = vst [vmem:[%s4145_s15 + $0x3b8] sm:$0xff] %v2519_v22  ;;  %v2239_v22 = vperm.slane %v2115_v17, 0  ;;  %v3439_v63 = vld [vmem:[%s3704_s14 + $0x7c0] sm:$0xff]  ;;  %v3441_v17 = vld [vmem:[%s3704_s14 + $0x7d0] sm:$0xff] }
 0x2c3   : > { %2776 = vst [vmem:[%s4145_s15 + $0x3c0] sm:$0xff] %v2520_v48  ;;  %v1983_v48 = vmul.f32 %v3206_v6, %v1967_v16  ;;  %v3446_v16 = vld [vmem:[%s3704_s14 + $0x7f8] sm:$0xff] }
 0x2c4   : > { %2777 = vst [vmem:[%s4145_s15 + $0x3c8] sm:$0xff] %v2521_v27  ;;  %v2588_v27 = vmul.f32 %v3427_v54, %v2238_v14  ;;  %v2590_v29 = vmul.f32 %v3429_v19, %v2239_v22 }
 0x2c5   : > { %2778 = vst [vmem:[%s4145_s15 + $0x3d0] sm:$0xff] %v2522_v25  ;;  %v1999_v31 = vmul.f32 %v4770_v45, %v1983_v48  ;;  %v2589_v25 = vmul.f32 %v3428_v18, %v2238_v14 }
 0x2c6   : > { %2779 = vst [vmem:[%s4145_s15 + $0x3d8] sm:$0xff] %v2523_v33 }
 0x2c7   : > { %2780 = vst [vmem:[%s4145_s15 + $0x3e0] sm:$0xff] %v2524_v26  ;;  %v2015_v33 = vmul.f32 16.0, %v1999_v31  ;;  %v2591_v26 = vmul.f32 %v3430_v35, %v2239_v22 }
 0x2c8   : > { %2781 = vst [vmem:[%s4145_s15 + $0x3e8] sm:$0xff] %v2525_v0 }
 0x2c9   : > { %2782 = vst [vmem:[%s4145_s15 + $0x3f0] sm:$0xff] %v2526_v46  ;;  %v2137_v36 = vrot.slane %v2015_v33, 1  ;;  %v2138_v39 = vrot.slane %v2015_v33, 2  ;;  %v2139_v40 = vrot.slane %v2015_v33, 3  ;;  %v2140_v45 = vrot.slane %v2015_v33, 4 }
 0x2ca   : > { %2783 = vst [vmem:[%s4145_s15 + $0x3f8] sm:$0xff] %v2527_v42  ;;  %v2264_v0 = vperm.slane %v2015_v33, 0  ;;  %v2141_v21 = vrot.slane %v2015_v33, 5  ;;  %v3431_v42 = vld [vmem:[%s3704_s14 + $0x780] sm:$0xff]  ;;  %v2142_v61 = vrot.slane %v2015_v33, 6  ;;  %v2143_v12 = vrot.slane %v2015_v33, 7 }
 0x2cb   : > { %2832 = vst [vmem:[%s4145_s15 + $0x580] sm:$0xff] %v2576_v60  ;;  %v2265_v50 = vperm.slane %v2137_v36, 0  ;;  %v2266_v46 = vperm.slane %v2138_v39, 0  ;;  %v2267_v38 = vperm.slane %v2139_v40, 0  ;;  %v2268_v49 = vperm.slane %v2140_v45, 0  ;;  %v3436_v60 = vld [vmem:[%s3704_s14 + $0x7a8] sm:$0xff] }
 0x2cc   : > { %2833 = vst [vmem:[%s4145_s15 + $0x588] sm:$0xff] %v2577_v59  ;;  %v2640_v43 = vmul.f32 %v3431_v42, %v2264_v0  ;;  %v2641_v52 = vmul.f32 %v3432_v32, %v2264_v0  ;;  %v2269_v59 = vperm.slane %v2141_v21, 0  ;;  %v2270_v23 = vperm.slane %v2142_v61, 0 }
 0x2cd   : > { %2834 = vst [vmem:[%s4145_s15 + $0x590] sm:$0xff] %v2578_v56  ;;  %v2642_v37 = vmul.f32 %v3433_v44, %v2265_v50  ;;  %v2643_v41 = vmul.f32 %v3434_v51, %v2265_v50  ;;  %v2644_v57 = vmul.f32 %v3435_v55, %v2266_v46  ;;  %v2645_v6 = vmul.f32 %v3436_v60, %v2266_v46 }
 0x2ce   : > { %2835 = vst [vmem:[%s4145_s15 + $0x598] sm:$0xff] %v2579_v7  ;;  %v2646_v56 = vmul.f32 %v3437_v62, %v2267_v38  ;;  %v2647_v7 = vmul.f32 %v3438_v53, %v2267_v38  ;;  %v2648_v1 = vmul.f32 %v3439_v63, %v2268_v49  ;;  %v2650_v8 = vmul.f32 %v3441_v17, %v2269_v59 }
 0x2cf   : > { %2836 = vst [vmem:[%s4145_s15 + $0x5a0] sm:$0xff] %v2580_v3  ;;  %v3440_v3 = vld [vmem:[%s3704_s14 + $0x7c8] sm:$0xff]  ;;  %v2652_v13 = vmul.f32 %v3443_v11, %v2270_v23 }
 0x2d0   : > { %2837 = vst [vmem:[%s4145_s15 + $0x5a8] sm:$0xff] %v2581_v5  ;;  %v2649_v47 = vmul.f32 %v3440_v3, %v2268_v49  ;;  %v2271_v5 = vperm.slane %v2143_v12, 0 }
 0x2d1   : > { %2838 = vst [vmem:[%s4145_s15 + $0x5b0] sm:$0xff] %v2582_v10  ;;  %v2651_v10 = vmul.f32 %v3442_v9, %v2269_v59 }
 0x2d2   : > { %2839 = vst [vmem:[%s4145_s15 + $0x5b8] sm:$0xff] %v2583_v58  ;;  %v3444_v58 = vld [vmem:[%s3704_s14 + $0x7e8] sm:$0xff]  ;;  %v2655_v30 = vmul.f32 %v3446_v16, %v2271_v5 }
 0x2d3   : > { %2840 = vst [vmem:[%s4145_s15 + $0x5c0] sm:$0xff] %v2584_v15  ;;  %v2653_v14 = vmul.f32 %v3444_v58, %v2270_v23  ;;  %v2654_v15 = vmul.f32 %v3445_v2, %v2271_v5 }
 0x2d4   : > { %2841 = vst [vmem:[%s4145_s15 + $0x5c8] sm:$0xff] %v2585_v34 }
 0x2d5   : > { %2842 = vst [vmem:[%s4145_s15 + $0x5d0] sm:$0xff] %v2586_v24 }
 0x2d6   : > { %2843 = vst [vmem:[%s4145_s15 + $0x5d8] sm:$0xff] %v2587_v4 }
 0x2d7   : > { %2844 = vst [vmem:[%s4145_s15 + $0x5e0] sm:$0xff] %v2588_v27 }
 0x2d8   : > { %2845 = vst [vmem:[%s4145_s15 + $0x5e8] sm:$0xff] %v2589_v25 }
 0x2d9   : > { %2846 = vst [vmem:[%s4145_s15 + $0x5f0] sm:$0xff] %v2590_v29 }
 0x2da   : > { %2847 = vst [vmem:[%s4145_s15 + $0x5f8] sm:$0xff] %v2591_v26 }
 0x2db   : > { %2896 = vst [vmem:[%s4145_s15 + $0x780] sm:$0xff] %v2640_v43 }
 0x2dc   : > { %2897 = vst [vmem:[%s4145_s15 + $0x788] sm:$0xff] %v2641_v52 }
 0x2dd   : > { %2898 = vst [vmem:[%s4145_s15 + $0x790] sm:$0xff] %v2642_v37 }
 0x2de   : > { %2899 = vst [vmem:[%s4145_s15 + $0x798] sm:$0xff] %v2643_v41 }
 0x2df   : > { %2900 = vst [vmem:[%s4145_s15 + $0x7a0] sm:$0xff] %v2644_v57 }
 0x2e0   : > { %2901 = vst [vmem:[%s4145_s15 + $0x7a8] sm:$0xff] %v2645_v6 }
 0x2e1   : > { %2902 = vst [vmem:[%s4145_s15 + $0x7b0] sm:$0xff] %v2646_v56 }
 0x2e2   : > { %2903 = vst [vmem:[%s4145_s15 + $0x7b8] sm:$0xff] %v2647_v7 }
 0x2e3   : > { %2904 = vst [vmem:[%s4145_s15 + $0x7c0] sm:$0xff] %v2648_v1 }
 0x2e4   : > { %2905 = vst [vmem:[%s4145_s15 + $0x7c8] sm:$0xff] %v2649_v47 }
 0x2e5   : > { %2906 = vst [vmem:[%s4145_s15 + $0x7d0] sm:$0xff] %v2650_v8 }
 0x2e6   : > { %2907 = vst [vmem:[%s4145_s15 + $0x7d8] sm:$0xff] %v2651_v10 }
 0x2e7   : > { %2908 = vst [vmem:[%s4145_s15 + $0x7e0] sm:$0xff] %v2652_v13 }
 0x2e8   : > { %2909 = vst [vmem:[%s4145_s15 + $0x7e8] sm:$0xff] %v2653_v14 }
 0x2e9   : > { %2910 = vst [vmem:[%s4145_s15 + $0x7f0] sm:$0xff] %v2654_v15 }
 0x2ea   : > { %2911 = vst [vmem:[%s4145_s15 + $0x7f8] sm:$0xff] %v2655_v30 }
 0x2eb   : > { %3534 = shalt.err (!%p3531_p10)
}
 0x2ec   : > { %s3582_s5 = smov 128   ;;  %s3583_s30 = smov 8  }
 0x2ed   : > { %3088 = dma.vmem_to_hbm [thread:$0]  (%p3668_p3), %s2927_s8, 32768, %s2929_s17, %s2913_s18, %s3582_s5, %s3582_s5, %s3583_s30  }
 0x2ee PF: > { %s2943_s6 = sand.u32 1, %s3565_s9   ;;  %p4929_p12 = scmp.ge.s32.totalorder %s3577_s12, 2 }
 0x2ef   : > { %s2944_s7 = scalar_lea.sflag [#allocation4], %s2943_s6 }
 0x2f0   : > { %p3099_p13 = pnand %p4929_p12, %p3634_p6 }
 0x2f2   : > { %p3100_p0 = pneg %p3099_p13 }
 0x2f4   : > { %3560 = dma.done.wait (%p3100_p0), %s2944_s7, 32768  }
 0x2f5   : > { %3562 = vsyncadd (%p3100_p0), %s2944_s7, 4294934528  ;;  %p16_p5 = scmp.ge.s32.totalorder %s3652_s23, 4   ;;  %s4930_s9 = smov %s3569_s10 }
 0x2f6   : > { %s4931_s10 = smov %s3573_s11  ;;  %s4932_s11 = smov %s3664_s28 }
 0x2f7   : > { %s4933_s12 = smov %s3652_s23  ;;  %18 = sbr.rel (!%p16_p5) target bundleno = 6 (0x6), region = 77 }
 0x2fc   :  { %2950 = vsyncpa [#allocation3], 1 }
 0x2fd   :  { %2952 = vsyncpa [#allocation3 + $0x1], 1 }
 0x2fe   :  { %2953 = vsyncpa [#allocation6], 1 }
 0x2ff   :  { %2954 = vsyncpa [#allocation4], 1 }
 0x300   :  { %2956 = vsyncpa [#allocation4 + $0x1], 1 }

</bundles_post_ra>
